<compile_context>
chip_gen: v6e
topology: v6e:2x2x1
jax: 0.10.0
libtpu: 0.0.40
codegen_flags: <defaults>
</compile_context>

<pallas_src>
import functools

import jax
import jax.numpy as jnp
import numpy as np
from jax import lax
from jax.experimental import pallas as pl
from jax.experimental.pallas import tpu as pltpu


def _round_up(v, m):
    return ((v + m - 1) // m) * m


# ----------------------------------------------------------------------------
# Fused Pallas kernel: all LSTM layers + all timesteps + FC head in one call.
# ----------------------------------------------------------------------------
def fused_lstm_fc_kernel(x_ref, wih_ref, whh_ref, b_ref, wfc_ref, bfc_ref,
                         out_ref, seq_ref, gx_ref,
                         *, num_layers, seq_len, hp, fp):
    """
    x_ref   : (T, Bp, Fp)     bf16  time-major, zero-padded input (layer-0 input)
    wih_ref : (L, Fp, 4*Hp)   bf16  W_ih^T per layer, each gate in a lane-aligned Hp block
    whh_ref : (L, Hp, 4*Hp)   bf16  W_hh^T per layer
    b_ref   : (L, 1, 4*Hp)    f32   b_ih + b_hh per layer
    wfc_ref : (Hp, Op)        bf16  FC weight (transposed, padded)
    bfc_ref : (1, Op)         f32   FC bias
    out_ref : (Bp, Op)        f32   FC(h_{T-1}) of the last layer
    seq_ref : (T, Bp, Hp)     bf16  VMEM scratch: inter-layer hidden sequence
    gx_ref  : (T, Bp, 4*Hp)   f32   VMEM scratch: hoisted input projection + bias
    """
    bp = out_ref.shape[0]
    tb = seq_len * bp

    h_last = None
    for layer in range(num_layers):          # static Python loop -> unrolled at trace
        # ---- OFF the recurrent chain: input projection for all T timesteps in one
        # MXU matmul (M = T*Bp), bias folded in here.
        if layer == 0:
            inp = x_ref[...].reshape(tb, fp)            # bf16 (T*Bp, Fp)
            w_in = wih_ref[layer]                       # (Fp, 4*Hp)
        else:
            inp = seq_ref[...].reshape(tb, hp)          # bf16 (T*Bp, Hp)
            w_in = wih_ref[layer][:hp, :]               # (Hp, 4*Hp), static slice
        gx = jnp.dot(inp, w_in, preferred_element_type=jnp.float32) + b_ref[layer]
        gx_ref[...] = gx.reshape(seq_len, bp, 4 * hp)

        w_hh = whh_ref[layer]                           # (Hp, 4*Hp) bf16
        last = layer == num_layers - 1

        def step(t, carry, _w_hh=w_hh, _last=last):
            h_prev, c_prev = carry                      # (Bp, Hp) f32
            # Per-step critical path: ONE K=Hp matmul + gate math.
            gates = gx_ref[t] + jnp.dot(h_prev.astype(jnp.bfloat16), _w_hh,
                                        preferred_element_type=jnp.float32)
            # PyTorch gate order [i | f | g | o]; Hp % 128 == 0 => aligned slices.
            # sigmoid(x) == 0.5*(tanh(x/2)+1): one EUP push per gate instead of two.
            i_g = 0.5 * (jnp.tanh(0.5 * gates[:, 0 * hp:1 * hp]) + 1.0)
            f_g = 0.5 * (jnp.tanh(0.5 * gates[:, 1 * hp:2 * hp]) + 1.0)
            g_g = jnp.tanh(gates[:, 2 * hp:3 * hp])
            o_g = 0.5 * (jnp.tanh(0.5 * gates[:, 3 * hp:4 * hp]) + 1.0)
            c_new = f_g * c_prev + i_g * g_g            # f32 state math
            h_new = o_g * jnp.tanh(c_new)
            if not _last:
                # hand the hidden sequence to the next layer through bf16 VMEM
                seq_ref[t] = h_new.astype(jnp.bfloat16)
            return (h_new, c_new)

        init = (jnp.zeros((bp, hp), jnp.float32),       # h0
                jnp.zeros((bp, hp), jnp.float32))       # c0
        h_last, _ = lax.fori_loop(0, seq_len, step, init, unroll=True)

    # FC head on the last timestep of the last layer (== out[:, -1, :] in PyTorch).
    out_ref[...] = (
        jnp.dot(h_last.astype(jnp.bfloat16), wfc_ref[...],
                preferred_element_type=jnp.float32)
        + bfc_ref[...]
    )


# ----------------------------------------------------------------------------
# Wrapper
# ----------------------------------------------------------------------------
def build_forward(packed):
    d = packed["dims"]
    B, O = d["B"], d["O"]
    Bp, Fp, Hp, Op, L = d["Bp"], d["Fp"], d["Hp"], d["Op"], d["L"]

    def fwd(x, wih, whh, b, wfc, bfc):
        T = x.shape[1]
        # pad batch->Bp, features->Fp, go time-major, cast MXU operand to bf16
        x_p = jnp.pad(x, ((0, Bp - x.shape[0]), (0, 0), (0, Fp - x.shape[2])))
        x_tm = jnp.transpose(x_p, (1, 0, 2)).astype(jnp.bfloat16)   # (T, Bp, Fp)

        kernel = functools.partial(fused_lstm_fc_kernel,
                                   num_layers=L, seq_len=T, hp=Hp, fp=Fp)
        out_p = pl.pallas_call(
            kernel,
            out_shape=jax.ShapeDtypeStruct((Bp, Op), jnp.float32),
            in_specs=[
                pl.BlockSpec((T, Bp, Fp), lambda: (0, 0, 0)),
                pl.BlockSpec((L, Fp, 4 * Hp), lambda: (0, 0, 0)),
                pl.BlockSpec((L, Hp, 4 * Hp), lambda: (0, 0, 0)),
                pl.BlockSpec((L, 1, 4 * Hp), lambda: (0, 0, 0)),
                pl.BlockSpec((Hp, Op), lambda: (0, 0)),
                pl.BlockSpec((1, Op), lambda: (0, 0)),
            ],
            out_specs=pl.BlockSpec((Bp, Op), lambda: (0, 0)),
            scratch_shapes=[
                pltpu.VMEM((T, Bp, Hp), jnp.bfloat16),      # inter-layer hidden seq
                pltpu.VMEM((T, Bp, 4 * Hp), jnp.float32),   # hoisted input projection
            ],
            compiler_params=pltpu.CompilerParams(
                vmem_limit_bytes=32 * 1024 * 1024),
        )(x_tm, wih, whh, b, wfc, bfc)
        return out_p[:B, :O]

    fwd_jit = jax.jit(fwd)
    return lambda x: fwd_jit(x, packed["w_ih"], packed["w_hh"], packed["b"],
                             packed["w_fc"], packed["b_fc"])


# ----------------------------------------------------------------------------
# Parameter init (PyTorch default U(-1/sqrt(H), 1/sqrt(H))) and packing
# ----------------------------------------------------------------------------
def init_raw_params(key, input_features, hidden_features, num_layers,
                    output_features):
    """Raw parameters in PyTorch layout (w_ih: (4H, D_in), w_hh: (4H, H))."""
    H = hidden_features
    k = 1.0 / np.sqrt(H)
    layers = []
    for layer in range(num_layers):
        d_in = input_features if layer == 0 else H
        key, k1, k2, k3, k4 = jax.random.split(key, 5)
        layers.append((
            jax.random.uniform(k1, (4 * H, d_in), jnp.float32, -k, k),   # w_ih
            jax.random.uniform(k2, (4 * H, H), jnp.float32, -k, k),      # w_hh
            jax.random.uniform(k3, (4 * H,), jnp.float32, -k, k),        # b_ih
            jax.random.uniform(k4, (4 * H,), jnp.float32, -k, k),        # b_hh
        ))
    key, k5, k6 = jax.random.split(key, 3)
    w_fc = jax.random.uniform(k5, (output_features, H), jnp.float32, -k, k)
    b_fc = jax.random.uniform(k6, (output_features,), jnp.float32, -k, k)
    return {"layers": layers, "w_fc": w_fc, "b_fc": b_fc}


def pack_params(raw, *, batch, input_features, hidden_features, output_features):
    """One-time host-side packing: pad to TPU-friendly tiles, keep W_ih^T and
    W_hh^T as SEPARATE per-layer blocks with each gate in its own lane-aligned
    Hp block, combine biases (b_ih + b_hh), cast MXU operands to bf16."""
    B, D, H, O = batch, input_features, hidden_features, output_features
    L = len(raw["layers"])
    Bp = _round_up(max(B, 8), 8)       # sublane multiple
    Hp = _round_up(H, 128)             # lane multiple -> aligned gate slices
    Dp = _round_up(D, 128)
    Fp = max(Dp, Hp)                   # layer-0 input-feature width
    Op = _round_up(O, 128)             # lane-dense output store

    wih = np.zeros((L, Fp, 4 * Hp), np.float32)
    whh = np.zeros((L, Hp, 4 * Hp), np.float32)
    b = np.zeros((L, 1, 4 * Hp), np.float32)
    for l, (w_ih, w_hh, b_ih, b_hh) in enumerate(raw["layers"]):
        w_ih = np.asarray(w_ih)
        w_hh = np.asarray(w_hh)
        bias = np.asarray(b_ih) + np.asarray(b_hh)
        d_in = w_ih.shape[1]
        for g in range(4):             # PyTorch gate order i, f, g, o
            wih[l, :d_in, g * Hp:g * Hp + H] = w_ih[g * H:(g + 1) * H, :].T
            whh[l, :H, g * Hp:g * Hp + H] = w_hh[g * H:(g + 1) * H, :].T
            b[l, 0, g * Hp:g * Hp + H] = bias[g * H:(g + 1) * H]

    wfc_p = np.zeros((Hp, Op), np.float32)
    wfc_p[:H, :O] = np.asarray(raw["w_fc"]).T
    bfc_p = np.zeros((1, Op), np.float32)
    bfc_p[0, :O] = np.asarray(raw["b_fc"])

    return {
        "w_ih": jnp.asarray(wih, dtype=jnp.bfloat16),    # bf16 MXU operands
        "w_hh": jnp.asarray(whh, dtype=jnp.bfloat16),
        "b": jnp.asarray(b, dtype=jnp.float32),
        "w_fc": jnp.asarray(wfc_p, dtype=jnp.bfloat16),
        "b_fc": jnp.asarray(bfc_p, dtype=jnp.float32),
        "dims": {"B": B, "D": D, "H": H, "O": O, "L": L,
                 "Bp": Bp, "Fp": Fp, "Hp": Hp, "Op": Op},
    }


# ----------------------------------------------------------------------------
# Pure-JAX reference (same precision recipe: bf16 matmul operands, f32 state)
# ----------------------------------------------------------------------------
def reference_forward(x_btd, raw):
    x = jnp.transpose(x_btd, (1, 0, 2)).astype(jnp.float32)     # (T, B, D)
    for (w_ih, w_hh, b_ih, b_hh) in raw["layers"]:
        H = w_hh.shape[1]
        wih_t = w_ih.T.astype(jnp.bfloat16)
        whh_t = w_hh.T.astype(jnp.bfloat16)
        bias = (b_ih + b_hh)[None, :]
        T, B, _ = x.shape
        h = jnp.zeros((B, H), jnp.float32)
        c = jnp.zeros((B, H), jnp.float32)
        outs = []
        for t in range(T):
            gates = (jnp.dot(x[t].astype(jnp.bfloat16), wih_t,
                             preferred_element_type=jnp.float32)
                     + jnp.dot(h.astype(jnp.bfloat16), whh_t,
                               preferred_element_type=jnp.float32)
                     + bias)
            i_g = jax.nn.sigmoid(gates[:, 0 * H:1 * H])
            f_g = jax.nn.sigmoid(gates[:, 1 * H:2 * H])
            g_g = jnp.tanh(gates[:, 2 * H:3 * H])
            o_g = jax.nn.sigmoid(gates[:, 3 * H:4 * H])
            c = f_g * c + i_g * g_g
            h = o_g * jnp.tanh(c)
            outs.append(h)
        x = jnp.stack(outs, axis=0)
    h_last = x[-1]
    return (jnp.dot(h_last.astype(jnp.bfloat16),
                    raw["w_fc"].T.astype(jnp.bfloat16),
                    preferred_element_type=jnp.float32)
            + raw["b_fc"][None, :])


# ----------------------------------------------------------------------------
if __name__ == "__main__":
    B, T = 2, 8
    input_features, hidden_features, num_layers, output_features = 16, 32, 2, 8

    key = jax.random.PRNGKey(0)
    key, kx, kp = jax.random.split(key, 3)
    x = jax.random.normal(kx, (B, T, input_features), jnp.float32)

    raw = init_raw_params(kp, input_features, hidden_features, num_layers,
                          output_features)
    packed = pack_params(raw, batch=B, input_features=input_features,
                         hidden_features=hidden_features,
                         output_features=output_features)
    forward = build_forward(packed)

    out = jax.block_until_ready(forward(x))
    assert out.shape == (B, output_features)

    ref = reference_forward(x, raw)
    np.testing.assert_allclose(np.asarray(out), np.asarray(ref),
                               rtol=5e-3, atol=5e-3)

    print("KERNEL_OK")
</pallas_src>

<mosaic_0001>
module attributes {stable_mosaic.version = 11 : i64} {
  func.func @fused_lstm_fc_kernel(%arg0: memref<8x8x128xbf16, #tpu.memory_space<vmem>>, %arg1: memref<2x128x512xbf16, #tpu.memory_space<vmem>>, %arg2: memref<2x128x512xbf16, #tpu.memory_space<vmem>>, %arg3: memref<2x1x512xf32, #tpu.memory_space<vmem>>, %arg4: memref<128x128xbf16, #tpu.memory_space<vmem>>, %arg5: memref<1x128xf32, #tpu.memory_space<vmem>>, %arg6: memref<8x128xf32, #tpu.memory_space<vmem>>, %arg7: memref<8x8x128xbf16, #tpu.memory_space<vmem>>, %arg8: memref<8x8x512xf32, #tpu.memory_space<vmem>>) attributes {dimension_semantics = [], scalar_prefetch = 0 : i64, scratch_operands = 2 : i64, tpu.core_type = #tpu.core_type<tc>} {
    %c0 = arith.constant 0 : index
    %c0_0 = arith.constant 0 : index
    %c0_1 = arith.constant 0 : index
    %0 = vector.load %arg0[%c0, %c0_0, %c0_1] : memref<8x8x128xbf16, #tpu.memory_space<vmem>>, vector<8x8x128xbf16>
    %1 = vector.shape_cast %0 : vector<8x8x128xbf16> to vector<64x128xbf16>
    %c0_2 = arith.constant 0 : index
    %c0_3 = arith.constant 0 : index
    %c0_4 = arith.constant 0 : index
    %2 = vector.load %arg1[%c0_2, %c0_3, %c0_4] : memref<2x128x512xbf16, #tpu.memory_space<vmem>>, vector<1x128x512xbf16>
    %3 = vector.shape_cast %2 : vector<1x128x512xbf16> to vector<128x512xbf16>
    %cst = arith.constant dense<0.000000e+00> : vector<64x512xf32>
    %4 = tpu.matmul %1, %3, %cst {dimension_numbers = #tpu.dot_dimension_numbers<[1], [0], [0], [1], [0, 0, 1, 1], [], []>} : vector<64x128xbf16>, vector<128x512xbf16>, vector<64x512xf32> -> vector<64x512xf32>
    %c0_5 = arith.constant 0 : index
    %c0_6 = arith.constant 0 : index
    %c0_7 = arith.constant 0 : index
    %5 = vector.load %arg3[%c0_5, %c0_6, %c0_7] : memref<2x1x512xf32, #tpu.memory_space<vmem>>, vector<1x1x512xf32>
    %6 = vector.shape_cast %5 : vector<1x1x512xf32> to vector<1x512xf32>
    %7 = vector.broadcast %6 : vector<1x512xf32> to vector<64x512xf32>
    %8 = arith.addf %4, %7 : vector<64x512xf32>
    %9 = vector.shape_cast %8 : vector<64x512xf32> to vector<8x8x512xf32>
    %c0_8 = arith.constant 0 : index
    %c0_9 = arith.constant 0 : index
    %c0_10 = arith.constant 0 : index
    %10 = vector.load %arg8[%c0_8, %c0_9, %c0_10] : memref<8x8x512xf32, #tpu.memory_space<vmem>>, vector<8x8x512xf32>
    tpu.vector_store %arg8[%c0_8, %c0_9, %c0_10], %9 {strides = array<i32>} : memref<8x8x512xf32, #tpu.memory_space<vmem>>, vector<8x8x512xf32>,
    %c0_11 = arith.constant 0 : index
    %c0_12 = arith.constant 0 : index
    %c0_13 = arith.constant 0 : index
    %11 = vector.load %arg2[%c0_11, %c0_12, %c0_13] : memref<2x128x512xbf16, #tpu.memory_space<vmem>>, vector<1x128x512xbf16>
    %12 = vector.shape_cast %11 : vector<1x128x512xbf16> to vector<128x512xbf16>
    %cst_14 = arith.constant 0.000000e+00 : f32
    %13 = vector.broadcast %cst_14 : f32 to vector<8x128xf32>
    %cst_15 = arith.constant 0.000000e+00 : f32
    %14 = vector.broadcast %cst_15 : f32 to vector<8x128xf32>
    %c0_i32 = arith.constant 0 : i32
    %15 = arith.index_cast %c0_i32 : i32 to index
    %c0_16 = arith.constant 0 : index
    %c0_17 = arith.constant 0 : index
    %16 = vector.load %arg8[%15, %c0_16, %c0_17] : memref<8x8x512xf32, #tpu.memory_space<vmem>>, vector<1x8x512xf32>
    %17 = vector.shape_cast %16 : vector<1x8x512xf32> to vector<8x512xf32>
    %18 = arith.truncf %13 : vector<8x128xf32> to vector<8x128xbf16>
    %cst_18 = arith.constant dense<0.000000e+00> : vector<8x512xf32>
    %19 = tpu.matmul %18, %12, %cst_18 {dimension_numbers = #tpu.dot_dimension_numbers<[1], [0], [0], [1], [0, 0, 1, 1], [], []>} : vector<8x128xbf16>, vector<128x512xbf16>, vector<8x512xf32> -> vector<8x512xf32>
    %20 = arith.addf %17, %19 : vector<8x512xf32>
    %21 = vector.extract_strided_slice %20 {offsets = [0, 0], sizes = [8, 128], strides = [1, 1]} : vector<8x512xf32> to vector<8x128xf32>
    %cst_19 = arith.constant 5.000000e-01 : f32
    %22 = vector.broadcast %cst_19 : f32 to vector<8x128xf32>
    %23 = arith.mulf %22, %21 : vector<8x128xf32>
    %24 = math.tanh %23 : vector<8x128xf32>
    %cst_20 = arith.constant 1.000000e+00 : f32
    %25 = vector.broadcast %cst_20 : f32 to vector<8x128xf32>
    %26 = arith.addf %24, %25 : vector<8x128xf32>
    %cst_21 = arith.constant 5.000000e-01 : f32
    %27 = vector.broadcast %cst_21 : f32 to vector<8x128xf32>
    %28 = arith.mulf %27, %26 : vector<8x128xf32>
    %29 = vector.extract_strided_slice %20 {offsets = [0, 128], sizes = [8, 128], strides = [1, 1]} : vector<8x512xf32> to vector<8x128xf32>
    %cst_22 = arith.constant 5.000000e-01 : f32
    %30 = vector.broadcast %cst_22 : f32 to vector<8x128xf32>
    %31 = arith.mulf %30, %29 : vector<8x128xf32>
    %32 = math.tanh %31 : vector<8x128xf32>
    %cst_23 = arith.constant 1.000000e+00 : f32
    %33 = vector.broadcast %cst_23 : f32 to vector<8x128xf32>
    %34 = arith.addf %32, %33 : vector<8x128xf32>
    %cst_24 = arith.constant 5.000000e-01 : f32
    %35 = vector.broadcast %cst_24 : f32 to vector<8x128xf32>
    %36 = arith.mulf %35, %34 : vector<8x128xf32>
    %37 = vector.extract_strided_slice %20 {offsets = [0, 256], sizes = [8, 128], strides = [1, 1]} : vector<8x512xf32> to vector<8x128xf32>
    %38 = math.tanh %37 : vector<8x128xf32>
    %39 = vector.extract_strided_slice %20 {offsets = [0, 384], sizes = [8, 128], strides = [1, 1]} : vector<8x512xf32> to vector<8x128xf32>
    %cst_25 = arith.constant 5.000000e-01 : f32
    %40 = vector.broadcast %cst_25 : f32 to vector<8x128xf32>
    %41 = arith.mulf %40, %39 : vector<8x128xf32>
    %42 = math.tanh %41 : vector<8x128xf32>
    %cst_26 = arith.constant 1.000000e+00 : f32
    %43 = vector.broadcast %cst_26 : f32 to vector<8x128xf32>
    %44 = arith.addf %42, %43 : vector<8x128xf32>
    %cst_27 = arith.constant 5.000000e-01 : f32
    %45 = vector.broadcast %cst_27 : f32 to vector<8x128xf32>
    %46 = arith.mulf %45, %44 : vector<8x128xf32>
    %47 = arith.mulf %36, %14 : vector<8x128xf32>
    %48 = arith.mulf %28, %38 : vector<8x128xf32>
    %49 = arith.addf %47, %48 : vector<8x128xf32>
    %50 = math.tanh %49 : vector<8x128xf32>
    %51 = arith.mulf %46, %50 : vector<8x128xf32>
    %52 = arith.truncf %51 : vector<8x128xf32> to vector<8x128xbf16>
    %53 = arith.index_cast %c0_i32 : i32 to index
    %c0_28 = arith.constant 0 : index
    %c0_29 = arith.constant 0 : index
    %54 = vector.load %arg7[%53, %c0_28, %c0_29] : memref<8x8x128xbf16, #tpu.memory_space<vmem>>, vector<1x8x128xbf16>
    %55 = vector.shape_cast %54 : vector<1x8x128xbf16> to vector<8x128xbf16>
    %56 = vector.shape_cast %52 : vector<8x128xbf16> to vector<1x8x128xbf16>
    tpu.vector_store %arg7[%53, %c0_28, %c0_29], %56 {strides = array<i32>} : memref<8x8x128xbf16, #tpu.memory_space<vmem>>, vector<1x8x128xbf16>,
    %c1_i32 = arith.constant 1 : i32
    %57 = arith.index_cast %c1_i32 : i32 to index
    %c0_30 = arith.constant 0 : index
    %c0_31 = arith.constant 0 : index
    %58 = vector.load %arg8[%57, %c0_30, %c0_31] : memref<8x8x512xf32, #tpu.memory_space<vmem>>, vector<1x8x512xf32>
    %59 = vector.shape_cast %58 : vector<1x8x512xf32> to vector<8x512xf32>
    %60 = arith.truncf %51 : vector<8x128xf32> to vector<8x128xbf16>
    %cst_32 = arith.constant dense<0.000000e+00> : vector<8x512xf32>
    %61 = tpu.matmul %60, %12, %cst_32 {dimension_numbers = #tpu.dot_dimension_numbers<[1], [0], [0], [1], [0, 0, 1, 1], [], []>} : vector<8x128xbf16>, vector<128x512xbf16>, vector<8x512xf32> -> vector<8x512xf32>
    %62 = arith.addf %59, %61 : vector<8x512xf32>
    %63 = vector.extract_strided_slice %62 {offsets = [0, 0], sizes = [8, 128], strides = [1, 1]} : vector<8x512xf32> to vector<8x128xf32>
    %cst_33 = arith.constant 5.000000e-01 : f32
    %64 = vector.broadcast %cst_33 : f32 to vector<8x128xf32>
    %65 = arith.mulf %64, %63 : vector<8x128xf32>
    %66 = math.tanh %65 : vector<8x128xf32>
    %cst_34 = arith.constant 1.000000e+00 : f32
    %67 = vector.broadcast %cst_34 : f32 to vector<8x128xf32>
    %68 = arith.addf %66, %67 : vector<8x128xf32>
    %cst_35 = arith.constant 5.000000e-01 : f32
    %69 = vector.broadcast %cst_35 : f32 to vector<8x128xf32>
    %70 = arith.mulf %69, %68 : vector<8x128xf32>
    %71 = vector.extract_strided_slice %62 {offsets = [0, 128], sizes = [8, 128], strides = [1, 1]} : vector<8x512xf32> to vector<8x128xf32>
    %cst_36 = arith.constant 5.000000e-01 : f32
    %72 = vector.broadcast %cst_36 : f32 to vector<8x128xf32>
    %73 = arith.mulf %72, %71 : vector<8x128xf32>
    %74 = math.tanh %73 : vector<8x128xf32>
    %cst_37 = arith.constant 1.000000e+00 : f32
    %75 = vector.broadcast %cst_37 : f32 to vector<8x128xf32>
    %76 = arith.addf %74, %75 : vector<8x128xf32>
    %cst_38 = arith.constant 5.000000e-01 : f32
    %77 = vector.broadcast %cst_38 : f32 to vector<8x128xf32>
    %78 = arith.mulf %77, %76 : vector<8x128xf32>
    %79 = vector.extract_strided_slice %62 {offsets = [0, 256], sizes = [8, 128], strides = [1, 1]} : vector<8x512xf32> to vector<8x128xf32>
    %80 = math.tanh %79 : vector<8x128xf32>
    %81 = vector.extract_strided_slice %62 {offsets = [0, 384], sizes = [8, 128], strides = [1, 1]} : vector<8x512xf32> to vector<8x128xf32>
    %cst_39 = arith.constant 5.000000e-01 : f32
    %82 = vector.broadcast %cst_39 : f32 to vector<8x128xf32>
    %83 = arith.mulf %82, %81 : vector<8x128xf32>
    %84 = math.tanh %83 : vector<8x128xf32>
    %cst_40 = arith.constant 1.000000e+00 : f32
    %85 = vector.broadcast %cst_40 : f32 to vector<8x128xf32>
    %86 = arith.addf %84, %85 : vector<8x128xf32>
    %cst_41 = arith.constant 5.000000e-01 : f32
    %87 = vector.broadcast %cst_41 : f32 to vector<8x128xf32>
    %88 = arith.mulf %87, %86 : vector<8x128xf32>
    %89 = arith.mulf %78, %49 : vector<8x128xf32>
    %90 = arith.mulf %70, %80 : vector<8x128xf32>
    %91 = arith.addf %89, %90 : vector<8x128xf32>
    %92 = math.tanh %91 : vector<8x128xf32>
    %93 = arith.mulf %88, %92 : vector<8x128xf32>
    %94 = arith.truncf %93 : vector<8x128xf32> to vector<8x128xbf16>
    %95 = arith.index_cast %c1_i32 : i32 to index
    %c0_42 = arith.constant 0 : index
    %c0_43 = arith.constant 0 : index
    %96 = vector.load %arg7[%95, %c0_42, %c0_43] : memref<8x8x128xbf16, #tpu.memory_space<vmem>>, vector<1x8x128xbf16>
    %97 = vector.shape_cast %96 : vector<1x8x128xbf16> to vector<8x128xbf16>
    %98 = vector.shape_cast %94 : vector<8x128xbf16> to vector<1x8x128xbf16>
    tpu.vector_store %arg7[%95, %c0_42, %c0_43], %98 {strides = array<i32>} : memref<8x8x128xbf16, #tpu.memory_space<vmem>>, vector<1x8x128xbf16>,
    %c2_i32 = arith.constant 2 : i32
    %99 = arith.index_cast %c2_i32 : i32 to index
    %c0_44 = arith.constant 0 : index
    %c0_45 = arith.constant 0 : index
    %100 = vector.load %arg8[%99, %c0_44, %c0_45] : memref<8x8x512xf32, #tpu.memory_space<vmem>>, vector<1x8x512xf32>
    %101 = vector.shape_cast %100 : vector<1x8x512xf32> to vector<8x512xf32>
    %102 = arith.truncf %93 : vector<8x128xf32> to vector<8x128xbf16>
    %cst_46 = arith.constant dense<0.000000e+00> : vector<8x512xf32>
    %103 = tpu.matmul %102, %12, %cst_46 {dimension_numbers = #tpu.dot_dimension_numbers<[1], [0], [0], [1], [0, 0, 1, 1], [], []>} : vector<8x128xbf16>, vector<128x512xbf16>, vector<8x512xf32> -> vector<8x512xf32>
    %104 = arith.addf %101, %103 : vector<8x512xf32>
    %105 = vector.extract_strided_slice %104 {offsets = [0, 0], sizes = [8, 128], strides = [1, 1]} : vector<8x512xf32> to vector<8x128xf32>
    %cst_47 = arith.constant 5.000000e-01 : f32
    %106 = vector.broadcast %cst_47 : f32 to vector<8x128xf32>
    %107 = arith.mulf %106, %105 : vector<8x128xf32>
    %108 = math.tanh %107 : vector<8x128xf32>
    %cst_48 = arith.constant 1.000000e+00 : f32
    %109 = vector.broadcast %cst_48 : f32 to vector<8x128xf32>
    %110 = arith.addf %108, %109 : vector<8x128xf32>
    %cst_49 = arith.constant 5.000000e-01 : f32
    %111 = vector.broadcast %cst_49 : f32 to vector<8x128xf32>
    %112 = arith.mulf %111, %110 : vector<8x128xf32>
    %113 = vector.extract_strided_slice %104 {offsets = [0, 128], sizes = [8, 128], strides = [1, 1]} : vector<8x512xf32> to vector<8x128xf32>
    %cst_50 = arith.constant 5.000000e-01 : f32
    %114 = vector.broadcast %cst_50 : f32 to vector<8x128xf32>
    %115 = arith.mulf %114, %113 : vector<8x128xf32>
    %116 = math.tanh %115 : vector<8x128xf32>
    %cst_51 = arith.constant 1.000000e+00 : f32
    %117 = vector.broadcast %cst_51 : f32 to vector<8x128xf32>
    %118 = arith.addf %116, %117 : vector<8x128xf32>
    %cst_52 = arith.constant 5.000000e-01 : f32
    %119 = vector.broadcast %cst_52 : f32 to vector<8x128xf32>
    %120 = arith.mulf %119, %118 : vector<8x128xf32>
    %121 = vector.extract_strided_slice %104 {offsets = [0, 256], sizes = [8, 128], strides = [1, 1]} : vector<8x512xf32> to vector<8x128xf32>
    %122 = math.tanh %121 : vector<8x128xf32>
    %123 = vector.extract_strided_slice %104 {offsets = [0, 384], sizes = [8, 128], strides = [1, 1]} : vector<8x512xf32> to vector<8x128xf32>
    %cst_53 = arith.constant 5.000000e-01 : f32
    %124 = vector.broadcast %cst_53 : f32 to vector<8x128xf32>
    %125 = arith.mulf %124, %123 : vector<8x128xf32>
    %126 = math.tanh %125 : vector<8x128xf32>
    %cst_54 = arith.constant 1.000000e+00 : f32
    %127 = vector.broadcast %cst_54 : f32 to vector<8x128xf32>
    %128 = arith.addf %126, %127 : vector<8x128xf32>
    %cst_55 = arith.constant 5.000000e-01 : f32
    %129 = vector.broadcast %cst_55 : f32 to vector<8x128xf32>
    %130 = arith.mulf %129, %128 : vector<8x128xf32>
    %131 = arith.mulf %120, %91 : vector<8x128xf32>
    %132 = arith.mulf %112, %122 : vector<8x128xf32>
    %133 = arith.addf %131, %132 : vector<8x128xf32>
    %134 = math.tanh %133 : vector<8x128xf32>
    %135 = arith.mulf %130, %134 : vector<8x128xf32>
    %136 = arith.truncf %135 : vector<8x128xf32> to vector<8x128xbf16>
    %137 = arith.index_cast %c2_i32 : i32 to index
    %c0_56 = arith.constant 0 : index
    %c0_57 = arith.constant 0 : index
    %138 = vector.load %arg7[%137, %c0_56, %c0_57] : memref<8x8x128xbf16, #tpu.memory_space<vmem>>, vector<1x8x128xbf16>
    %139 = vector.shape_cast %138 : vector<1x8x128xbf16> to vector<8x128xbf16>
    %140 = vector.shape_cast %136 : vector<8x128xbf16> to vector<1x8x128xbf16>
    tpu.vector_store %arg7[%137, %c0_56, %c0_57], %140 {strides = array<i32>} : memref<8x8x128xbf16, #tpu.memory_space<vmem>>, vector<1x8x128xbf16>,
    %c3_i32 = arith.constant 3 : i32
    %141 = arith.index_cast %c3_i32 : i32 to index
    %c0_58 = arith.constant 0 : index
    %c0_59 = arith.constant 0 : index
    %142 = vector.load %arg8[%141, %c0_58, %c0_59] : memref<8x8x512xf32, #tpu.memory_space<vmem>>, vector<1x8x512xf32>
    %143 = vector.shape_cast %142 : vector<1x8x512xf32> to vector<8x512xf32>
    %144 = arith.truncf %135 : vector<8x128xf32> to vector<8x128xbf16>
    %cst_60 = arith.constant dense<0.000000e+00> : vector<8x512xf32>
    %145 = tpu.matmul %144, %12, %cst_60 {dimension_numbers = #tpu.dot_dimension_numbers<[1], [0], [0], [1], [0, 0, 1, 1], [], []>} : vector<8x128xbf16>, vector<128x512xbf16>, vector<8x512xf32> -> vector<8x512xf32>
    %146 = arith.addf %143, %145 : vector<8x512xf32>
    %147 = vector.extract_strided_slice %146 {offsets = [0, 0], sizes = [8, 128], strides = [1, 1]} : vector<8x512xf32> to vector<8x128xf32>
    %cst_61 = arith.constant 5.000000e-01 : f32
    %148 = vector.broadcast %cst_61 : f32 to vector<8x128xf32>
    %149 = arith.mulf %148, %147 : vector<8x128xf32>
    %150 = math.tanh %149 : vector<8x128xf32>
    %cst_62 = arith.constant 1.000000e+00 : f32
    %151 = vector.broadcast %cst_62 : f32 to vector<8x128xf32>
    %152 = arith.addf %150, %151 : vector<8x128xf32>
    %cst_63 = arith.constant 5.000000e-01 : f32
    %153 = vector.broadcast %cst_63 : f32 to vector<8x128xf32>
    %154 = arith.mulf %153, %152 : vector<8x128xf32>
    %155 = vector.extract_strided_slice %146 {offsets = [0, 128], sizes = [8, 128], strides = [1, 1]} : vector<8x512xf32> to vector<8x128xf32>
    %cst_64 = arith.constant 5.000000e-01 : f32
    %156 = vector.broadcast %cst_64 : f32 to vector<8x128xf32>
    %157 = arith.mulf %156, %155 : vector<8x128xf32>
    %158 = math.tanh %157 : vector<8x128xf32>
    %cst_65 = arith.constant 1.000000e+00 : f32
    %159 = vector.broadcast %cst_65 : f32 to vector<8x128xf32>
    %160 = arith.addf %158, %159 : vector<8x128xf32>
    %cst_66 = arith.constant 5.000000e-01 : f32
    %161 = vector.broadcast %cst_66 : f32 to vector<8x128xf32>
    %162 = arith.mulf %161, %160 : vector<8x128xf32>
    %163 = vector.extract_strided_slice %146 {offsets = [0, 256], sizes = [8, 128], strides = [1, 1]} : vector<8x512xf32> to vector<8x128xf32>
    %164 = math.tanh %163 : vector<8x128xf32>
    %165 = vector.extract_strided_slice %146 {offsets = [0, 384], sizes = [8, 128], strides = [1, 1]} : vector<8x512xf32> to vector<8x128xf32>
    %cst_67 = arith.constant 5.000000e-01 : f32
    %166 = vector.broadcast %cst_67 : f32 to vector<8x128xf32>
    %167 = arith.mulf %166, %165 : vector<8x128xf32>
    %168 = math.tanh %167 : vector<8x128xf32>
    %cst_68 = arith.constant 1.000000e+00 : f32
    %169 = vector.broadcast %cst_68 : f32 to vector<8x128xf32>
    %170 = arith.addf %168, %169 : vector<8x128xf32>
    %cst_69 = arith.constant 5.000000e-01 : f32
    %171 = vector.broadcast %cst_69 : f32 to vector<8x128xf32>
    %172 = arith.mulf %171, %170 : vector<8x128xf32>
    %173 = arith.mulf %162, %133 : vector<8x128xf32>
    %174 = arith.mulf %154, %164 : vector<8x128xf32>
    %175 = arith.addf %173, %174 : vector<8x128xf32>
    %176 = math.tanh %175 : vector<8x128xf32>
    %177 = arith.mulf %172, %176 : vector<8x128xf32>
    %178 = arith.truncf %177 : vector<8x128xf32> to vector<8x128xbf16>
    %179 = arith.index_cast %c3_i32 : i32 to index
    %c0_70 = arith.constant 0 : index
    %c0_71 = arith.constant 0 : index
    %180 = vector.load %arg7[%179, %c0_70, %c0_71] : memref<8x8x128xbf16, #tpu.memory_space<vmem>>, vector<1x8x128xbf16>
    %181 = vector.shape_cast %180 : vector<1x8x128xbf16> to vector<8x128xbf16>
    %182 = vector.shape_cast %178 : vector<8x128xbf16> to vector<1x8x128xbf16>
    tpu.vector_store %arg7[%179, %c0_70, %c0_71], %182 {strides = array<i32>} : memref<8x8x128xbf16, #tpu.memory_space<vmem>>, vector<1x8x128xbf16>,
    %c4_i32 = arith.constant 4 : i32
    %183 = arith.index_cast %c4_i32 : i32 to index
    %c0_72 = arith.constant 0 : index
    %c0_73 = arith.constant 0 : index
    %184 = vector.load %arg8[%183, %c0_72, %c0_73] : memref<8x8x512xf32, #tpu.memory_space<vmem>>, vector<1x8x512xf32>
    %185 = vector.shape_cast %184 : vector<1x8x512xf32> to vector<8x512xf32>
    %186 = arith.truncf %177 : vector<8x128xf32> to vector<8x128xbf16>
    %cst_74 = arith.constant dense<0.000000e+00> : vector<8x512xf32>
    %187 = tpu.matmul %186, %12, %cst_74 {dimension_numbers = #tpu.dot_dimension_numbers<[1], [0], [0], [1], [0, 0, 1, 1], [], []>} : vector<8x128xbf16>, vector<128x512xbf16>, vector<8x512xf32> -> vector<8x512xf32>
    %188 = arith.addf %185, %187 : vector<8x512xf32>
    %189 = vector.extract_strided_slice %188 {offsets = [0, 0], sizes = [8, 128], strides = [1, 1]} : vector<8x512xf32> to vector<8x128xf32>
    %cst_75 = arith.constant 5.000000e-01 : f32
    %190 = vector.broadcast %cst_75 : f32 to vector<8x128xf32>
    %191 = arith.mulf %190, %189 : vector<8x128xf32>
    %192 = math.tanh %191 : vector<8x128xf32>
    %cst_76 = arith.constant 1.000000e+00 : f32
    %193 = vector.broadcast %cst_76 : f32 to vector<8x128xf32>
    %194 = arith.addf %192, %193 : vector<8x128xf32>
    %cst_77 = arith.constant 5.000000e-01 : f32
    %195 = vector.broadcast %cst_77 : f32 to vector<8x128xf32>
    %196 = arith.mulf %195, %194 : vector<8x128xf32>
    %197 = vector.extract_strided_slice %188 {offsets = [0, 128], sizes = [8, 128], strides = [1, 1]} : vector<8x512xf32> to vector<8x128xf32>
    %cst_78 = arith.constant 5.000000e-01 : f32
    %198 = vector.broadcast %cst_78 : f32 to vector<8x128xf32>
    %199 = arith.mulf %198, %197 : vector<8x128xf32>
    %200 = math.tanh %199 : vector<8x128xf32>
    %cst_79 = arith.constant 1.000000e+00 : f32
    %201 = vector.broadcast %cst_79 : f32 to vector<8x128xf32>
    %202 = arith.addf %200, %201 : vector<8x128xf32>
    %cst_80 = arith.constant 5.000000e-01 : f32
    %203 = vector.broadcast %cst_80 : f32 to vector<8x128xf32>
    %204 = arith.mulf %203, %202 : vector<8x128xf32>
    %205 = vector.extract_strided_slice %188 {offsets = [0, 256], sizes = [8, 128], strides = [1, 1]} : vector<8x512xf32> to vector<8x128xf32>
    %206 = math.tanh %205 : vector<8x128xf32>
    %207 = vector.extract_strided_slice %188 {offsets = [0, 384], sizes = [8, 128], strides = [1, 1]} : vector<8x512xf32> to vector<8x128xf32>
    %cst_81 = arith.constant 5.000000e-01 : f32
    %208 = vector.broadcast %cst_81 : f32 to vector<8x128xf32>
    %209 = arith.mulf %208, %207 : vector<8x128xf32>
    %210 = math.tanh %209 : vector<8x128xf32>
    %cst_82 = arith.constant 1.000000e+00 : f32
    %211 = vector.broadcast %cst_82 : f32 to vector<8x128xf32>
    %212 = arith.addf %210, %211 : vector<8x128xf32>
    %cst_83 = arith.constant 5.000000e-01 : f32
    %213 = vector.broadcast %cst_83 : f32 to vector<8x128xf32>
    %214 = arith.mulf %213, %212 : vector<8x128xf32>
    %215 = arith.mulf %204, %175 : vector<8x128xf32>
    %216 = arith.mulf %196, %206 : vector<8x128xf32>
    %217 = arith.addf %215, %216 : vector<8x128xf32>
    %218 = math.tanh %217 : vector<8x128xf32>
    %219 = arith.mulf %214, %218 : vector<8x128xf32>
    %220 = arith.truncf %219 : vector<8x128xf32> to vector<8x128xbf16>
    %221 = arith.index_cast %c4_i32 : i32 to index
    %c0_84 = arith.constant 0 : index
    %c0_85 = arith.constant 0 : index
    %222 = vector.load %arg7[%221, %c0_84, %c0_85] : memref<8x8x128xbf16, #tpu.memory_space<vmem>>, vector<1x8x128xbf16>
    %223 = vector.shape_cast %222 : vector<1x8x128xbf16> to vector<8x128xbf16>
    %224 = vector.shape_cast %220 : vector<8x128xbf16> to vector<1x8x128xbf16>
    tpu.vector_store %arg7[%221, %c0_84, %c0_85], %224 {strides = array<i32>} : memref<8x8x128xbf16, #tpu.memory_space<vmem>>, vector<1x8x128xbf16>,
    %c5_i32 = arith.constant 5 : i32
    %225 = arith.index_cast %c5_i32 : i32 to index
    %c0_86 = arith.constant 0 : index
    %c0_87 = arith.constant 0 : index
    %226 = vector.load %arg8[%225, %c0_86, %c0_87] : memref<8x8x512xf32, #tpu.memory_space<vmem>>, vector<1x8x512xf32>
    %227 = vector.shape_cast %226 : vector<1x8x512xf32> to vector<8x512xf32>
    %228 = arith.truncf %219 : vector<8x128xf32> to vector<8x128xbf16>
    %cst_88 = arith.constant dense<0.000000e+00> : vector<8x512xf32>
    %229 = tpu.matmul %228, %12, %cst_88 {dimension_numbers = #tpu.dot_dimension_numbers<[1], [0], [0], [1], [0, 0, 1, 1], [], []>} : vector<8x128xbf16>, vector<128x512xbf16>, vector<8x512xf32> -> vector<8x512xf32>
    %230 = arith.addf %227, %229 : vector<8x512xf32>
    %231 = vector.extract_strided_slice %230 {offsets = [0, 0], sizes = [8, 128], strides = [1, 1]} : vector<8x512xf32> to vector<8x128xf32>
    %cst_89 = arith.constant 5.000000e-01 : f32
    %232 = vector.broadcast %cst_89 : f32 to vector<8x128xf32>
    %233 = arith.mulf %232, %231 : vector<8x128xf32>
    %234 = math.tanh %233 : vector<8x128xf32>
    %cst_90 = arith.constant 1.000000e+00 : f32
    %235 = vector.broadcast %cst_90 : f32 to vector<8x128xf32>
    %236 = arith.addf %234, %235 : vector<8x128xf32>
    %cst_91 = arith.constant 5.000000e-01 : f32
    %237 = vector.broadcast %cst_91 : f32 to vector<8x128xf32>
    %238 = arith.mulf %237, %236 : vector<8x128xf32>
    %239 = vector.extract_strided_slice %230 {offsets = [0, 128], sizes = [8, 128], strides = [1, 1]} : vector<8x512xf32> to vector<8x128xf32>
    %cst_92 = arith.constant 5.000000e-01 : f32
    %240 = vector.broadcast %cst_92 : f32 to vector<8x128xf32>
    %241 = arith.mulf %240, %239 : vector<8x128xf32>
    %242 = math.tanh %241 : vector<8x128xf32>
    %cst_93 = arith.constant 1.000000e+00 : f32
    %243 = vector.broadcast %cst_93 : f32 to vector<8x128xf32>
    %244 = arith.addf %242, %243 : vector<8x128xf32>
    %cst_94 = arith.constant 5.000000e-01 : f32
    %245 = vector.broadcast %cst_94 : f32 to vector<8x128xf32>
    %246 = arith.mulf %245, %244 : vector<8x128xf32>
    %247 = vector.extract_strided_slice %230 {offsets = [0, 256], sizes = [8, 128], strides = [1, 1]} : vector<8x512xf32> to vector<8x128xf32>
    %248 = math.tanh %247 : vector<8x128xf32>
    %249 = vector.extract_strided_slice %230 {offsets = [0, 384], sizes = [8, 128], strides = [1, 1]} : vector<8x512xf32> to vector<8x128xf32>
    %cst_95 = arith.constant 5.000000e-01 : f32
    %250 = vector.broadcast %cst_95 : f32 to vector<8x128xf32>
    %251 = arith.mulf %250, %249 : vector<8x128xf32>
    %252 = math.tanh %251 : vector<8x128xf32>
    %cst_96 = arith.constant 1.000000e+00 : f32
    %253 = vector.broadcast %cst_96 : f32 to vector<8x128xf32>
    %254 = arith.addf %252, %253 : vector<8x128xf32>
    %cst_97 = arith.constant 5.000000e-01 : f32
    %255 = vector.broadcast %cst_97 : f32 to vector<8x128xf32>
    %256 = arith.mulf %255, %254 : vector<8x128xf32>
    %257 = arith.mulf %246, %217 : vector<8x128xf32>
    %258 = arith.mulf %238, %248 : vector<8x128xf32>
    %259 = arith.addf %257, %258 : vector<8x128xf32>
    %260 = math.tanh %259 : vector<8x128xf32>
    %261 = arith.mulf %256, %260 : vector<8x128xf32>
    %262 = arith.truncf %261 : vector<8x128xf32> to vector<8x128xbf16>
    %263 = arith.index_cast %c5_i32 : i32 to index
    %c0_98 = arith.constant 0 : index
    %c0_99 = arith.constant 0 : index
    %264 = vector.load %arg7[%263, %c0_98, %c0_99] : memref<8x8x128xbf16, #tpu.memory_space<vmem>>, vector<1x8x128xbf16>
    %265 = vector.shape_cast %264 : vector<1x8x128xbf16> to vector<8x128xbf16>
    %266 = vector.shape_cast %262 : vector<8x128xbf16> to vector<1x8x128xbf16>
    tpu.vector_store %arg7[%263, %c0_98, %c0_99], %266 {strides = array<i32>} : memref<8x8x128xbf16, #tpu.memory_space<vmem>>, vector<1x8x128xbf16>,
    %c6_i32 = arith.constant 6 : i32
    %267 = arith.index_cast %c6_i32 : i32 to index
    %c0_100 = arith.constant 0 : index
    %c0_101 = arith.constant 0 : index
    %268 = vector.load %arg8[%267, %c0_100, %c0_101] : memref<8x8x512xf32, #tpu.memory_space<vmem>>, vector<1x8x512xf32>
    %269 = vector.shape_cast %268 : vector<1x8x512xf32> to vector<8x512xf32>
    %270 = arith.truncf %261 : vector<8x128xf32> to vector<8x128xbf16>
    %cst_102 = arith.constant dense<0.000000e+00> : vector<8x512xf32>
    %271 = tpu.matmul %270, %12, %cst_102 {dimension_numbers = #tpu.dot_dimension_numbers<[1], [0], [0], [1], [0, 0, 1, 1], [], []>} : vector<8x128xbf16>, vector<128x512xbf16>, vector<8x512xf32> -> vector<8x512xf32>
    %272 = arith.addf %269, %271 : vector<8x512xf32>
    %273 = vector.extract_strided_slice %272 {offsets = [0, 0], sizes = [8, 128], strides = [1, 1]} : vector<8x512xf32> to vector<8x128xf32>
    %cst_103 = arith.constant 5.000000e-01 : f32
    %274 = vector.broadcast %cst_103 : f32 to vector<8x128xf32>
    %275 = arith.mulf %274, %273 : vector<8x128xf32>
    %276 = math.tanh %275 : vector<8x128xf32>
    %cst_104 = arith.constant 1.000000e+00 : f32
    %277 = vector.broadcast %cst_104 : f32 to vector<8x128xf32>
    %278 = arith.addf %276, %277 : vector<8x128xf32>
    %cst_105 = arith.constant 5.000000e-01 : f32
    %279 = vector.broadcast %cst_105 : f32 to vector<8x128xf32>
    %280 = arith.mulf %279, %278 : vector<8x128xf32>
    %281 = vector.extract_strided_slice %272 {offsets = [0, 128], sizes = [8, 128], strides = [1, 1]} : vector<8x512xf32> to vector<8x128xf32>
    %cst_106 = arith.constant 5.000000e-01 : f32
    %282 = vector.broadcast %cst_106 : f32 to vector<8x128xf32>
    %283 = arith.mulf %282, %281 : vector<8x128xf32>
    %284 = math.tanh %283 : vector<8x128xf32>
    %cst_107 = arith.constant 1.000000e+00 : f32
    %285 = vector.broadcast %cst_107 : f32 to vector<8x128xf32>
    %286 = arith.addf %284, %285 : vector<8x128xf32>
    %cst_108 = arith.constant 5.000000e-01 : f32
    %287 = vector.broadcast %cst_108 : f32 to vector<8x128xf32>
    %288 = arith.mulf %287, %286 : vector<8x128xf32>
    %289 = vector.extract_strided_slice %272 {offsets = [0, 256], sizes = [8, 128], strides = [1, 1]} : vector<8x512xf32> to vector<8x128xf32>
    %290 = math.tanh %289 : vector<8x128xf32>
    %291 = vector.extract_strided_slice %272 {offsets = [0, 384], sizes = [8, 128], strides = [1, 1]} : vector<8x512xf32> to vector<8x128xf32>
    %cst_109 = arith.constant 5.000000e-01 : f32
    %292 = vector.broadcast %cst_109 : f32 to vector<8x128xf32>
    %293 = arith.mulf %292, %291 : vector<8x128xf32>
    %294 = math.tanh %293 : vector<8x128xf32>
    %cst_110 = arith.constant 1.000000e+00 : f32
    %295 = vector.broadcast %cst_110 : f32 to vector<8x128xf32>
    %296 = arith.addf %294, %295 : vector<8x128xf32>
    %cst_111 = arith.constant 5.000000e-01 : f32
    %297 = vector.broadcast %cst_111 : f32 to vector<8x128xf32>
    %298 = arith.mulf %297, %296 : vector<8x128xf32>
    %299 = arith.mulf %288, %259 : vector<8x128xf32>
    %300 = arith.mulf %280, %290 : vector<8x128xf32>
    %301 = arith.addf %299, %300 : vector<8x128xf32>
    %302 = math.tanh %301 : vector<8x128xf32>
    %303 = arith.mulf %298, %302 : vector<8x128xf32>
    %304 = arith.truncf %303 : vector<8x128xf32> to vector<8x128xbf16>
    %305 = arith.index_cast %c6_i32 : i32 to index
    %c0_112 = arith.constant 0 : index
    %c0_113 = arith.constant 0 : index
    %306 = vector.load %arg7[%305, %c0_112, %c0_113] : memref<8x8x128xbf16, #tpu.memory_space<vmem>>, vector<1x8x128xbf16>
    %307 = vector.shape_cast %306 : vector<1x8x128xbf16> to vector<8x128xbf16>
    %308 = vector.shape_cast %304 : vector<8x128xbf16> to vector<1x8x128xbf16>
    tpu.vector_store %arg7[%305, %c0_112, %c0_113], %308 {strides = array<i32>} : memref<8x8x128xbf16, #tpu.memory_space<vmem>>, vector<1x8x128xbf16>,
    %c7_i32 = arith.constant 7 : i32
    %309 = arith.index_cast %c7_i32 : i32 to index
    %c0_114 = arith.constant 0 : index
    %c0_115 = arith.constant 0 : index
    %310 = vector.load %arg8[%309, %c0_114, %c0_115] : memref<8x8x512xf32, #tpu.memory_space<vmem>>, vector<1x8x512xf32>
    %311 = vector.shape_cast %310 : vector<1x8x512xf32> to vector<8x512xf32>
    %312 = arith.truncf %303 : vector<8x128xf32> to vector<8x128xbf16>
    %cst_116 = arith.constant dense<0.000000e+00> : vector<8x512xf32>
    %313 = tpu.matmul %312, %12, %cst_116 {dimension_numbers = #tpu.dot_dimension_numbers<[1], [0], [0], [1], [0, 0, 1, 1], [], []>} : vector<8x128xbf16>, vector<128x512xbf16>, vector<8x512xf32> -> vector<8x512xf32>
    %314 = arith.addf %311, %313 : vector<8x512xf32>
    %315 = vector.extract_strided_slice %314 {offsets = [0, 0], sizes = [8, 128], strides = [1, 1]} : vector<8x512xf32> to vector<8x128xf32>
    %cst_117 = arith.constant 5.000000e-01 : f32
    %316 = vector.broadcast %cst_117 : f32 to vector<8x128xf32>
    %317 = arith.mulf %316, %315 : vector<8x128xf32>
    %318 = math.tanh %317 : vector<8x128xf32>
    %cst_118 = arith.constant 1.000000e+00 : f32
    %319 = vector.broadcast %cst_118 : f32 to vector<8x128xf32>
    %320 = arith.addf %318, %319 : vector<8x128xf32>
    %cst_119 = arith.constant 5.000000e-01 : f32
    %321 = vector.broadcast %cst_119 : f32 to vector<8x128xf32>
    %322 = arith.mulf %321, %320 : vector<8x128xf32>
    %323 = vector.extract_strided_slice %314 {offsets = [0, 128], sizes = [8, 128], strides = [1, 1]} : vector<8x512xf32> to vector<8x128xf32>
    %cst_120 = arith.constant 5.000000e-01 : f32
    %324 = vector.broadcast %cst_120 : f32 to vector<8x128xf32>
    %325 = arith.mulf %324, %323 : vector<8x128xf32>
    %326 = math.tanh %325 : vector<8x128xf32>
    %cst_121 = arith.constant 1.000000e+00 : f32
    %327 = vector.broadcast %cst_121 : f32 to vector<8x128xf32>
    %328 = arith.addf %326, %327 : vector<8x128xf32>
    %cst_122 = arith.constant 5.000000e-01 : f32
    %329 = vector.broadcast %cst_122 : f32 to vector<8x128xf32>
    %330 = arith.mulf %329, %328 : vector<8x128xf32>
    %331 = vector.extract_strided_slice %314 {offsets = [0, 256], sizes = [8, 128], strides = [1, 1]} : vector<8x512xf32> to vector<8x128xf32>
    %332 = math.tanh %331 : vector<8x128xf32>
    %333 = vector.extract_strided_slice %314 {offsets = [0, 384], sizes = [8, 128], strides = [1, 1]} : vector<8x512xf32> to vector<8x128xf32>
    %cst_123 = arith.constant 5.000000e-01 : f32
    %334 = vector.broadcast %cst_123 : f32 to vector<8x128xf32>
    %335 = arith.mulf %334, %333 : vector<8x128xf32>
    %336 = math.tanh %335 : vector<8x128xf32>
    %cst_124 = arith.constant 1.000000e+00 : f32
    %337 = vector.broadcast %cst_124 : f32 to vector<8x128xf32>
    %338 = arith.addf %336, %337 : vector<8x128xf32>
    %cst_125 = arith.constant 5.000000e-01 : f32
    %339 = vector.broadcast %cst_125 : f32 to vector<8x128xf32>
    %340 = arith.mulf %339, %338 : vector<8x128xf32>
    %341 = arith.mulf %330, %301 : vector<8x128xf32>
    %342 = arith.mulf %322, %332 : vector<8x128xf32>
    %343 = arith.addf %341, %342 : vector<8x128xf32>
    %344 = math.tanh %343 : vector<8x128xf32>
    %345 = arith.mulf %340, %344 : vector<8x128xf32>
    %346 = arith.truncf %345 : vector<8x128xf32> to vector<8x128xbf16>
    %347 = arith.index_cast %c7_i32 : i32 to index
    %c0_126 = arith.constant 0 : index
    %c0_127 = arith.constant 0 : index
    %348 = vector.load %arg7[%347, %c0_126, %c0_127] : memref<8x8x128xbf16, #tpu.memory_space<vmem>>, vector<1x8x128xbf16>
    %349 = vector.shape_cast %348 : vector<1x8x128xbf16> to vector<8x128xbf16>
    %350 = vector.shape_cast %346 : vector<8x128xbf16> to vector<1x8x128xbf16>
    tpu.vector_store %arg7[%347, %c0_126, %c0_127], %350 {strides = array<i32>} : memref<8x8x128xbf16, #tpu.memory_space<vmem>>, vector<1x8x128xbf16>,
    %c8_i32 = arith.constant 8 : i32
    %c0_128 = arith.constant 0 : index
    %c0_129 = arith.constant 0 : index
    %c0_130 = arith.constant 0 : index
    %351 = vector.load %arg7[%c0_128, %c0_129, %c0_130] : memref<8x8x128xbf16, #tpu.memory_space<vmem>>, vector<8x8x128xbf16>
    %352 = vector.shape_cast %351 : vector<8x8x128xbf16> to vector<64x128xbf16>
    %c1 = arith.constant 1 : index
    %c0_131 = arith.constant 0 : index
    %c0_132 = arith.constant 0 : index
    %353 = vector.load %arg1[%c1, %c0_131, %c0_132] : memref<2x128x512xbf16, #tpu.memory_space<vmem>>, vector<1x128x512xbf16>
    %354 = vector.shape_cast %353 : vector<1x128x512xbf16> to vector<128x512xbf16>
    %cst_133 = arith.constant dense<0.000000e+00> : vector<64x512xf32>
    %355 = tpu.matmul %352, %354, %cst_133 {dimension_numbers = #tpu.dot_dimension_numbers<[1], [0], [0], [1], [0, 0, 1, 1], [], []>} : vector<64x128xbf16>, vector<128x512xbf16>, vector<64x512xf32> -> vector<64x512xf32>
    %c1_134 = arith.constant 1 : index
    %c0_135 = arith.constant 0 : index
    %c0_136 = arith.constant 0 : index
    %356 = vector.load %arg3[%c1_134, %c0_135, %c0_136] : memref<2x1x512xf32, #tpu.memory_space<vmem>>, vector<1x1x512xf32>
    %357 = vector.shape_cast %356 : vector<1x1x512xf32> to vector<1x512xf32>
    %358 = vector.broadcast %357 : vector<1x512xf32> to vector<64x512xf32>
    %359 = arith.addf %355, %358 : vector<64x512xf32>
    %360 = vector.shape_cast %359 : vector<64x512xf32> to vector<8x8x512xf32>
    %c0_137 = arith.constant 0 : index
    %c0_138 = arith.constant 0 : index
    %c0_139 = arith.constant 0 : index
    %361 = vector.load %arg8[%c0_137, %c0_138, %c0_139] : memref<8x8x512xf32, #tpu.memory_space<vmem>>, vector<8x8x512xf32>
    tpu.vector_store %arg8[%c0_137, %c0_138, %c0_139], %360 {strides = array<i32>} : memref<8x8x512xf32, #tpu.memory_space<vmem>>, vector<8x8x512xf32>,
    %c1_140 = arith.constant 1 : index
    %c0_141 = arith.constant 0 : index
    %c0_142 = arith.constant 0 : index
    %362 = vector.load %arg2[%c1_140, %c0_141, %c0_142] : memref<2x128x512xbf16, #tpu.memory_space<vmem>>, vector<1x128x512xbf16>
    %363 = vector.shape_cast %362 : vector<1x128x512xbf16> to vector<128x512xbf16>
    %cst_143 = arith.constant 0.000000e+00 : f32
    %364 = vector.broadcast %cst_143 : f32 to vector<8x128xf32>
    %cst_144 = arith.constant 0.000000e+00 : f32
    %365 = vector.broadcast %cst_144 : f32 to vector<8x128xf32>
    %c0_i32_145 = arith.constant 0 : i32
    %366 = arith.index_cast %c0_i32_145 : i32 to index
    %c0_146 = arith.constant 0 : index
    %c0_147 = arith.constant 0 : index
    %367 = vector.load %arg8[%366, %c0_146, %c0_147] : memref<8x8x512xf32, #tpu.memory_space<vmem>>, vector<1x8x512xf32>
    %368 = vector.shape_cast %367 : vector<1x8x512xf32> to vector<8x512xf32>
    %369 = arith.truncf %364 : vector<8x128xf32> to vector<8x128xbf16>
    %cst_148 = arith.constant dense<0.000000e+00> : vector<8x512xf32>
    %370 = tpu.matmul %369, %363, %cst_148 {dimension_numbers = #tpu.dot_dimension_numbers<[1], [0], [0], [1], [0, 0, 1, 1], [], []>} : vector<8x128xbf16>, vector<128x512xbf16>, vector<8x512xf32> -> vector<8x512xf32>
    %371 = arith.addf %368, %370 : vector<8x512xf32>
    %372 = vector.extract_strided_slice %371 {offsets = [0, 0], sizes = [8, 128], strides = [1, 1]} : vector<8x512xf32> to vector<8x128xf32>
    %cst_149 = arith.constant 5.000000e-01 : f32
    %373 = vector.broadcast %cst_149 : f32 to vector<8x128xf32>
    %374 = arith.mulf %373, %372 : vector<8x128xf32>
    %375 = math.tanh %374 : vector<8x128xf32>
    %cst_150 = arith.constant 1.000000e+00 : f32
    %376 = vector.broadcast %cst_150 : f32 to vector<8x128xf32>
    %377 = arith.addf %375, %376 : vector<8x128xf32>
    %cst_151 = arith.constant 5.000000e-01 : f32
    %378 = vector.broadcast %cst_151 : f32 to vector<8x128xf32>
    %379 = arith.mulf %378, %377 : vector<8x128xf32>
    %380 = vector.extract_strided_slice %371 {offsets = [0, 128], sizes = [8, 128], strides = [1, 1]} : vector<8x512xf32> to vector<8x128xf32>
    %cst_152 = arith.constant 5.000000e-01 : f32
    %381 = vector.broadcast %cst_152 : f32 to vector<8x128xf32>
    %382 = arith.mulf %381, %380 : vector<8x128xf32>
    %383 = math.tanh %382 : vector<8x128xf32>
    %cst_153 = arith.constant 1.000000e+00 : f32
    %384 = vector.broadcast %cst_153 : f32 to vector<8x128xf32>
    %385 = arith.addf %383, %384 : vector<8x128xf32>
    %cst_154 = arith.constant 5.000000e-01 : f32
    %386 = vector.broadcast %cst_154 : f32 to vector<8x128xf32>
    %387 = arith.mulf %386, %385 : vector<8x128xf32>
    %388 = vector.extract_strided_slice %371 {offsets = [0, 256], sizes = [8, 128], strides = [1, 1]} : vector<8x512xf32> to vector<8x128xf32>
    %389 = math.tanh %388 : vector<8x128xf32>
    %390 = vector.extract_strided_slice %371 {offsets = [0, 384], sizes = [8, 128], strides = [1, 1]} : vector<8x512xf32> to vector<8x128xf32>
    %cst_155 = arith.constant 5.000000e-01 : f32
    %391 = vector.broadcast %cst_155 : f32 to vector<8x128xf32>
    %392 = arith.mulf %391, %390 : vector<8x128xf32>
    %393 = math.tanh %392 : vector<8x128xf32>
    %cst_156 = arith.constant 1.000000e+00 : f32
    %394 = vector.broadcast %cst_156 : f32 to vector<8x128xf32>
    %395 = arith.addf %393, %394 : vector<8x128xf32>
    %cst_157 = arith.constant 5.000000e-01 : f32
    %396 = vector.broadcast %cst_157 : f32 to vector<8x128xf32>
    %397 = arith.mulf %396, %395 : vector<8x128xf32>
    %398 = arith.mulf %387, %365 : vector<8x128xf32>
    %399 = arith.mulf %379, %389 : vector<8x128xf32>
    %400 = arith.addf %398, %399 : vector<8x128xf32>
    %401 = math.tanh %400 : vector<8x128xf32>
    %402 = arith.mulf %397, %401 : vector<8x128xf32>
    %c1_i32_158 = arith.constant 1 : i32
    %403 = arith.index_cast %c1_i32_158 : i32 to index
    %c0_159 = arith.constant 0 : index
    %c0_160 = arith.constant 0 : index
    %404 = vector.load %arg8[%403, %c0_159, %c0_160] : memref<8x8x512xf32, #tpu.memory_space<vmem>>, vector<1x8x512xf32>
    %405 = vector.shape_cast %404 : vector<1x8x512xf32> to vector<8x512xf32>
    %406 = arith.truncf %402 : vector<8x128xf32> to vector<8x128xbf16>
    %cst_161 = arith.constant dense<0.000000e+00> : vector<8x512xf32>
    %407 = tpu.matmul %406, %363, %cst_161 {dimension_numbers = #tpu.dot_dimension_numbers<[1], [0], [0], [1], [0, 0, 1, 1], [], []>} : vector<8x128xbf16>, vector<128x512xbf16>, vector<8x512xf32> -> vector<8x512xf32>
    %408 = arith.addf %405, %407 : vector<8x512xf32>
    %409 = vector.extract_strided_slice %408 {offsets = [0, 0], sizes = [8, 128], strides = [1, 1]} : vector<8x512xf32> to vector<8x128xf32>
    %cst_162 = arith.constant 5.000000e-01 : f32
    %410 = vector.broadcast %cst_162 : f32 to vector<8x128xf32>
    %411 = arith.mulf %410, %409 : vector<8x128xf32>
    %412 = math.tanh %411 : vector<8x128xf32>
    %cst_163 = arith.constant 1.000000e+00 : f32
    %413 = vector.broadcast %cst_163 : f32 to vector<8x128xf32>
    %414 = arith.addf %412, %413 : vector<8x128xf32>
    %cst_164 = arith.constant 5.000000e-01 : f32
    %415 = vector.broadcast %cst_164 : f32 to vector<8x128xf32>
    %416 = arith.mulf %415, %414 : vector<8x128xf32>
    %417 = vector.extract_strided_slice %408 {offsets = [0, 128], sizes = [8, 128], strides = [1, 1]} : vector<8x512xf32> to vector<8x128xf32>
    %cst_165 = arith.constant 5.000000e-01 : f32
    %418 = vector.broadcast %cst_165 : f32 to vector<8x128xf32>
    %419 = arith.mulf %418, %417 : vector<8x128xf32>
    %420 = math.tanh %419 : vector<8x128xf32>
    %cst_166 = arith.constant 1.000000e+00 : f32
    %421 = vector.broadcast %cst_166 : f32 to vector<8x128xf32>
    %422 = arith.addf %420, %421 : vector<8x128xf32>
    %cst_167 = arith.constant 5.000000e-01 : f32
    %423 = vector.broadcast %cst_167 : f32 to vector<8x128xf32>
    %424 = arith.mulf %423, %422 : vector<8x128xf32>
    %425 = vector.extract_strided_slice %408 {offsets = [0, 256], sizes = [8, 128], strides = [1, 1]} : vector<8x512xf32> to vector<8x128xf32>
    %426 = math.tanh %425 : vector<8x128xf32>
    %427 = vector.extract_strided_slice %408 {offsets = [0, 384], sizes = [8, 128], strides = [1, 1]} : vector<8x512xf32> to vector<8x128xf32>
    %cst_168 = arith.constant 5.000000e-01 : f32
    %428 = vector.broadcast %cst_168 : f32 to vector<8x128xf32>
    %429 = arith.mulf %428, %427 : vector<8x128xf32>
    %430 = math.tanh %429 : vector<8x128xf32>
    %cst_169 = arith.constant 1.000000e+00 : f32
    %431 = vector.broadcast %cst_169 : f32 to vector<8x128xf32>
    %432 = arith.addf %430, %431 : vector<8x128xf32>
    %cst_170 = arith.constant 5.000000e-01 : f32
    %433 = vector.broadcast %cst_170 : f32 to vector<8x128xf32>
    %434 = arith.mulf %433, %432 : vector<8x128xf32>
    %435 = arith.mulf %424, %400 : vector<8x128xf32>
    %436 = arith.mulf %416, %426 : vector<8x128xf32>
    %437 = arith.addf %435, %436 : vector<8x128xf32>
    %438 = math.tanh %437 : vector<8x128xf32>
    %439 = arith.mulf %434, %438 : vector<8x128xf32>
    %c2_i32_171 = arith.constant 2 : i32
    %440 = arith.index_cast %c2_i32_171 : i32 to index
    %c0_172 = arith.constant 0 : index
    %c0_173 = arith.constant 0 : index
    %441 = vector.load %arg8[%440, %c0_172, %c0_173] : memref<8x8x512xf32, #tpu.memory_space<vmem>>, vector<1x8x512xf32>
    %442 = vector.shape_cast %441 : vector<1x8x512xf32> to vector<8x512xf32>
    %443 = arith.truncf %439 : vector<8x128xf32> to vector<8x128xbf16>
    %cst_174 = arith.constant dense<0.000000e+00> : vector<8x512xf32>
    %444 = tpu.matmul %443, %363, %cst_174 {dimension_numbers = #tpu.dot_dimension_numbers<[1], [0], [0], [1], [0, 0, 1, 1], [], []>} : vector<8x128xbf16>, vector<128x512xbf16>, vector<8x512xf32> -> vector<8x512xf32>
    %445 = arith.addf %442, %444 : vector<8x512xf32>
    %446 = vector.extract_strided_slice %445 {offsets = [0, 0], sizes = [8, 128], strides = [1, 1]} : vector<8x512xf32> to vector<8x128xf32>
    %cst_175 = arith.constant 5.000000e-01 : f32
    %447 = vector.broadcast %cst_175 : f32 to vector<8x128xf32>
    %448 = arith.mulf %447, %446 : vector<8x128xf32>
    %449 = math.tanh %448 : vector<8x128xf32>
    %cst_176 = arith.constant 1.000000e+00 : f32
    %450 = vector.broadcast %cst_176 : f32 to vector<8x128xf32>
    %451 = arith.addf %449, %450 : vector<8x128xf32>
    %cst_177 = arith.constant 5.000000e-01 : f32
    %452 = vector.broadcast %cst_177 : f32 to vector<8x128xf32>
    %453 = arith.mulf %452, %451 : vector<8x128xf32>
    %454 = vector.extract_strided_slice %445 {offsets = [0, 128], sizes = [8, 128], strides = [1, 1]} : vector<8x512xf32> to vector<8x128xf32>
    %cst_178 = arith.constant 5.000000e-01 : f32
    %455 = vector.broadcast %cst_178 : f32 to vector<8x128xf32>
    %456 = arith.mulf %455, %454 : vector<8x128xf32>
    %457 = math.tanh %456 : vector<8x128xf32>
    %cst_179 = arith.constant 1.000000e+00 : f32
    %458 = vector.broadcast %cst_179 : f32 to vector<8x128xf32>
    %459 = arith.addf %457, %458 : vector<8x128xf32>
    %cst_180 = arith.constant 5.000000e-01 : f32
    %460 = vector.broadcast %cst_180 : f32 to vector<8x128xf32>
    %461 = arith.mulf %460, %459 : vector<8x128xf32>
    %462 = vector.extract_strided_slice %445 {offsets = [0, 256], sizes = [8, 128], strides = [1, 1]} : vector<8x512xf32> to vector<8x128xf32>
    %463 = math.tanh %462 : vector<8x128xf32>
    %464 = vector.extract_strided_slice %445 {offsets = [0, 384], sizes = [8, 128], strides = [1, 1]} : vector<8x512xf32> to vector<8x128xf32>
    %cst_181 = arith.constant 5.000000e-01 : f32
    %465 = vector.broadcast %cst_181 : f32 to vector<8x128xf32>
    %466 = arith.mulf %465, %464 : vector<8x128xf32>
    %467 = math.tanh %466 : vector<8x128xf32>
    %cst_182 = arith.constant 1.000000e+00 : f32
    %468 = vector.broadcast %cst_182 : f32 to vector<8x128xf32>
    %469 = arith.addf %467, %468 : vector<8x128xf32>
    %cst_183 = arith.constant 5.000000e-01 : f32
    %470 = vector.broadcast %cst_183 : f32 to vector<8x128xf32>
    %471 = arith.mulf %470, %469 : vector<8x128xf32>
    %472 = arith.mulf %461, %437 : vector<8x128xf32>
    %473 = arith.mulf %453, %463 : vector<8x128xf32>
    %474 = arith.addf %472, %473 : vector<8x128xf32>
    %475 = math.tanh %474 : vector<8x128xf32>
    %476 = arith.mulf %471, %475 : vector<8x128xf32>
    %c3_i32_184 = arith.constant 3 : i32
    %477 = arith.index_cast %c3_i32_184 : i32 to index
    %c0_185 = arith.constant 0 : index
    %c0_186 = arith.constant 0 : index
    %478 = vector.load %arg8[%477, %c0_185, %c0_186] : memref<8x8x512xf32, #tpu.memory_space<vmem>>, vector<1x8x512xf32>
    %479 = vector.shape_cast %478 : vector<1x8x512xf32> to vector<8x512xf32>
    %480 = arith.truncf %476 : vector<8x128xf32> to vector<8x128xbf16>
    %cst_187 = arith.constant dense<0.000000e+00> : vector<8x512xf32>
    %481 = tpu.matmul %480, %363, %cst_187 {dimension_numbers = #tpu.dot_dimension_numbers<[1], [0], [0], [1], [0, 0, 1, 1], [], []>} : vector<8x128xbf16>, vector<128x512xbf16>, vector<8x512xf32> -> vector<8x512xf32>
    %482 = arith.addf %479, %481 : vector<8x512xf32>
    %483 = vector.extract_strided_slice %482 {offsets = [0, 0], sizes = [8, 128], strides = [1, 1]} : vector<8x512xf32> to vector<8x128xf32>
    %cst_188 = arith.constant 5.000000e-01 : f32
    %484 = vector.broadcast %cst_188 : f32 to vector<8x128xf32>
    %485 = arith.mulf %484, %483 : vector<8x128xf32>
    %486 = math.tanh %485 : vector<8x128xf32>
    %cst_189 = arith.constant 1.000000e+00 : f32
    %487 = vector.broadcast %cst_189 : f32 to vector<8x128xf32>
    %488 = arith.addf %486, %487 : vector<8x128xf32>
    %cst_190 = arith.constant 5.000000e-01 : f32
    %489 = vector.broadcast %cst_190 : f32 to vector<8x128xf32>
    %490 = arith.mulf %489, %488 : vector<8x128xf32>
    %491 = vector.extract_strided_slice %482 {offsets = [0, 128], sizes = [8, 128], strides = [1, 1]} : vector<8x512xf32> to vector<8x128xf32>
    %cst_191 = arith.constant 5.000000e-01 : f32
    %492 = vector.broadcast %cst_191 : f32 to vector<8x128xf32>
    %493 = arith.mulf %492, %491 : vector<8x128xf32>
    %494 = math.tanh %493 : vector<8x128xf32>
    %cst_192 = arith.constant 1.000000e+00 : f32
    %495 = vector.broadcast %cst_192 : f32 to vector<8x128xf32>
    %496 = arith.addf %494, %495 : vector<8x128xf32>
    %cst_193 = arith.constant 5.000000e-01 : f32
    %497 = vector.broadcast %cst_193 : f32 to vector<8x128xf32>
    %498 = arith.mulf %497, %496 : vector<8x128xf32>
    %499 = vector.extract_strided_slice %482 {offsets = [0, 256], sizes = [8, 128], strides = [1, 1]} : vector<8x512xf32> to vector<8x128xf32>
    %500 = math.tanh %499 : vector<8x128xf32>
    %501 = vector.extract_strided_slice %482 {offsets = [0, 384], sizes = [8, 128], strides = [1, 1]} : vector<8x512xf32> to vector<8x128xf32>
    %cst_194 = arith.constant 5.000000e-01 : f32
    %502 = vector.broadcast %cst_194 : f32 to vector<8x128xf32>
    %503 = arith.mulf %502, %501 : vector<8x128xf32>
    %504 = math.tanh %503 : vector<8x128xf32>
    %cst_195 = arith.constant 1.000000e+00 : f32
    %505 = vector.broadcast %cst_195 : f32 to vector<8x128xf32>
    %506 = arith.addf %504, %505 : vector<8x128xf32>
    %cst_196 = arith.constant 5.000000e-01 : f32
    %507 = vector.broadcast %cst_196 : f32 to vector<8x128xf32>
    %508 = arith.mulf %507, %506 : vector<8x128xf32>
    %509 = arith.mulf %498, %474 : vector<8x128xf32>
    %510 = arith.mulf %490, %500 : vector<8x128xf32>
    %511 = arith.addf %509, %510 : vector<8x128xf32>
    %512 = math.tanh %511 : vector<8x128xf32>
    %513 = arith.mulf %508, %512 : vector<8x128xf32>
    %c4_i32_197 = arith.constant 4 : i32
    %514 = arith.index_cast %c4_i32_197 : i32 to index
    %c0_198 = arith.constant 0 : index
    %c0_199 = arith.constant 0 : index
    %515 = vector.load %arg8[%514, %c0_198, %c0_199] : memref<8x8x512xf32, #tpu.memory_space<vmem>>, vector<1x8x512xf32>
    %516 = vector.shape_cast %515 : vector<1x8x512xf32> to vector<8x512xf32>
    %517 = arith.truncf %513 : vector<8x128xf32> to vector<8x128xbf16>
    %cst_200 = arith.constant dense<0.000000e+00> : vector<8x512xf32>
    %518 = tpu.matmul %517, %363, %cst_200 {dimension_numbers = #tpu.dot_dimension_numbers<[1], [0], [0], [1], [0, 0, 1, 1], [], []>} : vector<8x128xbf16>, vector<128x512xbf16>, vector<8x512xf32> -> vector<8x512xf32>
    %519 = arith.addf %516, %518 : vector<8x512xf32>
    %520 = vector.extract_strided_slice %519 {offsets = [0, 0], sizes = [8, 128], strides = [1, 1]} : vector<8x512xf32> to vector<8x128xf32>
    %cst_201 = arith.constant 5.000000e-01 : f32
    %521 = vector.broadcast %cst_201 : f32 to vector<8x128xf32>
    %522 = arith.mulf %521, %520 : vector<8x128xf32>
    %523 = math.tanh %522 : vector<8x128xf32>
    %cst_202 = arith.constant 1.000000e+00 : f32
    %524 = vector.broadcast %cst_202 : f32 to vector<8x128xf32>
    %525 = arith.addf %523, %524 : vector<8x128xf32>
    %cst_203 = arith.constant 5.000000e-01 : f32
    %526 = vector.broadcast %cst_203 : f32 to vector<8x128xf32>
    %527 = arith.mulf %526, %525 : vector<8x128xf32>
    %528 = vector.extract_strided_slice %519 {offsets = [0, 128], sizes = [8, 128], strides = [1, 1]} : vector<8x512xf32> to vector<8x128xf32>
    %cst_204 = arith.constant 5.000000e-01 : f32
    %529 = vector.broadcast %cst_204 : f32 to vector<8x128xf32>
    %530 = arith.mulf %529, %528 : vector<8x128xf32>
    %531 = math.tanh %530 : vector<8x128xf32>
    %cst_205 = arith.constant 1.000000e+00 : f32
    %532 = vector.broadcast %cst_205 : f32 to vector<8x128xf32>
    %533 = arith.addf %531, %532 : vector<8x128xf32>
    %cst_206 = arith.constant 5.000000e-01 : f32
    %534 = vector.broadcast %cst_206 : f32 to vector<8x128xf32>
    %535 = arith.mulf %534, %533 : vector<8x128xf32>
    %536 = vector.extract_strided_slice %519 {offsets = [0, 256], sizes = [8, 128], strides = [1, 1]} : vector<8x512xf32> to vector<8x128xf32>
    %537 = math.tanh %536 : vector<8x128xf32>
    %538 = vector.extract_strided_slice %519 {offsets = [0, 384], sizes = [8, 128], strides = [1, 1]} : vector<8x512xf32> to vector<8x128xf32>
    %cst_207 = arith.constant 5.000000e-01 : f32
    %539 = vector.broadcast %cst_207 : f32 to vector<8x128xf32>
    %540 = arith.mulf %539, %538 : vector<8x128xf32>
    %541 = math.tanh %540 : vector<8x128xf32>
    %cst_208 = arith.constant 1.000000e+00 : f32
    %542 = vector.broadcast %cst_208 : f32 to vector<8x128xf32>
    %543 = arith.addf %541, %542 : vector<8x128xf32>
    %cst_209 = arith.constant 5.000000e-01 : f32
    %544 = vector.broadcast %cst_209 : f32 to vector<8x128xf32>
    %545 = arith.mulf %544, %543 : vector<8x128xf32>
    %546 = arith.mulf %535, %511 : vector<8x128xf32>
    %547 = arith.mulf %527, %537 : vector<8x128xf32>
    %548 = arith.addf %546, %547 : vector<8x128xf32>
    %549 = math.tanh %548 : vector<8x128xf32>
    %550 = arith.mulf %545, %549 : vector<8x128xf32>
    %c5_i32_210 = arith.constant 5 : i32
    %551 = arith.index_cast %c5_i32_210 : i32 to index
    %c0_211 = arith.constant 0 : index
    %c0_212 = arith.constant 0 : index
    %552 = vector.load %arg8[%551, %c0_211, %c0_212] : memref<8x8x512xf32, #tpu.memory_space<vmem>>, vector<1x8x512xf32>
    %553 = vector.shape_cast %552 : vector<1x8x512xf32> to vector<8x512xf32>
    %554 = arith.truncf %550 : vector<8x128xf32> to vector<8x128xbf16>
    %cst_213 = arith.constant dense<0.000000e+00> : vector<8x512xf32>
    %555 = tpu.matmul %554, %363, %cst_213 {dimension_numbers = #tpu.dot_dimension_numbers<[1], [0], [0], [1], [0, 0, 1, 1], [], []>} : vector<8x128xbf16>, vector<128x512xbf16>, vector<8x512xf32> -> vector<8x512xf32>
    %556 = arith.addf %553, %555 : vector<8x512xf32>
    %557 = vector.extract_strided_slice %556 {offsets = [0, 0], sizes = [8, 128], strides = [1, 1]} : vector<8x512xf32> to vector<8x128xf32>
    %cst_214 = arith.constant 5.000000e-01 : f32
    %558 = vector.broadcast %cst_214 : f32 to vector<8x128xf32>
    %559 = arith.mulf %558, %557 : vector<8x128xf32>
    %560 = math.tanh %559 : vector<8x128xf32>
    %cst_215 = arith.constant 1.000000e+00 : f32
    %561 = vector.broadcast %cst_215 : f32 to vector<8x128xf32>
    %562 = arith.addf %560, %561 : vector<8x128xf32>
    %cst_216 = arith.constant 5.000000e-01 : f32
    %563 = vector.broadcast %cst_216 : f32 to vector<8x128xf32>
    %564 = arith.mulf %563, %562 : vector<8x128xf32>
    %565 = vector.extract_strided_slice %556 {offsets = [0, 128], sizes = [8, 128], strides = [1, 1]} : vector<8x512xf32> to vector<8x128xf32>
    %cst_217 = arith.constant 5.000000e-01 : f32
    %566 = vector.broadcast %cst_217 : f32 to vector<8x128xf32>
    %567 = arith.mulf %566, %565 : vector<8x128xf32>
    %568 = math.tanh %567 : vector<8x128xf32>
    %cst_218 = arith.constant 1.000000e+00 : f32
    %569 = vector.broadcast %cst_218 : f32 to vector<8x128xf32>
    %570 = arith.addf %568, %569 : vector<8x128xf32>
    %cst_219 = arith.constant 5.000000e-01 : f32
    %571 = vector.broadcast %cst_219 : f32 to vector<8x128xf32>
    %572 = arith.mulf %571, %570 : vector<8x128xf32>
    %573 = vector.extract_strided_slice %556 {offsets = [0, 256], sizes = [8, 128], strides = [1, 1]} : vector<8x512xf32> to vector<8x128xf32>
    %574 = math.tanh %573 : vector<8x128xf32>
    %575 = vector.extract_strided_slice %556 {offsets = [0, 384], sizes = [8, 128], strides = [1, 1]} : vector<8x512xf32> to vector<8x128xf32>
    %cst_220 = arith.constant 5.000000e-01 : f32
    %576 = vector.broadcast %cst_220 : f32 to vector<8x128xf32>
    %577 = arith.mulf %576, %575 : vector<8x128xf32>
    %578 = math.tanh %577 : vector<8x128xf32>
    %cst_221 = arith.constant 1.000000e+00 : f32
    %579 = vector.broadcast %cst_221 : f32 to vector<8x128xf32>
    %580 = arith.addf %578, %579 : vector<8x128xf32>
    %cst_222 = arith.constant 5.000000e-01 : f32
    %581 = vector.broadcast %cst_222 : f32 to vector<8x128xf32>
    %582 = arith.mulf %581, %580 : vector<8x128xf32>
    %583 = arith.mulf %572, %548 : vector<8x128xf32>
    %584 = arith.mulf %564, %574 : vector<8x128xf32>
    %585 = arith.addf %583, %584 : vector<8x128xf32>
    %586 = math.tanh %585 : vector<8x128xf32>
    %587 = arith.mulf %582, %586 : vector<8x128xf32>
    %c6_i32_223 = arith.constant 6 : i32
    %588 = arith.index_cast %c6_i32_223 : i32 to index
    %c0_224 = arith.constant 0 : index
    %c0_225 = arith.constant 0 : index
    %589 = vector.load %arg8[%588, %c0_224, %c0_225] : memref<8x8x512xf32, #tpu.memory_space<vmem>>, vector<1x8x512xf32>
    %590 = vector.shape_cast %589 : vector<1x8x512xf32> to vector<8x512xf32>
    %591 = arith.truncf %587 : vector<8x128xf32> to vector<8x128xbf16>
    %cst_226 = arith.constant dense<0.000000e+00> : vector<8x512xf32>
    %592 = tpu.matmul %591, %363, %cst_226 {dimension_numbers = #tpu.dot_dimension_numbers<[1], [0], [0], [1], [0, 0, 1, 1], [], []>} : vector<8x128xbf16>, vector<128x512xbf16>, vector<8x512xf32> -> vector<8x512xf32>
    %593 = arith.addf %590, %592 : vector<8x512xf32>
    %594 = vector.extract_strided_slice %593 {offsets = [0, 0], sizes = [8, 128], strides = [1, 1]} : vector<8x512xf32> to vector<8x128xf32>
    %cst_227 = arith.constant 5.000000e-01 : f32
    %595 = vector.broadcast %cst_227 : f32 to vector<8x128xf32>
    %596 = arith.mulf %595, %594 : vector<8x128xf32>
    %597 = math.tanh %596 : vector<8x128xf32>
    %cst_228 = arith.constant 1.000000e+00 : f32
    %598 = vector.broadcast %cst_228 : f32 to vector<8x128xf32>
    %599 = arith.addf %597, %598 : vector<8x128xf32>
    %cst_229 = arith.constant 5.000000e-01 : f32
    %600 = vector.broadcast %cst_229 : f32 to vector<8x128xf32>
    %601 = arith.mulf %600, %599 : vector<8x128xf32>
    %602 = vector.extract_strided_slice %593 {offsets = [0, 128], sizes = [8, 128], strides = [1, 1]} : vector<8x512xf32> to vector<8x128xf32>
    %cst_230 = arith.constant 5.000000e-01 : f32
    %603 = vector.broadcast %cst_230 : f32 to vector<8x128xf32>
    %604 = arith.mulf %603, %602 : vector<8x128xf32>
    %605 = math.tanh %604 : vector<8x128xf32>
    %cst_231 = arith.constant 1.000000e+00 : f32
    %606 = vector.broadcast %cst_231 : f32 to vector<8x128xf32>
    %607 = arith.addf %605, %606 : vector<8x128xf32>
    %cst_232 = arith.constant 5.000000e-01 : f32
    %608 = vector.broadcast %cst_232 : f32 to vector<8x128xf32>
    %609 = arith.mulf %608, %607 : vector<8x128xf32>
    %610 = vector.extract_strided_slice %593 {offsets = [0, 256], sizes = [8, 128], strides = [1, 1]} : vector<8x512xf32> to vector<8x128xf32>
    %611 = math.tanh %610 : vector<8x128xf32>
    %612 = vector.extract_strided_slice %593 {offsets = [0, 384], sizes = [8, 128], strides = [1, 1]} : vector<8x512xf32> to vector<8x128xf32>
    %cst_233 = arith.constant 5.000000e-01 : f32
    %613 = vector.broadcast %cst_233 : f32 to vector<8x128xf32>
    %614 = arith.mulf %613, %612 : vector<8x128xf32>
    %615 = math.tanh %614 : vector<8x128xf32>
    %cst_234 = arith.constant 1.000000e+00 : f32
    %616 = vector.broadcast %cst_234 : f32 to vector<8x128xf32>
    %617 = arith.addf %615, %616 : vector<8x128xf32>
    %cst_235 = arith.constant 5.000000e-01 : f32
    %618 = vector.broadcast %cst_235 : f32 to vector<8x128xf32>
    %619 = arith.mulf %618, %617 : vector<8x128xf32>
    %620 = arith.mulf %609, %585 : vector<8x128xf32>
    %621 = arith.mulf %601, %611 : vector<8x128xf32>
    %622 = arith.addf %620, %621 : vector<8x128xf32>
    %623 = math.tanh %622 : vector<8x128xf32>
    %624 = arith.mulf %619, %623 : vector<8x128xf32>
    %c7_i32_236 = arith.constant 7 : i32
    %625 = arith.index_cast %c7_i32_236 : i32 to index
    %c0_237 = arith.constant 0 : index
    %c0_238 = arith.constant 0 : index
    %626 = vector.load %arg8[%625, %c0_237, %c0_238] : memref<8x8x512xf32, #tpu.memory_space<vmem>>, vector<1x8x512xf32>
    %627 = vector.shape_cast %626 : vector<1x8x512xf32> to vector<8x512xf32>
    %628 = arith.truncf %624 : vector<8x128xf32> to vector<8x128xbf16>
    %cst_239 = arith.constant dense<0.000000e+00> : vector<8x512xf32>
    %629 = tpu.matmul %628, %363, %cst_239 {dimension_numbers = #tpu.dot_dimension_numbers<[1], [0], [0], [1], [0, 0, 1, 1], [], []>} : vector<8x128xbf16>, vector<128x512xbf16>, vector<8x512xf32> -> vector<8x512xf32>
    %630 = arith.addf %627, %629 : vector<8x512xf32>
    %631 = vector.extract_strided_slice %630 {offsets = [0, 0], sizes = [8, 128], strides = [1, 1]} : vector<8x512xf32> to vector<8x128xf32>
    %cst_240 = arith.constant 5.000000e-01 : f32
    %632 = vector.broadcast %cst_240 : f32 to vector<8x128xf32>
    %633 = arith.mulf %632, %631 : vector<8x128xf32>
    %634 = math.tanh %633 : vector<8x128xf32>
    %cst_241 = arith.constant 1.000000e+00 : f32
    %635 = vector.broadcast %cst_241 : f32 to vector<8x128xf32>
    %636 = arith.addf %634, %635 : vector<8x128xf32>
    %cst_242 = arith.constant 5.000000e-01 : f32
    %637 = vector.broadcast %cst_242 : f32 to vector<8x128xf32>
    %638 = arith.mulf %637, %636 : vector<8x128xf32>
    %639 = vector.extract_strided_slice %630 {offsets = [0, 128], sizes = [8, 128], strides = [1, 1]} : vector<8x512xf32> to vector<8x128xf32>
    %cst_243 = arith.constant 5.000000e-01 : f32
    %640 = vector.broadcast %cst_243 : f32 to vector<8x128xf32>
    %641 = arith.mulf %640, %639 : vector<8x128xf32>
    %642 = math.tanh %641 : vector<8x128xf32>
    %cst_244 = arith.constant 1.000000e+00 : f32
    %643 = vector.broadcast %cst_244 : f32 to vector<8x128xf32>
    %644 = arith.addf %642, %643 : vector<8x128xf32>
    %cst_245 = arith.constant 5.000000e-01 : f32
    %645 = vector.broadcast %cst_245 : f32 to vector<8x128xf32>
    %646 = arith.mulf %645, %644 : vector<8x128xf32>
    %647 = vector.extract_strided_slice %630 {offsets = [0, 256], sizes = [8, 128], strides = [1, 1]} : vector<8x512xf32> to vector<8x128xf32>
    %648 = math.tanh %647 : vector<8x128xf32>
    %649 = vector.extract_strided_slice %630 {offsets = [0, 384], sizes = [8, 128], strides = [1, 1]} : vector<8x512xf32> to vector<8x128xf32>
    %cst_246 = arith.constant 5.000000e-01 : f32
    %650 = vector.broadcast %cst_246 : f32 to vector<8x128xf32>
    %651 = arith.mulf %650, %649 : vector<8x128xf32>
    %652 = math.tanh %651 : vector<8x128xf32>
    %cst_247 = arith.constant 1.000000e+00 : f32
    %653 = vector.broadcast %cst_247 : f32 to vector<8x128xf32>
    %654 = arith.addf %652, %653 : vector<8x128xf32>
    %cst_248 = arith.constant 5.000000e-01 : f32
    %655 = vector.broadcast %cst_248 : f32 to vector<8x128xf32>
    %656 = arith.mulf %655, %654 : vector<8x128xf32>
    %657 = arith.mulf %646, %622 : vector<8x128xf32>
    %658 = arith.mulf %638, %648 : vector<8x128xf32>
    %659 = arith.addf %657, %658 : vector<8x128xf32>
    %660 = math.tanh %659 : vector<8x128xf32>
    %661 = arith.mulf %656, %660 : vector<8x128xf32>
    %c8_i32_249 = arith.constant 8 : i32
    %662 = arith.truncf %661 : vector<8x128xf32> to vector<8x128xbf16>
    %c0_250 = arith.constant 0 : index
    %c0_251 = arith.constant 0 : index
    %663 = vector.load %arg4[%c0_250, %c0_251] : memref<128x128xbf16, #tpu.memory_space<vmem>>, vector<128x128xbf16>
    %cst_252 = arith.constant dense<0.000000e+00> : vector<8x128xf32>
    %664 = tpu.matmul %662, %663, %cst_252 {dimension_numbers = #tpu.dot_dimension_numbers<[1], [0], [0], [1], [0, 0, 1, 1], [], []>} : vector<8x128xbf16>, vector<128x128xbf16>, vector<8x128xf32> -> vector<8x128xf32>
    %c0_253 = arith.constant 0 : index
    %c0_254 = arith.constant 0 : index
    %665 = vector.load %arg5[%c0_253, %c0_254] : memref<1x128xf32, #tpu.memory_space<vmem>>, vector<1x128xf32>
    %666 = vector.broadcast %665 : vector<1x128xf32> to vector<8x128xf32>
    %667 = arith.addf %664, %666 : vector<8x128xf32>
    %c0_255 = arith.constant 0 : index
    %c0_256 = arith.constant 0 : index
    %668 = vector.load %arg6[%c0_255, %c0_256] : memref<8x128xf32, #tpu.memory_space<vmem>>, vector<8x128xf32>
    tpu.vector_store %arg6[%c0_255, %c0_256], %667 {strides = array<i32>} : memref<8x128xf32, #tpu.memory_space<vmem>>, vector<8x128xf32>,
    return
  }
}

</mosaic_0001>

<bundles_post_ra>
// kernel: fwd.1
= control target key start
LH: loop header
LB: loop body
LE: loop exit
PB: predicated region body
PF: predicated region fallthrough
CT: control target
= control target key end

     0   :  { %11 = vsyncpa [#allocation5], 0  ;;  %s5056_s0 = inlined_call_operand.vmem [shape: bf16[8,8,128], index: 0, kind: input, shape index: {}]   ;;  %s5057_s1 = inlined_call_operand.hbm [shape: bf16[2,128,512], index: 1, kind: input, shape index: {}]   ;;  %s5058_s2 = inlined_call_operand.hbm [shape: bf16[2,128,512], index: 2, kind: input, shape index: {}]   ;;  %s5059_s3 = inlined_call_operand.hbm [shape: f32[2,1,512], index: 3, kind: input, shape index: {}]   ;;  %s5060_s4 = inlined_call_operand.vmem [shape: bf16[128,128], index: 4, kind: input, shape index: {}]   ;;  %s5061_s5 = inlined_call_operand.vmem [shape: f32[1,128], index: 5, kind: input, shape index: {}]   ;;  %s5062_s6 = inlined_call_operand.vmem [shape: f32[8,128], index: 6, kind: output, shape index: {}]  }
   0x1   :  { %12 = vsyncpa [#allocation7], 0  ;;  %s3864_s21 = smov [#allocation6]   ;;  %s3865_s23 = smov [#allocation4]  }
   0x2   :  { %s32_s22 = sshll.u32 %s3864_s21, 4  ;;  %s20_s24 = sshll.u32 %s3865_s23, 4  ;;  %s33_s22 = int_to_ptr.vmem [resolvable:$true] %s32_s22  ;;  %s21_s24 = int_to_ptr.vmem [resolvable:$true] %s20_s24 }
   0x3   :  { %s3808_s25 = scalar_lea.vmem %s33_s22, 8192  ;;  %p3813_p1 = scmp.lt.s32.totalorder %s33_s22, %s33_s22 }
   0x4   :  { %p3809_p0 = scmp.ne.s32.totalorder %s33_s22, %s3808_s25  ;;  %p3814_p2 = scmp.lt.s32.totalorder %s3808_s25, %s3808_s25 }
   0x6   :  { %p3815_p3 = por %p3814_p2, %p3813_p1 }
   0x8   :  { %p3816_p4 = pnand %p3815_p3, %p3809_p0 }
   0xa   :  { %3819 = shalt.err (!%p3816_p4)
}
   0xb   :  { %s3866_s26 = smov 256   ;;  %s3867_s27 = smov 16  }
   0xc   :  { %38 = dma.hbm_to_vmem [thread:$0]  %s5058_s2, 8192, %s33_s22, [#allocation7], %s3866_s26, %s3866_s26, %s3867_s27  }
   0xd   :  { %s3828_s30 = scalar_lea.vmem %s21_s24, 8192  ;;  %p3833_p6 = scmp.lt.s32.totalorder %s21_s24, %s21_s24 }
   0xe   :  { %p3829_p5 = scmp.ne.s32.totalorder %s21_s24, %s3828_s30  ;;  %p3834_p7 = scmp.lt.s32.totalorder %s3828_s30, %s3828_s30 }
  0x10   :  { %p3835_p8 = por %p3834_p7, %p3833_p6 }
  0x12   :  { %p3836_p9 = pnand %p3835_p8, %p3829_p5 }
  0x14   :  { %3839 = shalt.err (!%p3836_p9)
}
  0x15   :  { %26 = dma.hbm_to_vmem [thread:$0]  %s5057_s1, 8192, %s21_s24, [#allocation5], %s3866_s26, %s3866_s26, %s3867_s27  }
  0x16   :  { %s3868_s9 = smov [#allocation8]  }
  0x17   :  { %s44_s10 = sshll.u32 %s3868_s9, 4  ;;  %s45_s10 = int_to_ptr.vmem [resolvable:$true] %s44_s10 }
  0x18   :  { %s3848_s11 = scalar_lea.vmem %s45_s10, 128  ;;  %p3853_p11 = scmp.lt.s32.totalorder %s45_s10, %s45_s10 }
  0x19   :  { %p3849_p10 = scmp.ne.s32.totalorder %s45_s10, %s3848_s11  ;;  %p3854_p12 = scmp.lt.s32.totalorder %s3848_s11, %s3848_s11 }
  0x1b   :  { %p3855_p13 = por %p3854_p12, %p3853_p11 }
  0x1d   :  { %p3856_p0 = pnand %p3855_p13, %p3849_p10 }
  0x1f   :  { %3859 = shalt.err (!%p3856_p0)
}
  0x20   :  { %s3869_s2 = smov 64   ;;  %s3870_s12 = smov 4  }
  0x21   :  { %50 = dma.hbm_to_vmem [thread:$0]  %s5059_s3, 128, %s45_s10, [#allocation7], %s3869_s2, %s3869_s2, %s3870_s12  }
  0x22   :  { %3860 = dma.done.wait [#allocation5], 8192  }
  0x23   :  { %3861 = vsyncadd [#allocation5], 4294959104 }
  0x24   :  { %3862 = dma.done.wait [#allocation7], 8320  }
  0x25   :  { %3863 = vsyncadd [#allocation7], 4294958976  ;;  %v5067_v0 = vmov 0   ;;  %v3368_v1 = vld [vmem:[#allocation4 + $0xe4] ss:$16 sps:$4 sm:$0xff]   ;;  %v3429_v44 = vld [vmem:[%s5056_s0 + $0x8] sm:$0xff]  }
  0x26   :  { %343 = vmatprep.mubr.bf16.mxu0 %v5067_v0  ;;  %416 = vmatprep.mubr.bf16.mxu1 %v5067_v0  ;;  %v3370_v2 = vld [vmem:[#allocation4 + $0xec] ss:$16 sps:$4 sm:$0xff]   ;;  %v3372_v3 = vld [vmem:[#allocation4 + $0xe0] ss:$16 sps:$4 sm:$0xff]   ;;  %v3373_v4 = vld [vmem:[#allocation4 + $0xe8] ss:$16 sps:$4 sm:$0xff]  }
  0x27   :  { %311 = vmatprep.subr.bf16.mxu0 %v3368_v1  ;;  %384 = vmatprep.subr.bf16.mxu1 %v3370_v2  ;;  %v3374_v5 = vld [vmem:[#allocation4 + $0xc4] ss:$16 sps:$4 sm:$0xff]   ;;  %v3376_v6 = vld [vmem:[#allocation4 + $0xcc] ss:$16 sps:$4 sm:$0xff]   ;;  %v3378_v7 = vld [vmem:[#allocation4 + $0xc0] ss:$16 sps:$4 sm:$0xff]  }
  0x28   :  { %312 = vmatpush1.bf16.msra.mxu0 %v3372_v3  ;;  %385 = vmatpush1.bf16.msra.mxu1 %v3373_v4  ;;  %v3379_v8 = vld [vmem:[#allocation4 + $0xc8] ss:$16 sps:$4 sm:$0xff]   ;;  %v3380_v9 = vld [vmem:[#allocation4 + $0xa4] ss:$16 sps:$4 sm:$0xff]   ;;  %v3382_v10 = vld [vmem:[#allocation4 + $0xac] ss:$16 sps:$4 sm:$0xff]  }
  0x29   :  { %313 = vmatprep.subr.bf16.mxu0 %v3374_v5  ;;  %386 = vmatprep.subr.bf16.mxu1 %v3376_v6  ;;  %v3384_v11 = vld [vmem:[#allocation4 + $0xa0] ss:$16 sps:$4 sm:$0xff]   ;;  %v3385_v12 = vld [vmem:[#allocation4 + $0xa8] ss:$16 sps:$4 sm:$0xff]   ;;  %v3386_v13 = vld [vmem:[#allocation4 + $0x84] ss:$16 sps:$4 sm:$0xff]   ;;  %v107_v6 = vlaneseq }
  0x2a   :  { %v3388_v14 = vld [vmem:[#allocation4 + $0x8c] ss:$16 sps:$4 sm:$0xff]   ;;  %v3390_v15 = vld [vmem:[#allocation4 + $0x80] ss:$16 sps:$4 sm:$0xff]   ;;  %v3391_v16 = vld [vmem:[#allocation4 + $0x88] ss:$16 sps:$4 sm:$0xff]  }
  0x2b   :  { %v3392_v17 = vld [vmem:[#allocation4 + $0x64] ss:$16 sps:$4 sm:$0xff]   ;;  %v3394_v18 = vld [vmem:[#allocation4 + $0x6c] ss:$16 sps:$4 sm:$0xff]   ;;  %v3396_v19 = vld [vmem:[#allocation4 + $0x60] ss:$16 sps:$4 sm:$0xff]  }
  0x2c   :  { %314 = vmatpush1.bf16.msra.mxu0 %v3378_v7  ;;  %387 = vmatpush1.bf16.msra.mxu1 %v3379_v8  ;;  %v3397_v20 = vld [vmem:[#allocation4 + $0x68] ss:$16 sps:$4 sm:$0xff]   ;;  %v3398_v21 = vld [vmem:[#allocation4 + $0x44] ss:$16 sps:$4 sm:$0xff]   ;;  %v3400_v22 = vld [vmem:[#allocation4 + $0x4c] ss:$16 sps:$4 sm:$0xff]  }
  0x2d   :  { %315 = vmatprep.subr.bf16.mxu0 %v3380_v9  ;;  %388 = vmatprep.subr.bf16.mxu1 %v3382_v10  ;;  %v3402_v23 = vld [vmem:[#allocation4 + $0x40] ss:$16 sps:$4 sm:$0xff]   ;;  %v3403_v24 = vld [vmem:[#allocation4 + $0x48] ss:$16 sps:$4 sm:$0xff]   ;;  %v3404_v25 = vld [vmem:[#allocation4 + $0x24] ss:$16 sps:$4 sm:$0xff]  }
  0x2e   :  { %v3406_v26 = vld [vmem:[#allocation4 + $0x2c] ss:$16 sps:$4 sm:$0xff]   ;;  %v3408_v27 = vld [vmem:[#allocation4 + $0x20] ss:$16 sps:$4 sm:$0xff]   ;;  %v3409_v28 = vld [vmem:[#allocation4 + $0x28] ss:$16 sps:$4 sm:$0xff]  }
  0x2f   :  { %v3410_v29 = vld [vmem:[#allocation4 + $0x4] ss:$16 sps:$4 sm:$0xff]   ;;  %v3412_v30 = vld [vmem:[#allocation4 + $0xc] ss:$16 sps:$4 sm:$0xff]   ;;  %v3414_v31 = vld [vmem:[#allocation4] ss:$16 sps:$4 sm:$0xff]  }
  0x30   :  { %316 = vmatpush1.bf16.msra.mxu0 %v3384_v11  ;;  %389 = vmatpush1.bf16.msra.mxu1 %v3385_v12  ;;  %v3415_v32 = vld [vmem:[#allocation4 + $0x8] ss:$16 sps:$4 sm:$0xff]   ;;  %v3920_v33 = vld [vmem:[#allocation6 + $0xe4] ss:$16 sps:$4 sm:$0xff]   ;;  %v3922_v34 = vld [vmem:[#allocation6 + $0xec] ss:$16 sps:$4 sm:$0xff]  }
  0x31   :  { %317 = vmatprep.subr.bf16.mxu0 %v3386_v13  ;;  %390 = vmatprep.subr.bf16.mxu1 %v3388_v14  ;;  %v3416_v35 = vld [vmem:[%s5056_s0] sm:$0xff]   ;;  %v3929_v37 = vld [vmem:[#allocation6 + $0xe8] ss:$16 sps:$4 sm:$0xff]   ;;  %v3935_v39 = vld [vmem:[#allocation6 + $0xcc] ss:$16 sps:$4 sm:$0xff]   ;;  %v4074_v7 = vshrl.u32 %v107_v6, 7 }
  0x32   :  { %v3927_v36 = vld [vmem:[#allocation6 + $0xe0] ss:$16 sps:$4 sm:$0xff]   ;;  %v3933_v38 = vld [vmem:[#allocation6 + $0xc4] ss:$16 sps:$4 sm:$0xff]   ;;  %v3941_v41 = vld [vmem:[#allocation6 + $0xc8] ss:$16 sps:$4 sm:$0xff]  }
  0x33   :  { %v3937_v40 = vld [vmem:[#allocation6 + $0xc0] ss:$16 sps:$4 sm:$0xff]   ;;  %v3945_v42 = vld [vmem:[#allocation6 + $0xa4] ss:$16 sps:$4 sm:$0xff]   ;;  %v3947_v43 = vld [vmem:[#allocation6 + $0xac] ss:$16 sps:$4 sm:$0xff]  }
  0x34   :  { %318 = vmatpush1.bf16.msra.mxu0 %v3390_v15  ;;  %391 = vmatpush1.bf16.msra.mxu1 %v3391_v16  ;;  %v3954_v45 = vld [vmem:[#allocation6 + $0xa0] ss:$16 sps:$4 sm:$0xff]   ;;  %v3956_v46 = vld [vmem:[#allocation6 + $0xa8] ss:$16 sps:$4 sm:$0xff]   ;;  %v3960_v47 = vld [vmem:[#allocation6 + $0x84] ss:$16 sps:$4 sm:$0xff]  }
  0x35   :  { %319 = vmatprep.subr.bf16.mxu0 %v3392_v17  ;;  %392 = vmatprep.subr.bf16.mxu1 %v3394_v18  ;;  %v3964_v48 = vld [vmem:[#allocation6 + $0x8c] ss:$16 sps:$4 sm:$0xff]   ;;  %v3966_v49 = vld [vmem:[#allocation6 + $0x80] ss:$16 sps:$4 sm:$0xff]   ;;  %v3968_v50 = vld [vmem:[#allocation6 + $0x88] ss:$16 sps:$4 sm:$0xff]  }
  0x36   :  { %v3972_v51 = vld [vmem:[#allocation6 + $0x64] ss:$16 sps:$4 sm:$0xff]   ;;  %v3976_v52 = vld [vmem:[#allocation6 + $0x6c] ss:$16 sps:$4 sm:$0xff]   ;;  %v3983_v54 = vld [vmem:[#allocation6 + $0x60] ss:$16 sps:$4 sm:$0xff]  }
  0x37   :  { %v3442_v53 = vld [vmem:[%s5056_s0 + $0x10] sm:$0xff]   ;;  %v3985_v55 = vld [vmem:[#allocation6 + $0x68] ss:$16 sps:$4 sm:$0xff]   ;;  %v3989_v57 = vld [vmem:[#allocation6 + $0x4c] ss:$16 sps:$4 sm:$0xff]   ;;  %5071 = vst [vmem:[#allocation11_spill] sm:$0xff] %v4074_v7 }
  0x38   :  { %320 = vmatpush1.bf16.msra.mxu0 %v3396_v19  ;;  %393 = vmatpush1.bf16.msra.mxu1 %v3397_v20  ;;  %v3987_v56 = vld [vmem:[#allocation6 + $0x44] ss:$16 sps:$4 sm:$0xff]   ;;  %v3995_v58 = vld [vmem:[#allocation6 + $0x40] ss:$16 sps:$4 sm:$0xff]   ;;  %v3997_v59 = vld [vmem:[#allocation6 + $0x48] ss:$16 sps:$4 sm:$0xff]  }
  0x39   :  { %321 = vmatprep.subr.bf16.mxu0 %v3398_v21  ;;  %394 = vmatprep.subr.bf16.mxu1 %v3400_v22  ;;  %v3999_v60 = vld [vmem:[#allocation6 + $0x24] ss:$16 sps:$4 sm:$0xff]   ;;  %v4001_v61 = vld [vmem:[#allocation6 + $0x2c] ss:$16 sps:$4 sm:$0xff]   ;;  %v4012_v63 = vld [vmem:[#allocation6 + $0x20] ss:$16 sps:$4 sm:$0xff]  }
  0x3a   :  { %v3455_v62 = vld [vmem:[%s5056_s0 + $0x18] sm:$0xff]   ;;  %v4016_v2 = vld [vmem:[#allocation6 + $0x4] ss:$16 sps:$4 sm:$0xff]   ;;  %v4024_v4 = vld [vmem:[#allocation6] ss:$16 sps:$4 sm:$0xff]   ;;  %v5064_v8 = vsub.s32 2, %v4074_v7 }
  0x3b   :  { %v4014_v1 = vld [vmem:[#allocation6 + $0x28] ss:$16 sps:$4 sm:$0xff]   ;;  %v4018_v3 = vld [vmem:[#allocation6 + $0xc] ss:$16 sps:$4 sm:$0xff]   ;;  %v5066_v9 = vsub.s32 0, %v4074_v7  ;;  %v5063_v10 = vsub.s32 3, %v4074_v7 }
  0x3c   :  { %322 = vmatpush1.bf16.msra.mxu0 %v3402_v23  ;;  %395 = vmatpush1.bf16.msra.mxu1 %v3403_v24  ;;  %v4026_v5 = vld [vmem:[#allocation6 + $0x8] ss:$16 sps:$4 sm:$0xff]   ;;  %v105_v11 = vld [vmem:[#allocation8] sm:$0xf]  ;;  %v5065_v15 = vsub.s32 1, %v4074_v7  ;;  %vm3873_vm0 = vmmov 0  }
  0x3d   :  { %323 = vmatprep.subr.bf16.mxu0 %v3404_v25  ;;  %396 = vmatprep.subr.bf16.mxu1 %v3406_v26  ;;  %v4085_v14 = vrot.slane %v105_v11, %v5064_v8  ;;  %v110_v18 = vrot.slane %v105_v11, %v5066_v9  ;;  %v4096_v19 = vrot.slane %v105_v11, %v5063_v10 }
  0x3e   :  { %v114_v22 = vrot.slane %v105_v11, %v5065_v15 }
  0x40   :  { %324 = vmatpush1.bf16.msra.mxu0 %v3408_v27  ;;  %397 = vmatpush1.bf16.msra.mxu1 %v3409_v28 }
  0x41   :  { %325 = vmatprep.subr.bf16.mxu0 %v3410_v29  ;;  %398 = vmatprep.subr.bf16.mxu1 %v3412_v30 }
  0x44   :  { %326 = vmatpush1.bf16.msra.mxu0 %v3414_v31  ;;  %399 = vmatpush1.bf16.msra.mxu1 %v3415_v32 }
  0x45   :  { %685 = vmatprep.subr.bf16.mxu0 %v3920_v33  ;;  %726 = vmatprep.subr.bf16.mxu1 %v3922_v34 }
  0x47   :  { %344 = vmatmul.mubr.bf16.vlgmr.msra.gmra.mxu0 %v3416_v35  ;;  %417 = vmatmul.mubr.bf16.vlgmr.msra.gmra.mxu1 %v3416_v35 }
  0x48   :  { %686 = vmatpush1.bf16.msra.mxu0 %v3927_v36  ;;  %727 = vmatpush1.bf16.msra.mxu1 %v3929_v37 }
  0x49   :  { %687 = vmatprep.subr.bf16.mxu0 %v3933_v38  ;;  %728 = vmatprep.subr.bf16.mxu1 %v3935_v39 }
  0x4a   :  { %353 = vmatprep.mubr.bf16.mxu0 %v5067_v0  ;;  %426 = vmatprep.mubr.bf16.mxu1 %v5067_v0 }
  0x4c   :  { %688 = vmatpush1.bf16.msra.mxu0 %v3937_v40  ;;  %729 = vmatpush1.bf16.msra.mxu1 %v3941_v41 }
  0x4d   :  { %689 = vmatprep.subr.bf16.mxu0 %v3945_v42  ;;  %730 = vmatprep.subr.bf16.mxu1 %v3947_v43 }
  0x4f   :  { %354 = vmatmul.mubr.bf16.gmra.mxu0 %v3429_v44  ;;  %427 = vmatmul.mubr.bf16.gmra.mxu1 %v3429_v44 }
  0x50   :  { %690 = vmatpush1.bf16.msra.mxu0 %v3954_v45  ;;  %731 = vmatpush1.bf16.msra.mxu1 %v3956_v46 }
  0x51   :  { %691 = vmatprep.subr.bf16.mxu0 %v3960_v47  ;;  %732 = vmatprep.subr.bf16.mxu1 %v3964_v48 }
  0x52   :  { %363 = vmatprep.mubr.bf16.mxu0 %v5067_v0  ;;  %436 = vmatprep.mubr.bf16.mxu1 %v5067_v0 }
  0x54   :  { %692 = vmatpush1.bf16.msra.mxu0 %v3966_v49  ;;  %733 = vmatpush1.bf16.msra.mxu1 %v3968_v50 }
  0x55   :  { %693 = vmatprep.subr.bf16.mxu0 %v3972_v51  ;;  %734 = vmatprep.subr.bf16.mxu1 %v3976_v52 }
  0x57   :  { %364 = vmatmul.mubr.bf16.gmra.mxu0 %v3442_v53  ;;  %437 = vmatmul.mubr.bf16.gmra.mxu1 %v3442_v53 }
  0x58   :  { %694 = vmatpush1.bf16.msra.mxu0 %v3983_v54  ;;  %735 = vmatpush1.bf16.msra.mxu1 %v3985_v55 }
  0x59   :  { %695 = vmatprep.subr.bf16.mxu0 %v3987_v56  ;;  %736 = vmatprep.subr.bf16.mxu1 %v3989_v57 }
  0x5a   :  { %373 = vmatprep.mubr.bf16.mxu0 %v5067_v0  ;;  %446 = vmatprep.mubr.bf16.mxu1 %v5067_v0 }
  0x5c   :  { %696 = vmatpush1.bf16.msra.mxu0 %v3995_v58  ;;  %737 = vmatpush1.bf16.msra.mxu1 %v3997_v59 }
  0x5d   :  { %697 = vmatprep.subr.bf16.mxu0 %v3999_v60  ;;  %738 = vmatprep.subr.bf16.mxu1 %v4001_v61 }
  0x5f   :  { %374 = vmatmul.mubr.bf16.gmra.mxu0 %v3455_v62  ;;  %447 = vmatmul.mubr.bf16.gmra.mxu1 %v3455_v62 }
  0x60   :  { %698 = vmatpush1.bf16.msra.mxu0 %v4012_v63  ;;  %739 = vmatpush1.bf16.msra.mxu1 %v4014_v1 }
  0x61   :  { %699 = vmatprep.subr.bf16.mxu0 %v4016_v2  ;;  %740 = vmatprep.subr.bf16.mxu1 %v4018_v3 }
  0x62   :  { %717 = vmatprep.mubr.bf16.mxu0 %v5067_v0  ;;  %758 = vmatprep.mubr.bf16.mxu1 %v5067_v0 }
  0x64   :  { %700 = vmatpush1.bf16.msra.mxu0 %v4024_v4  ;;  %741 = vmatpush1.bf16.msra.mxu1 %v4026_v5 }
  0x65   :  { %796 = vmatprep.subr.bf16.mxu0 %v3920_v33  ;;  %837 = vmatprep.subr.bf16.mxu1 %v3922_v34 }
  0x67   :  { %718 = vmatmul.mubr.bf16.vlgmr.msra.gmra.mxu0 %v5067_v0  ;;  %759 = vmatmul.mubr.bf16.vlgmr.msra.gmra.mxu1 %v5067_v0 }
  0x68   :  { %797 = vmatpush1.bf16.msra.mxu0 %v3927_v36  ;;  %838 = vmatpush1.bf16.msra.mxu1 %v3929_v37 }
  0x69   :  { %798 = vmatprep.subr.bf16.mxu0 %v3933_v38  ;;  %839 = vmatprep.subr.bf16.mxu1 %v3935_v39 }
  0x6a   :  { %828 = vmatprep.mubr.bf16.mxu0 %v5067_v0  ;;  %869 = vmatprep.mubr.bf16.mxu1 %v5067_v0 }
  0x6c   :  { %799 = vmatpush1.bf16.msra.mxu0 %v3937_v40  ;;  %840 = vmatpush1.bf16.msra.mxu1 %v3941_v41 }
  0x6d   :  { %800 = vmatprep.subr.bf16.mxu0 %v3945_v42  ;;  %841 = vmatprep.subr.bf16.mxu1 %v3947_v43 }
  0x70   :  { %801 = vmatpush1.bf16.msra.mxu0 %v3954_v45  ;;  %842 = vmatpush1.bf16.msra.mxu1 %v3956_v46 }
  0x71   :  { %802 = vmatprep.subr.bf16.mxu0 %v3960_v47  ;;  %843 = vmatprep.subr.bf16.mxu1 %v3964_v48 }
  0x74   :  { %803 = vmatpush1.bf16.msra.mxu0 %v3966_v49  ;;  %844 = vmatpush1.bf16.msra.mxu1 %v3968_v50 }
  0x75   :  { %804 = vmatprep.subr.bf16.mxu0 %v3972_v51  ;;  %845 = vmatprep.subr.bf16.mxu1 %v3976_v52 }
  0x78   :  { %805 = vmatpush1.bf16.msra.mxu0 %v3983_v54  ;;  %846 = vmatpush1.bf16.msra.mxu1 %v3985_v55 }
  0x79   :  { %806 = vmatprep.subr.bf16.mxu0 %v3987_v56  ;;  %847 = vmatprep.subr.bf16.mxu1 %v3989_v57 }
  0x7c   :  { %807 = vmatpush1.bf16.msra.mxu0 %v3995_v58  ;;  %848 = vmatpush1.bf16.msra.mxu1 %v3997_v59 }
  0x7d   :  { %808 = vmatprep.subr.bf16.mxu0 %v3999_v60  ;;  %849 = vmatprep.subr.bf16.mxu1 %v4001_v61 }
  0x80   :  { %809 = vmatpush1.bf16.msra.mxu0 %v4012_v63  ;;  %850 = vmatpush1.bf16.msra.mxu1 %v4014_v1 }
  0x81   :  { %810 = vmatprep.subr.bf16.mxu0 %v4016_v2  ;;  %851 = vmatprep.subr.bf16.mxu1 %v4018_v3 }
  0x84   :  { %811 = vmatpush1.bf16.msra.mxu0 %v4024_v4  ;;  %852 = vmatpush1.bf16.msra.mxu1 %v4026_v5 }
  0x85   :  { %908 = vmatprep.subr.bf16.mxu0 %v3920_v33  ;;  %949 = vmatprep.subr.bf16.mxu1 %v3922_v34 }
 0x107   :  { %v4079_v12 = vpop.f32.mrf.mxu0  ;;  %v4081_v13 = vpop.f32.mrf.mxu1 }
 0x109   :  { %v4088_v16 = vpop.f32.mrf.mxu0  ;;  %v4090_v17 = vpop.f32.mrf.mxu1 }
 0x10b   :  { %v349_v20 = vpop.f32.mrf.mxu0  ;;  %v422_v21 = vpop.f32.mrf.mxu1 }
 0x10c   :  { %v4100_v23 = vadd.f32 %v349_v20, %v110_v18  ;;  %v4103_v24 = vadd.f32 %v422_v21, %v4085_v14 }
 0x10d   :  { %v351_v25 = vpop.f32.mrf.mxu0  ;;  %v424_v26 = vpop.f32.mrf.mxu1 }
 0x10e   :  { %v4105_v27 = vadd.f32 %v351_v25, %v114_v22  ;;  %v4108_v28 = vadd.f32 %v424_v26, %v4096_v19 }
 0x10f   :  { %v355_v29 = vpop.f32.mrf.mxu0  ;;  %v428_v30 = vpop.f32.mrf.mxu1 }
 0x110   :  { %v4110_v31 = vadd.f32 %v355_v29, %v110_v18  ;;  %v4113_v32 = vadd.f32 %v428_v30, %v4085_v14 }
 0x111   :  { %v357_v35 = vpop.f32.mrf.mxu0  ;;  %v430_v44 = vpop.f32.mrf.mxu1 }
 0x112   :  { %v4115_v53 = vadd.f32 %v357_v35, %v114_v22  ;;  %v4118_v62 = vadd.f32 %v430_v44, %v4096_v19 }
 0x113   :  { %v359_v6 = vpop.f32.mrf.mxu0  ;;  %v432_v11 = vpop.f32.mrf.mxu1 }
 0x114   :  { %v4120_v20 = vadd.f32 %v359_v6, %v110_v18  ;;  %v4123_v21 = vadd.f32 %v432_v11, %v4085_v14 }
 0x115   :  { %v361_v25 = vpop.f32.mrf.mxu0  ;;  %v434_v26 = vpop.f32.mrf.mxu1 }
 0x116   :  { %5072 = vst [vmem:[#allocation12_spill] sm:$0xff] %v4120_v20  ;;  %5073 = vst [vmem:[#allocation13_spill] sm:$0xff] %v4123_v21  ;;  %v4125_v29 = vadd.f32 %v361_v25, %v114_v22  ;;  %v4128_v30 = vadd.f32 %v434_v26, %v4096_v19  ;;  %v419_v20 = vadd.f32 %v4081_v13, %v4085_v14 }
 0x117   :  { %v365_v10 = vpop.f32.mrf.mxu0  ;;  %v438_v35 = vpop.f32.mrf.mxu1 }
 0x118   :  { %5074 = vst [vmem:[#allocation14_spill] sm:$0xff] %v4125_v29  ;;  %5075 = vst [vmem:[#allocation15_spill] sm:$0xff] %v4128_v30  ;;  %v4130_v8 = vadd.f32 %v365_v10, %v110_v18  ;;  %v4133_v44 = vadd.f32 %v438_v35, %v4085_v14 }
 0x119   :  { %v367_v15 = vpop.f32.mrf.mxu0  ;;  %v440_v6 = vpop.f32.mrf.mxu1 }
 0x11a   :  { %5076 = vst [vmem:[#allocation16_spill] sm:$0xff] %v4130_v8  ;;  %5077 = vst [vmem:[#allocation17_spill] sm:$0xff] %v4133_v44  ;;  %v4135_v9 = vadd.f32 %v367_v15, %v114_v22  ;;  %v4138_v11 = vadd.f32 %v440_v6, %v4096_v19 }
 0x11b   :  { %v369_v0 = vpop.f32.mrf.mxu0  ;;  %v442_v25 = vpop.f32.mrf.mxu1 }
 0x11c   :  { %5078 = vst [vmem:[#allocation18_spill] sm:$0xff] %v4135_v9  ;;  %5079 = vst [vmem:[#allocation19_spill] sm:$0xff] %v4138_v11  ;;  %v4140_v7 = vadd.f32 %v369_v0, %v110_v18  ;;  %v4143_v26 = vadd.f32 %v442_v25, %v4085_v14 }
 0x11d   :  { %v371_v30 = vpop.f32.mrf.mxu0  ;;  %v444_v10 = vpop.f32.mrf.mxu1 }
 0x11e   :  { %5080 = vst [vmem:[#allocation20_spill] sm:$0xff] %v4140_v7  ;;  %5081 = vst [vmem:[#allocation21_spill] sm:$0xff] %v4143_v26  ;;  %v4145_v8 = vadd.f32 %v371_v30, %v114_v22  ;;  %v4148_v35 = vadd.f32 %v444_v10, %v4096_v19 }
 0x11f   :  { %v375_v44 = vpop.f32.mrf.mxu0  ;;  %v448_v15 = vpop.f32.mrf.mxu1 }
 0x120   :  { %5082 = vst [vmem:[#allocation22_spill] sm:$0xff] %v4145_v8  ;;  %5083 = vst [vmem:[#allocation23_spill] sm:$0xff] %v4148_v35  ;;  %v4150_v9 = vadd.f32 %v375_v44, %v110_v18  ;;  %v4153_v6 = vadd.f32 %v448_v15, %v4085_v14 }
 0x121   :  { %v377_v11 = vpop.f32.mrf.mxu0  ;;  %v450_v0 = vpop.f32.mrf.mxu1 }
 0x122   :  { %5084 = vst [vmem:[#allocation24_spill] sm:$0xff] %v4150_v9  ;;  %5085 = vst [vmem:[#allocation25_spill] sm:$0xff] %v4153_v6  ;;  %v4155_v7 = vadd.f32 %v377_v11, %v114_v22  ;;  %v4158_v25 = vadd.f32 %v450_v0, %v4096_v19  ;;  %v346_v9 = vadd.f32 %v4079_v12, %v110_v18 }
 0x123   :  { %v379_v26 = vpop.f32.mrf.mxu0  ;;  %v452_v30 = vpop.f32.mrf.mxu1  ;;  %v348_v0 = vadd.f32 %v4088_v16, %v114_v22 }
 0x124   :  { %5086 = vst [vmem:[#allocation26_spill] sm:$0xff] %v4155_v7  ;;  %5087 = vst [vmem:[#allocation27_spill] sm:$0xff] %v4158_v25  ;;  %v4160_v8 = vadd.f32 %v379_v26, %v110_v18  ;;  %v4163_v10 = vadd.f32 %v452_v30, %v4085_v14 }
 0x125   :  { %v381_v35 = vpop.f32.mrf.mxu0  ;;  %v454_v44 = vpop.f32.mrf.mxu1 }
 0x126   :  { %5088 = vst [vmem:[#allocation28_spill] sm:$0xff] %v4160_v8  ;;  %5089 = vst [vmem:[#allocation29_spill] sm:$0xff] %v4163_v10  ;;  %v4166_v15 = vadd.f32 %v381_v35, %v114_v22  ;;  %v4169_v6 = vadd.f32 %v454_v44, %v4096_v19 }
 0x127   :  { %v719_v11 = vpop.f32.mrf.mxu0  ;;  %v760_v7 = vpop.f32.mrf.mxu1 }
 0x128   :  { %5090 = vst [vmem:[#allocation30_spill] sm:$0xff] %v4169_v6  ;;  %v767_v25 = vadd.f32 %v719_v11, %v346_v9  ;;  %v769_v44 = vadd.f32 %v760_v7, %v419_v20  ;;  %v421_v6 = vadd.f32 %v4090_v17, %v4096_v19 }
 0x129   :  { %v721_v21 = vpop.f32.mrf.mxu0  ;;  %v762_v26 = vpop.f32.mrf.mxu1 }
 0x12a   :  { %v771_v8 = vmul.f32 0.5, %v767_v25  ;;  %v768_v29 = vadd.f32 %v721_v21, %v348_v0  ;;  %v770_v9 = vadd.f32 %v762_v26, %v421_v6 }
 0x12b   :  { %v723_v30 = vpop.f32.mrf.mxu0  ;;  %v764_v10 = vpop.f32.mrf.mxu1 }
 0x12c   :  { %3576 = vtanh.f32 %v771_v8  ;;  %v775_v12 = vmul.f32 0.5, %v768_v29  ;;  %v780_v16 = vmul.f32 0.5, %v770_v9  ;;  %v5091_v30 = vmov 0  }
 0x12d   :  { %v724_v18 = vpop.f32.mrf.mxu0  ;;  %v765_v35 = vpop.f32.mrf.mxu1 }
 0x12e   :  { %3578 = vtanh.f32 %v775_v12 }
 0x12f   :  { %3580 = vtanh.f32 %v769_v44 }
 0x130   :  { %3582 = vtanh.f32 %v780_v16 }
 0x139   :  { %v3577_v22 = vpop.eup %3576 }
 0x13a   :  { %v773_v25 = vadd.f32 1.0, %v3577_v22 }
 0x13b   :  { %v3579_v21 = vpop.eup %3578 }
 0x13c   :  { %v774_v11 = vmul.f32 0.5, %v773_v25  ;;  %v777_v10 = vadd.f32 1.0, %v3579_v21  ;;  %v3581_v13 = vpop.eup %3580 }
 0x13d   :  { %v3583_v7 = vpop.eup %3582 }
 0x13e   :  { %v778_v0 = vmul.f32 0.5, %v777_v10  ;;  %v785_v14 = vmul.f32 %v3581_v13, %v774_v11  ;;  %v782_v20 = vadd.f32 1.0, %v3583_v7 }
 0x140   :  { %v784_v8 = vmul.f32 0.0, %v778_v0  ;;  %v783_v17 = vmul.f32 0.5, %v782_v20 }
 0x142   :  { %v4176_v29 = vadd.f32 %v785_v14, %v784_v8 }
 0x144   :  { %3584 = vtanh.f32 %v4176_v29 }
 0x151   :  { %v3585_v19 = vpop.eup %3584 }
 0x152   :  { %v788_v6 = vmul.f32 %v3585_v19, %v783_v17 }
 0x154   :  { %v789_v26 = vpack.c.bf16 %v788_v6, %v788_v6 }
 0x156   :  { %790 = vst [vmem:[#allocation2] sm:$0xf] %v789_v26  ;;  %829 = vmatmul.mubr.bf16.vlgmr.msra.gmra.mxu0 %v789_v26  ;;  %870 = vmatmul.mubr.bf16.vlgmr.msra.gmra.mxu1 %v789_v26 }
 0x157   :  { %909 = vmatpush1.bf16.msra.mxu0 %v3927_v36  ;;  %950 = vmatpush1.bf16.msra.mxu1 %v3929_v37 }
 0x158   :  { %910 = vmatprep.subr.bf16.mxu0 %v3933_v38  ;;  %951 = vmatprep.subr.bf16.mxu1 %v3935_v39 }
 0x159   :  { %940 = vmatprep.mubr.bf16.mxu0 %v5091_v30  ;;  %981 = vmatprep.mubr.bf16.mxu1 %v5091_v30 }
 0x15b   :  { %911 = vmatpush1.bf16.msra.mxu0 %v3937_v40  ;;  %952 = vmatpush1.bf16.msra.mxu1 %v3941_v41 }
 0x15c   :  { %912 = vmatprep.subr.bf16.mxu0 %v3945_v42  ;;  %953 = vmatprep.subr.bf16.mxu1 %v3947_v43 }
 0x15f   :  { %913 = vmatpush1.bf16.msra.mxu0 %v3954_v45  ;;  %954 = vmatpush1.bf16.msra.mxu1 %v3956_v46 }
 0x160   :  { %914 = vmatprep.subr.bf16.mxu0 %v3960_v47  ;;  %955 = vmatprep.subr.bf16.mxu1 %v3964_v48 }
 0x163   :  { %915 = vmatpush1.bf16.msra.mxu0 %v3966_v49  ;;  %956 = vmatpush1.bf16.msra.mxu1 %v3968_v50 }
 0x164   :  { %916 = vmatprep.subr.bf16.mxu0 %v3972_v51  ;;  %957 = vmatprep.subr.bf16.mxu1 %v3976_v52 }
 0x167   :  { %917 = vmatpush1.bf16.msra.mxu0 %v3983_v54  ;;  %958 = vmatpush1.bf16.msra.mxu1 %v3985_v55 }
 0x168   :  { %918 = vmatprep.subr.bf16.mxu0 %v3987_v56  ;;  %959 = vmatprep.subr.bf16.mxu1 %v3989_v57 }
 0x16b   :  { %919 = vmatpush1.bf16.msra.mxu0 %v3995_v58  ;;  %960 = vmatpush1.bf16.msra.mxu1 %v3997_v59 }
 0x16c   :  { %920 = vmatprep.subr.bf16.mxu0 %v3999_v60  ;;  %961 = vmatprep.subr.bf16.mxu1 %v4001_v61 }
 0x16f   :  { %921 = vmatpush1.bf16.msra.mxu0 %v4012_v63  ;;  %962 = vmatpush1.bf16.msra.mxu1 %v4014_v1 }
 0x170   :  { %922 = vmatprep.subr.bf16.mxu0 %v4016_v2  ;;  %963 = vmatprep.subr.bf16.mxu1 %v4018_v3 }
 0x173   :  { %923 = vmatpush1.bf16.msra.mxu0 %v4024_v4  ;;  %964 = vmatpush1.bf16.msra.mxu1 %v4026_v5 }
 0x174   :  { %1020 = vmatprep.subr.bf16.mxu0 %v3920_v33  ;;  %1061 = vmatprep.subr.bf16.mxu1 %v3922_v34 }
 0x216   :  { %v830_v12 = vpop.f32.mrf.mxu0  ;;  %v871_v18 = vpop.f32.mrf.mxu1 }
 0x217   :  { %v878_v35 = vadd.f32 %v830_v12, %v4100_v23  ;;  %v880_v11 = vadd.f32 %v871_v18, %v4103_v24 }
 0x218   :  { %v832_v44 = vpop.f32.mrf.mxu0  ;;  %v873_v9 = vpop.f32.mrf.mxu1 }
 0x219   :  { %v882_v16 = vmul.f32 0.5, %v878_v35  ;;  %v879_v22 = vadd.f32 %v832_v44, %v4105_v27  ;;  %v881_v8 = vadd.f32 %v873_v9, %v4108_v28 }
 0x21a   :  { %v834_v25 = vpop.f32.mrf.mxu0  ;;  %v875_v21 = vpop.f32.mrf.mxu1 }
 0x21b   :  { %3586 = vtanh.f32 %v882_v16  ;;  %v886_v10 = vmul.f32 0.5, %v879_v22  ;;  %v891_v14 = vmul.f32 0.5, %v881_v8 }
 0x21c   :  { %v835_v0 = vpop.f32.mrf.mxu0  ;;  %v876_v13 = vpop.f32.mrf.mxu1 }
 0x21d   :  { %3588 = vtanh.f32 %v886_v10 }
 0x21e   :  { %3590 = vtanh.f32 %v880_v11 }
 0x21f   :  { %3592 = vtanh.f32 %v891_v14 }
 0x228   :  { %v3587_v7 = vpop.eup %3586 }
 0x229   :  { %v884_v23 = vadd.f32 1.0, %v3587_v7 }
 0x22a   :  { %v3589_v20 = vpop.eup %3588 }
 0x22b   :  { %v885_v17 = vmul.f32 0.5, %v884_v23  ;;  %v888_v19 = vadd.f32 1.0, %v3589_v20  ;;  %v3591_v27 = vpop.eup %3590 }
 0x22c   :  { %v3593_v18 = vpop.eup %3592 }
 0x22d   :  { %v889_v6 = vmul.f32 0.5, %v888_v19  ;;  %v896_v26 = vmul.f32 %v3591_v27, %v885_v17  ;;  %v893_v35 = vadd.f32 1.0, %v3593_v18 }
 0x22f   :  { %v895_v12 = vmul.f32 %v889_v6, %v4176_v29  ;;  %v894_v44 = vmul.f32 0.5, %v893_v35 }
 0x231   :  { %v4218_v24 = vadd.f32 %v896_v26, %v895_v12 }
 0x233   :  { %3594 = vtanh.f32 %v4218_v24 }
 0x240   :  { %v3595_v28 = vpop.eup %3594 }
 0x241   :  { %v899_v9 = vmul.f32 %v3595_v28, %v894_v44 }
 0x243   :  { %v900_v16 = vpack.c.bf16 %v899_v9, %v899_v9 }
 0x245   :  { %902 = vst [vmem:[#allocation2 + $0x4] sm:$0xf] %v900_v16  ;;  %941 = vmatmul.mubr.bf16.vlgmr.msra.gmra.mxu0 %v900_v16  ;;  %982 = vmatmul.mubr.bf16.vlgmr.msra.gmra.mxu1 %v900_v16 }
 0x246   :  { %1021 = vmatpush1.bf16.msra.mxu0 %v3927_v36  ;;  %1062 = vmatpush1.bf16.msra.mxu1 %v3929_v37 }
 0x247   :  { %1022 = vmatprep.subr.bf16.mxu0 %v3933_v38  ;;  %1063 = vmatprep.subr.bf16.mxu1 %v3935_v39 }
 0x248   :  { %1052 = vmatprep.mubr.bf16.mxu0 %v5091_v30  ;;  %1093 = vmatprep.mubr.bf16.mxu1 %v5091_v30 }
 0x24a   :  { %1023 = vmatpush1.bf16.msra.mxu0 %v3937_v40  ;;  %1064 = vmatpush1.bf16.msra.mxu1 %v3941_v41 }
 0x24b   :  { %1024 = vmatprep.subr.bf16.mxu0 %v3945_v42  ;;  %1065 = vmatprep.subr.bf16.mxu1 %v3947_v43 }
 0x24e   :  { %1025 = vmatpush1.bf16.msra.mxu0 %v3954_v45  ;;  %1066 = vmatpush1.bf16.msra.mxu1 %v3956_v46 }
 0x24f   :  { %1026 = vmatprep.subr.bf16.mxu0 %v3960_v47  ;;  %1067 = vmatprep.subr.bf16.mxu1 %v3964_v48 }
 0x252   :  { %1027 = vmatpush1.bf16.msra.mxu0 %v3966_v49  ;;  %1068 = vmatpush1.bf16.msra.mxu1 %v3968_v50 }
 0x253   :  { %1028 = vmatprep.subr.bf16.mxu0 %v3972_v51  ;;  %1069 = vmatprep.subr.bf16.mxu1 %v3976_v52 }
 0x256   :  { %1029 = vmatpush1.bf16.msra.mxu0 %v3983_v54  ;;  %1070 = vmatpush1.bf16.msra.mxu1 %v3985_v55 }
 0x257   :  { %1030 = vmatprep.subr.bf16.mxu0 %v3987_v56  ;;  %1071 = vmatprep.subr.bf16.mxu1 %v3989_v57 }
 0x25a   :  { %1031 = vmatpush1.bf16.msra.mxu0 %v3995_v58  ;;  %1072 = vmatpush1.bf16.msra.mxu1 %v3997_v59 }
 0x25b   :  { %1032 = vmatprep.subr.bf16.mxu0 %v3999_v60  ;;  %1073 = vmatprep.subr.bf16.mxu1 %v4001_v61 }
 0x25e   :  { %1033 = vmatpush1.bf16.msra.mxu0 %v4012_v63  ;;  %1074 = vmatpush1.bf16.msra.mxu1 %v4014_v1 }
 0x25f   :  { %1034 = vmatprep.subr.bf16.mxu0 %v4016_v2  ;;  %1075 = vmatprep.subr.bf16.mxu1 %v4018_v3 }
 0x262   :  { %1035 = vmatpush1.bf16.msra.mxu0 %v4024_v4  ;;  %1076 = vmatpush1.bf16.msra.mxu1 %v4026_v5 }
 0x263   :  { %1132 = vmatprep.subr.bf16.mxu0 %v3920_v33  ;;  %1173 = vmatprep.subr.bf16.mxu1 %v3922_v34 }
 0x305   :  { %v942_v29 = vpop.f32.mrf.mxu0  ;;  %v983_v22 = vpop.f32.mrf.mxu1 }
 0x306   :  { %v990_v25 = vadd.f32 %v942_v29, %v4110_v31  ;;  %v992_v14 = vadd.f32 %v983_v22, %v4113_v32 }
 0x307   :  { %v944_v21 = vpop.f32.mrf.mxu0  ;;  %v985_v11 = vpop.f32.mrf.mxu1 }
 0x308   :  { %v994_v10 = vmul.f32 0.5, %v990_v25  ;;  %v991_v0 = vadd.f32 %v944_v21, %v4115_v53  ;;  %v993_v33 = vadd.f32 %v985_v11, %v4118_v62 }
 0x309   :  { %v946_v13 = vpop.f32.mrf.mxu0  ;;  %v987_v8 = vpop.f32.mrf.mxu1 }
 0x30a   :  { %3596 = vtanh.f32 %v994_v10  ;;  %v998_v7 = vmul.f32 0.5, %v991_v0  ;;  %v1003_v34 = vmul.f32 0.5, %v993_v33 }
 0x30b   :  { %v947_v23 = vpop.f32.mrf.mxu0  ;;  %v988_v20 = vpop.f32.mrf.mxu1 }
 0x30c   :  { %3598 = vtanh.f32 %v998_v7 }
 0x30d   :  { %3600 = vtanh.f32 %v992_v14 }
 0x30e   :  { %3602 = vtanh.f32 %v1003_v34 }
 0x317   :  { %v3597_v17 = vpop.eup %3596 }
 0x318   :  { %v996_v31 = vadd.f32 1.0, %v3597_v17 }
 0x319   :  { %v3599_v19 = vpop.eup %3598 }
 0x31a   :  { %v997_v27 = vmul.f32 0.5, %v996_v31  ;;  %v1000_v6 = vadd.f32 1.0, %v3599_v19  ;;  %v3601_v53 = vpop.eup %3600  ;;  %v4309_v31 = vld [vmem:[#allocation6 + $0xe0] ss:$16 sps:$4 sm:$0xff]   ;;  %v4312_v19 = vld [vmem:[#allocation6 + $0xe8] ss:$16 sps:$4 sm:$0xff]  }
 0x31b   :  { %v3603_v35 = vpop.eup %3602 }
 0x31c   :  { %v1001_v26 = vmul.f32 0.5, %v1000_v6  ;;  %v1008_v12 = vmul.f32 %v3601_v53, %v997_v27  ;;  %v1005_v44 = vadd.f32 1.0, %v3603_v35  ;;  %v4315_v27 = vld [vmem:[#allocation6 + $0xc4] ss:$16 sps:$4 sm:$0xff]   ;;  %v4318_v6 = vld [vmem:[#allocation6 + $0xcc] ss:$16 sps:$4 sm:$0xff]  }
 0x31d   :  { %v4323_v53 = vld [vmem:[#allocation6 + $0xc0] ss:$16 sps:$4 sm:$0xff]   ;;  %v4338_v35 = vld [vmem:[#allocation6 + $0xa8] ss:$16 sps:$4 sm:$0xff]  }
 0x31e   :  { %v1007_v18 = vmul.f32 %v1001_v26, %v4218_v24  ;;  %v1006_v28 = vmul.f32 0.5, %v1005_v44  ;;  %v4326_v26 = vld [vmem:[#allocation6 + $0xc8] ss:$16 sps:$4 sm:$0xff]   ;;  %v4341_v44 = vld [vmem:[#allocation6 + $0x84] ss:$16 sps:$4 sm:$0xff]  }
 0x320   :  { %v4260_v32 = vadd.f32 %v1008_v12, %v1007_v18  ;;  %v4329_v12 = vld [vmem:[#allocation6 + $0xa4] ss:$16 sps:$4 sm:$0xff]   ;;  %v4332_v18 = vld [vmem:[#allocation6 + $0xac] ss:$16 sps:$4 sm:$0xff]  }
 0x322   :  { %3604 = vtanh.f32 %v4260_v32 }
 0x32f   :  { %v3605_v62 = vpop.eup %3604 }
 0x330   :  { %v1011_v9 = vmul.f32 %v3605_v62, %v1006_v28  ;;  %v4344_v28 = vld [vmem:[#allocation6 + $0x8c] ss:$16 sps:$4 sm:$0xff]   ;;  %v4347_v62 = vld [vmem:[#allocation6 + $0x80] ss:$16 sps:$4 sm:$0xff]  }
 0x332   :  { %v1012_v16 = vpack.c.bf16 %v1011_v9, %v1011_v9  ;;  %v4350_v9 = vld [vmem:[#allocation6 + $0x88] ss:$16 sps:$4 sm:$0xff]  }
 0x334   :  { %1014 = vst [vmem:[#allocation2 + $0x8] sm:$0xf] %v1012_v16  ;;  %1053 = vmatmul.mubr.bf16.vlgmr.msra.gmra.mxu0 %v1012_v16  ;;  %1094 = vmatmul.mubr.bf16.vlgmr.msra.gmra.mxu1 %v1012_v16  ;;  %v4353_v16 = vld [vmem:[#allocation6 + $0x64] ss:$16 sps:$4 sm:$0xff]  }
 0x335   :  { %1133 = vmatpush1.bf16.msra.mxu0 %v3927_v36  ;;  %1174 = vmatpush1.bf16.msra.mxu1 %v3929_v37  ;;  %v4295_v36 = vld [vmem:[#allocation6 + $0xe4] ss:$16 sps:$4 sm:$0xff]   ;;  %v4298_v37 = vld [vmem:[#allocation6 + $0xec] ss:$16 sps:$4 sm:$0xff]  }
 0x336   :  { %1134 = vmatprep.subr.bf16.mxu0 %v3933_v38  ;;  %1175 = vmatprep.subr.bf16.mxu1 %v3935_v39 }
 0x337   :  { %1164 = vmatprep.mubr.bf16.mxu0 %v5091_v30  ;;  %1205 = vmatprep.mubr.bf16.mxu1 %v5091_v30 }
 0x339   :  { %1135 = vmatpush1.bf16.msra.mxu0 %v3937_v40  ;;  %1176 = vmatpush1.bf16.msra.mxu1 %v3941_v41  ;;  %v5092_v40 = vld [vmem:[#allocation12_spill] sm:$0xff] }
 0x33a   :  { %1136 = vmatprep.subr.bf16.mxu0 %v3945_v42  ;;  %1177 = vmatprep.subr.bf16.mxu1 %v3947_v43 }
 0x33d   :  { %1137 = vmatpush1.bf16.msra.mxu0 %v3954_v45  ;;  %1178 = vmatpush1.bf16.msra.mxu1 %v3956_v46  ;;  %v5093_v46 = vld [vmem:[#allocation14_spill] sm:$0xff] }
 0x33e   :  { %1138 = vmatprep.subr.bf16.mxu0 %v3960_v47  ;;  %1179 = vmatprep.subr.bf16.mxu1 %v3964_v48 }
 0x341   :  { %1139 = vmatpush1.bf16.msra.mxu0 %v3966_v49  ;;  %1180 = vmatpush1.bf16.msra.mxu1 %v3968_v50  ;;  %v5094_v50 = vld [vmem:[#allocation13_spill] sm:$0xff] }
 0x342   :  { %1140 = vmatprep.subr.bf16.mxu0 %v3972_v51  ;;  %1181 = vmatprep.subr.bf16.mxu1 %v3976_v52 }
 0x345   :  { %1141 = vmatpush1.bf16.msra.mxu0 %v3983_v54  ;;  %1182 = vmatpush1.bf16.msra.mxu1 %v3985_v55 }
 0x346   :  { %1142 = vmatprep.subr.bf16.mxu0 %v3987_v56  ;;  %1183 = vmatprep.subr.bf16.mxu1 %v3989_v57  ;;  %v5095_v56 = vld [vmem:[#allocation15_spill] sm:$0xff] }
 0x349   :  { %1143 = vmatpush1.bf16.msra.mxu0 %v3995_v58  ;;  %1184 = vmatpush1.bf16.msra.mxu1 %v3997_v59 }
 0x34a   :  { %1144 = vmatprep.subr.bf16.mxu0 %v3999_v60  ;;  %1185 = vmatprep.subr.bf16.mxu1 %v4001_v61 }
 0x34d   :  { %1145 = vmatpush1.bf16.msra.mxu0 %v4012_v63  ;;  %1186 = vmatpush1.bf16.msra.mxu1 %v4014_v1 }
 0x34e   :  { %1146 = vmatprep.subr.bf16.mxu0 %v4016_v2  ;;  %1187 = vmatprep.subr.bf16.mxu1 %v4018_v3 }
 0x351   :  { %1147 = vmatpush1.bf16.msra.mxu0 %v4024_v4  ;;  %1188 = vmatpush1.bf16.msra.mxu1 %v4026_v5 }
 0x352   :  { %1244 = vmatprep.subr.bf16.mxu0 %v4295_v36  ;;  %1285 = vmatprep.subr.bf16.mxu1 %v4298_v37 }
 0x3f4   :  { %v1054_v38 = vpop.f32.mrf.mxu0  ;;  %v1095_v39 = vpop.f32.mrf.mxu1 }
 0x3f5   :  { %v1102_v41 = vadd.f32 %v1054_v38, %v5092_v40  ;;  %v1104_v51 = vadd.f32 %v1095_v39, %v5094_v50  ;;  %v4356_v38 = vld [vmem:[#allocation6 + $0x6c] ss:$16 sps:$4 sm:$0xff]   ;;  %v4359_v39 = vld [vmem:[#allocation6 + $0x60] ss:$16 sps:$4 sm:$0xff]   ;;  %v4362_v40 = vld [vmem:[#allocation6 + $0x68] ss:$16 sps:$4 sm:$0xff]  }
 0x3f6   :  { %v1056_v42 = vpop.f32.mrf.mxu0  ;;  %v1097_v43 = vpop.f32.mrf.mxu1  ;;  %v5099_v50 = vld [vmem:[#allocation19_spill] sm:$0xff] }
 0x3f7   :  { %v1106_v45 = vmul.f32 0.5, %v1102_v41  ;;  %v1103_v47 = vadd.f32 %v1056_v42, %v5093_v46  ;;  %v1105_v57 = vadd.f32 %v1097_v43, %v5095_v56  ;;  %v4365_v41 = vld [vmem:[#allocation6 + $0x44] ss:$16 sps:$4 sm:$0xff]   ;;  %v4368_v42 = vld [vmem:[#allocation6 + $0x4c] ss:$16 sps:$4 sm:$0xff]  }
 0x3f8   :  { %v1058_v48 = vpop.f32.mrf.mxu0  ;;  %v1099_v49 = vpop.f32.mrf.mxu1 }
 0x3f9   :  { %3606 = vtanh.f32 %v1106_v45  ;;  %v1110_v52 = vmul.f32 0.5, %v1103_v47  ;;  %v1115_v24 = vmul.f32 0.5, %v1105_v57 }
 0x3fa   :  { %v1059_v54 = vpop.f32.mrf.mxu0  ;;  %v1100_v55 = vpop.f32.mrf.mxu1 }
 0x3fb   :  { %3608 = vtanh.f32 %v1110_v52 }
 0x3fc   :  { %3610 = vtanh.f32 %v1104_v51 }
 0x3fd   :  { %3612 = vtanh.f32 %v1115_v24 }
 0x406   :  { %v3607_v29 = vpop.eup %3606 }
 0x407   :  { %v1108_v22 = vadd.f32 1.0, %v3607_v29 }
 0x408   :  { %v3609_v25 = vpop.eup %3608 }
 0x409   :  { %v1109_v21 = vmul.f32 0.5, %v1108_v22  ;;  %v1112_v11 = vadd.f32 1.0, %v3609_v25  ;;  %v3611_v10 = vpop.eup %3610 }
 0x40a   :  { %v3613_v7 = vpop.eup %3612 }
 0x40b   :  { %v1113_v0 = vmul.f32 0.5, %v1112_v11  ;;  %v1120_v13 = vmul.f32 %v3611_v10, %v1109_v21  ;;  %v1117_v23 = vadd.f32 1.0, %v3613_v7 }
 0x40d   :  { %v1119_v8 = vmul.f32 %v1113_v0, %v4260_v32  ;;  %v1118_v20 = vmul.f32 0.5, %v1117_v23  ;;  %v4335_v32 = vld [vmem:[#allocation6 + $0xa0] ss:$16 sps:$4 sm:$0xff]  }
 0x40f   :  { %v4306_v14 = vadd.f32 %v1120_v13, %v1119_v8 }
 0x411   :  { %3614 = vtanh.f32 %v4306_v14 }
 0x41e   :  { %v3615_v33 = vpop.eup %3614 }
 0x41f   :  { %v1123_v34 = vmul.f32 %v3615_v33, %v1118_v20  ;;  %v4416_v20 = vld [vmem:[#allocation6 + $0x48] ss:$16 sps:$4 sm:$0xff]   ;;  %v4419_v33 = vld [vmem:[#allocation6 + $0x24] ss:$16 sps:$4 sm:$0xff]  }
 0x421   :  { %v1124_v17 = vpack.c.bf16 %v1123_v34, %v1123_v34  ;;  %v4422_v34 = vld [vmem:[#allocation6 + $0x2c] ss:$16 sps:$4 sm:$0xff]  }
 0x423   :  { %1126 = vst [vmem:[#allocation2 + $0xc] sm:$0xf] %v1124_v17  ;;  %1165 = vmatmul.mubr.bf16.vlgmr.msra.gmra.mxu0 %v1124_v17  ;;  %1206 = vmatmul.mubr.bf16.vlgmr.msra.gmra.mxu1 %v1124_v17  ;;  %v4425_v17 = vld [vmem:[#allocation6 + $0x20] ss:$16 sps:$4 sm:$0xff]  }
 0x424   :  { %1245 = vmatpush1.bf16.msra.mxu0 %v4309_v31  ;;  %1286 = vmatpush1.bf16.msra.mxu1 %v4312_v19 }
 0x425   :  { %1246 = vmatprep.subr.bf16.mxu0 %v4315_v27  ;;  %1287 = vmatprep.subr.bf16.mxu1 %v4318_v6 }
 0x426   :  { %1276 = vmatprep.mubr.bf16.mxu0 %v5091_v30  ;;  %1317 = vmatprep.mubr.bf16.mxu1 %v5091_v30 }
 0x428   :  { %1247 = vmatpush1.bf16.msra.mxu0 %v4323_v53  ;;  %1288 = vmatpush1.bf16.msra.mxu1 %v4326_v26 }
 0x429   :  { %1248 = vmatprep.subr.bf16.mxu0 %v4329_v12  ;;  %1289 = vmatprep.subr.bf16.mxu1 %v4332_v18 }
 0x42c   :  { %1249 = vmatpush1.bf16.msra.mxu0 %v4335_v32  ;;  %1290 = vmatpush1.bf16.msra.mxu1 %v4338_v35 }
 0x42d   :  { %1250 = vmatprep.subr.bf16.mxu0 %v4341_v44  ;;  %1291 = vmatprep.subr.bf16.mxu1 %v4344_v28 }
 0x430   :  { %1251 = vmatpush1.bf16.msra.mxu0 %v4347_v62  ;;  %1292 = vmatpush1.bf16.msra.mxu1 %v4350_v9 }
 0x431   :  { %1252 = vmatprep.subr.bf16.mxu0 %v4353_v16  ;;  %1293 = vmatprep.subr.bf16.mxu1 %v4356_v38 }
 0x434   :  { %1253 = vmatpush1.bf16.msra.mxu0 %v4359_v39  ;;  %1294 = vmatpush1.bf16.msra.mxu1 %v4362_v40 }
 0x435   :  { %1254 = vmatprep.subr.bf16.mxu0 %v4365_v41  ;;  %1295 = vmatprep.subr.bf16.mxu1 %v4368_v42 }
 0x438   :  { %1255 = vmatpush1.bf16.msra.mxu0 %v3995_v58  ;;  %1296 = vmatpush1.bf16.msra.mxu1 %v3997_v59 }
 0x439   :  { %1256 = vmatprep.subr.bf16.mxu0 %v3999_v60  ;;  %1297 = vmatprep.subr.bf16.mxu1 %v4001_v61  ;;  %v5096_v60 = vld [vmem:[#allocation16_spill] sm:$0xff] }
 0x43c   :  { %1257 = vmatpush1.bf16.msra.mxu0 %v4012_v63  ;;  %1298 = vmatpush1.bf16.msra.mxu1 %v4014_v1  ;;  %v5097_v1 = vld [vmem:[#allocation18_spill] sm:$0xff] }
 0x43d   :  { %1258 = vmatprep.subr.bf16.mxu0 %v4016_v2  ;;  %1299 = vmatprep.subr.bf16.mxu1 %v4018_v3  ;;  %v5098_v3 = vld [vmem:[#allocation17_spill] sm:$0xff] }
 0x440   :  { %1259 = vmatpush1.bf16.msra.mxu0 %v4024_v4  ;;  %1300 = vmatpush1.bf16.msra.mxu1 %v4026_v5 }
 0x441   :  { %1356 = vmatprep.subr.bf16.mxu0 %v4295_v36  ;;  %1397 = vmatprep.subr.bf16.mxu1 %v4298_v37 }
 0x4e3   :  { %v1166_v58 = vpop.f32.mrf.mxu0  ;;  %v1207_v59 = vpop.f32.mrf.mxu1 }
 0x4e4   :  { %v1214_v61 = vadd.f32 %v1166_v58, %v5096_v60  ;;  %v1216_v4 = vadd.f32 %v1207_v59, %v5098_v3  ;;  %v4428_v58 = vld [vmem:[#allocation6 + $0x28] ss:$16 sps:$4 sm:$0xff]   ;;  %v4431_v59 = vld [vmem:[#allocation6 + $0x4] ss:$16 sps:$4 sm:$0xff]   ;;  %v4434_v60 = vld [vmem:[#allocation6 + $0xc] ss:$16 sps:$4 sm:$0xff]  }
 0x4e5   :  { %v1168_v43 = vpop.f32.mrf.mxu0  ;;  %v1209_v63 = vpop.f32.mrf.mxu1 }
 0x4e6   :  { %v1218_v45 = vmul.f32 0.5, %v1214_v61  ;;  %v1215_v46 = vadd.f32 %v1168_v43, %v5097_v1  ;;  %v1217_v51 = vadd.f32 %v1209_v63, %v5099_v50  ;;  %v4437_v61 = vld [vmem:[#allocation6] ss:$16 sps:$4 sm:$0xff]   ;;  %v4440_v43 = vld [vmem:[#allocation6 + $0x8] ss:$16 sps:$4 sm:$0xff]  }
 0x4e7   :  { %v1170_v2 = vpop.f32.mrf.mxu0  ;;  %v1211_v47 = vpop.f32.mrf.mxu1  ;;  %v5100_v1 = vld [vmem:[#allocation20_spill] sm:$0xff]  ;;  %v5102_v50 = vld [vmem:[#allocation21_spill] sm:$0xff] }
 0x4e8   :  { %3616 = vtanh.f32 %v1218_v45  ;;  %v1222_v48 = vmul.f32 0.5, %v1215_v46  ;;  %v1227_v52 = vmul.f32 0.5, %v1217_v51 }
 0x4e9   :  { %v1171_v5 = vpop.f32.mrf.mxu0  ;;  %v1212_v49 = vpop.f32.mrf.mxu1 }
 0x4ea   :  { %3618 = vtanh.f32 %v1222_v48 }
 0x4eb   :  { %3620 = vtanh.f32 %v1216_v4  ;;  %v5101_v4 = vld [vmem:[#allocation22_spill] sm:$0xff] }
 0x4ec   :  { %3622 = vtanh.f32 %v1227_v52 }
 0x4f5   :  { %v3617_v54 = vpop.eup %3616 }
 0x4f6   :  { %v1220_v55 = vadd.f32 1.0, %v3617_v54 }
 0x4f7   :  { %v3619_v56 = vpop.eup %3618 }
 0x4f8   :  { %v1221_v57 = vmul.f32 0.5, %v1220_v55  ;;  %v1224_v24 = vadd.f32 1.0, %v3619_v56  ;;  %v3621_v29 = vpop.eup %3620 }
 0x4f9   :  { %v3623_v10 = vpop.eup %3622 }
 0x4fa   :  { %v1225_v22 = vmul.f32 0.5, %v1224_v24  ;;  %v1232_v25 = vmul.f32 %v3621_v29, %v1221_v57  ;;  %v1229_v0 = vadd.f32 1.0, %v3623_v10 }
 0x4fc   :  { %v1231_v21 = vmul.f32 %v1225_v22, %v4306_v14  ;;  %v1230_v13 = vmul.f32 0.5, %v1229_v0  ;;  %v4413_v14 = vld [vmem:[#allocation6 + $0x40] ss:$16 sps:$4 sm:$0xff]  }
 0x4fe   :  { %v4388_v11 = vadd.f32 %v1232_v25, %v1231_v21 }
 0x500   :  { %3624 = vtanh.f32 %v4388_v11 }
 0x50d   :  { %v3625_v8 = vpop.eup %3624 }
 0x50e   :  { %v1235_v7 = vmul.f32 %v3625_v8, %v1230_v13 }
 0x510   :  { %v1236_v23 = vpack.c.bf16 %v1235_v7, %v1235_v7 }
 0x512   :  { %1238 = vst [vmem:[#allocation2 + $0x10] sm:$0xf] %v1236_v23  ;;  %1277 = vmatmul.mubr.bf16.vlgmr.msra.gmra.mxu0 %v1236_v23  ;;  %1318 = vmatmul.mubr.bf16.vlgmr.msra.gmra.mxu1 %v1236_v23 }
 0x513   :  { %1357 = vmatpush1.bf16.msra.mxu0 %v4309_v31  ;;  %1398 = vmatpush1.bf16.msra.mxu1 %v4312_v19 }
 0x514   :  { %1358 = vmatprep.subr.bf16.mxu0 %v4315_v27  ;;  %1399 = vmatprep.subr.bf16.mxu1 %v4318_v6 }
 0x515   :  { %1388 = vmatprep.mubr.bf16.mxu0 %v5091_v30  ;;  %1429 = vmatprep.mubr.bf16.mxu1 %v5091_v30 }
 0x517   :  { %1359 = vmatpush1.bf16.msra.mxu0 %v4323_v53  ;;  %1400 = vmatpush1.bf16.msra.mxu1 %v4326_v26 }
 0x518   :  { %1360 = vmatprep.subr.bf16.mxu0 %v4329_v12  ;;  %1401 = vmatprep.subr.bf16.mxu1 %v4332_v18 }
 0x51b   :  { %1361 = vmatpush1.bf16.msra.mxu0 %v4335_v32  ;;  %1402 = vmatpush1.bf16.msra.mxu1 %v4338_v35 }
 0x51c   :  { %1362 = vmatprep.subr.bf16.mxu0 %v4341_v44  ;;  %1403 = vmatprep.subr.bf16.mxu1 %v4344_v28 }
 0x51f   :  { %1363 = vmatpush1.bf16.msra.mxu0 %v4347_v62  ;;  %1404 = vmatpush1.bf16.msra.mxu1 %v4350_v9 }
 0x520   :  { %1364 = vmatprep.subr.bf16.mxu0 %v4353_v16  ;;  %1405 = vmatprep.subr.bf16.mxu1 %v4356_v38 }
 0x523   :  { %1365 = vmatpush1.bf16.msra.mxu0 %v4359_v39  ;;  %1406 = vmatpush1.bf16.msra.mxu1 %v4362_v40 }
 0x524   :  { %1366 = vmatprep.subr.bf16.mxu0 %v4365_v41  ;;  %1407 = vmatprep.subr.bf16.mxu1 %v4368_v42 }
 0x527   :  { %1367 = vmatpush1.bf16.msra.mxu0 %v4413_v14  ;;  %1408 = vmatpush1.bf16.msra.mxu1 %v4416_v20 }
 0x528   :  { %1368 = vmatprep.subr.bf16.mxu0 %v4419_v33  ;;  %1409 = vmatprep.subr.bf16.mxu1 %v4422_v34 }
 0x52b   :  { %1369 = vmatpush1.bf16.msra.mxu0 %v4425_v17  ;;  %1410 = vmatpush1.bf16.msra.mxu1 %v4428_v58 }
 0x52c   :  { %1370 = vmatprep.subr.bf16.mxu0 %v4431_v59  ;;  %1411 = vmatprep.subr.bf16.mxu1 %v4434_v60 }
 0x52f   :  { %1371 = vmatpush1.bf16.msra.mxu0 %v4437_v61  ;;  %1412 = vmatpush1.bf16.msra.mxu1 %v4440_v43 }
 0x530   :  { %1468 = vmatprep.subr.bf16.mxu0 %v4295_v36  ;;  %1509 = vmatprep.subr.bf16.mxu1 %v4298_v37  ;;  %v5103_v36 = vld [vmem:[#allocation23_spill] sm:$0xff] }
 0x5d2   :  { %v1278_v63 = vpop.f32.mrf.mxu0  ;;  %v1319_v45 = vpop.f32.mrf.mxu1 }
 0x5d3   :  { %v1326_v46 = vadd.f32 %v1278_v63, %v5100_v1  ;;  %v1328_v51 = vadd.f32 %v1319_v45, %v5102_v50 }
 0x5d4   :  { %v1280_v2 = vpop.f32.mrf.mxu0  ;;  %v1321_v47 = vpop.f32.mrf.mxu1 }
 0x5d5   :  { %v1330_v3 = vmul.f32 0.5, %v1326_v46  ;;  %v1327_v48 = vadd.f32 %v1280_v2, %v5101_v4  ;;  %v1329_v37 = vadd.f32 %v1321_v47, %v5103_v36  ;;  %v3482_v36 = vld [vmem:[#allocation4 + $0x1a4] ss:$16 sps:$4 sm:$0xff]  }
 0x5d6   :  { %v1282_v5 = vpop.f32.mrf.mxu0  ;;  %v1323_v49 = vpop.f32.mrf.mxu1 }
 0x5d7   :  { %3626 = vtanh.f32 %v1330_v3  ;;  %v1334_v52 = vmul.f32 0.5, %v1327_v48  ;;  %v1339_v56 = vmul.f32 0.5, %v1329_v37  ;;  %v3468_v5 = vld [vmem:[#allocation4 + $0x1e0] ss:$16 sps:$4 sm:$0xff]   ;;  %v3471_v49 = vld [vmem:[#allocation4 + $0x1e8] ss:$16 sps:$4 sm:$0xff]  }
 0x5d8   :  { %v1283_v54 = vpop.f32.mrf.mxu0  ;;  %v1324_v55 = vpop.f32.mrf.mxu1  ;;  %v3485_v37 = vld [vmem:[#allocation4 + $0x1ac] ss:$16 sps:$4 sm:$0xff]  }
 0x5d9   :  { %3628 = vtanh.f32 %v1334_v52  ;;  %v3479_v52 = vld [vmem:[#allocation4 + $0x1cc] ss:$16 sps:$4 sm:$0xff]   ;;  %v3474_v54 = vld [vmem:[#allocation4 + $0x1c0] ss:$16 sps:$4 sm:$0xff]   ;;  %v3477_v55 = vld [vmem:[#allocation4 + $0x1c8] ss:$16 sps:$4 sm:$0xff]  }
 0x5da   :  { %3630 = vtanh.f32 %v1328_v51  ;;  %v3476_v51 = vld [vmem:[#allocation4 + $0x1c4] ss:$16 sps:$4 sm:$0xff]  }
 0x5db   :  { %3632 = vtanh.f32 %v1339_v56  ;;  %v3480_v56 = vld [vmem:[#allocation4 + $0x1a0] ss:$16 sps:$4 sm:$0xff]  }
 0x5e4   :  { %v3627_v57 = vpop.eup %3626 }
 0x5e5   :  { %v1332_v24 = vadd.f32 1.0, %v3627_v57  ;;  %v3483_v57 = vld [vmem:[#allocation4 + $0x1a8] ss:$16 sps:$4 sm:$0xff]  }
 0x5e6   :  { %v3629_v29 = vpop.eup %3628 }
 0x5e7   :  { %v1333_v22 = vmul.f32 0.5, %v1332_v24  ;;  %v1336_v25 = vadd.f32 1.0, %v3629_v29  ;;  %v3631_v21 = vpop.eup %3630  ;;  %v3488_v24 = vld [vmem:[#allocation4 + $0x184] ss:$16 sps:$4 sm:$0xff]   ;;  %v3491_v29 = vld [vmem:[#allocation4 + $0x18c] ss:$16 sps:$4 sm:$0xff]  }
 0x5e8   :  { %v3633_v7 = vpop.eup %3632 }
 0x5e9   :  { %v1337_v10 = vmul.f32 0.5, %v1336_v25  ;;  %v1344_v0 = vmul.f32 %v3631_v21, %v1333_v22  ;;  %v1341_v23 = vadd.f32 1.0, %v3633_v7  ;;  %v3486_v22 = vld [vmem:[#allocation4 + $0x180] ss:$16 sps:$4 sm:$0xff]   ;;  %v3489_v25 = vld [vmem:[#allocation4 + $0x188] ss:$16 sps:$4 sm:$0xff]  }
 0x5ea   :  { %v3494_v21 = vld [vmem:[#allocation4 + $0x164] ss:$16 sps:$4 sm:$0xff]   ;;  %v3503_v7 = vld [vmem:[#allocation4 + $0x14c] ss:$16 sps:$4 sm:$0xff]  }
 0x5eb   :  { %v1343_v13 = vmul.f32 %v1337_v10, %v4388_v11  ;;  %v1342_v63 = vmul.f32 0.5, %v1341_v23  ;;  %v3497_v10 = vld [vmem:[#allocation4 + $0x16c] ss:$16 sps:$4 sm:$0xff]   ;;  %v3498_v23 = vld [vmem:[#allocation4 + $0x140] ss:$16 sps:$4 sm:$0xff]  }
 0x5ed   :  { %v4450_v8 = vadd.f32 %v1344_v0, %v1343_v13  ;;  %v3492_v0 = vld [vmem:[#allocation4 + $0x160] ss:$16 sps:$4 sm:$0xff]   ;;  %v3495_v13 = vld [vmem:[#allocation4 + $0x168] ss:$16 sps:$4 sm:$0xff]  }
 0x5ef   :  { %3634 = vtanh.f32 %v4450_v8 }
 0x5fc   :  { %v3635_v45 = vpop.eup %3634 }
 0x5fd   :  { %v1347_v1 = vmul.f32 %v3635_v45, %v1342_v63  ;;  %v3501_v63 = vld [vmem:[#allocation4 + $0x148] ss:$16 sps:$4 sm:$0xff]   ;;  %v3506_v45 = vld [vmem:[#allocation4 + $0x124] ss:$16 sps:$4 sm:$0xff]  }
 0x5ff   :  { %v1348_v46 = vpack.c.bf16 %v1347_v1, %v1347_v1  ;;  %v3509_v1 = vld [vmem:[#allocation4 + $0x12c] ss:$16 sps:$4 sm:$0xff]  }
 0x601   :  { %1350 = vst [vmem:[#allocation2 + $0x14] sm:$0xf] %v1348_v46  ;;  %1389 = vmatmul.mubr.bf16.vlgmr.msra.gmra.mxu0 %v1348_v46  ;;  %1430 = vmatmul.mubr.bf16.vlgmr.msra.gmra.mxu1 %v1348_v46  ;;  %v3504_v46 = vld [vmem:[#allocation4 + $0x120] ss:$16 sps:$4 sm:$0xff]  }
 0x602   :  { %1469 = vmatpush1.bf16.msra.mxu0 %v4309_v31  ;;  %1510 = vmatpush1.bf16.msra.mxu1 %v4312_v19  ;;  %v3470_v31 = vld [vmem:[#allocation4 + $0x1e4] ss:$16 sps:$4 sm:$0xff]   ;;  %v3473_v19 = vld [vmem:[#allocation4 + $0x1ec] ss:$16 sps:$4 sm:$0xff]  }
 0x603   :  { %1470 = vmatprep.subr.bf16.mxu0 %v4315_v27  ;;  %1511 = vmatprep.subr.bf16.mxu1 %v4318_v6 }
 0x604   :  { %1500 = vmatprep.mubr.bf16.mxu0 %v5091_v30  ;;  %1541 = vmatprep.mubr.bf16.mxu1 %v5091_v30 }
 0x606   :  { %1471 = vmatpush1.bf16.msra.mxu0 %v4323_v53  ;;  %1512 = vmatpush1.bf16.msra.mxu1 %v4326_v26  ;;  %v5104_v53 = vld [vmem:[#allocation24_spill] sm:$0xff] }
 0x607   :  { %1472 = vmatprep.subr.bf16.mxu0 %v4329_v12  ;;  %1513 = vmatprep.subr.bf16.mxu1 %v4332_v18 }
 0x60a   :  { %1473 = vmatpush1.bf16.msra.mxu0 %v4335_v32  ;;  %1514 = vmatpush1.bf16.msra.mxu1 %v4338_v35  ;;  %v5105_v35 = vld [vmem:[#allocation26_spill] sm:$0xff] }
 0x60b   :  { %1474 = vmatprep.subr.bf16.mxu0 %v4341_v44  ;;  %1515 = vmatprep.subr.bf16.mxu1 %v4344_v28 }
 0x60e   :  { %1475 = vmatpush1.bf16.msra.mxu0 %v4347_v62  ;;  %1516 = vmatpush1.bf16.msra.mxu1 %v4350_v9  ;;  %v5106_v9 = vld [vmem:[#allocation25_spill] sm:$0xff] }
 0x60f   :  { %1476 = vmatprep.subr.bf16.mxu0 %v4353_v16  ;;  %1517 = vmatprep.subr.bf16.mxu1 %v4356_v38 }
 0x612   :  { %1477 = vmatpush1.bf16.msra.mxu0 %v4359_v39  ;;  %1518 = vmatpush1.bf16.msra.mxu1 %v4362_v40 }
 0x613   :  { %1478 = vmatprep.subr.bf16.mxu0 %v4365_v41  ;;  %1519 = vmatprep.subr.bf16.mxu1 %v4368_v42  ;;  %v5107_v41 = vld [vmem:[#allocation27_spill] sm:$0xff] }
 0x616   :  { %1479 = vmatpush1.bf16.msra.mxu0 %v4413_v14  ;;  %1520 = vmatpush1.bf16.msra.mxu1 %v4416_v20 }
 0x617   :  { %1480 = vmatprep.subr.bf16.mxu0 %v4419_v33  ;;  %1521 = vmatprep.subr.bf16.mxu1 %v4422_v34 }
 0x61a   :  { %1481 = vmatpush1.bf16.msra.mxu0 %v4425_v17  ;;  %1522 = vmatpush1.bf16.msra.mxu1 %v4428_v58 }
 0x61b   :  { %1482 = vmatprep.subr.bf16.mxu0 %v4431_v59  ;;  %1523 = vmatprep.subr.bf16.mxu1 %v4434_v60 }
 0x61e   :  { %1483 = vmatpush1.bf16.msra.mxu0 %v4437_v61  ;;  %1524 = vmatpush1.bf16.msra.mxu1 %v4440_v43 }
 0x61f   :  { %1823 = vmatprep.subr.bf16.mxu0 %v3470_v31  ;;  %1896 = vmatprep.subr.bf16.mxu1 %v3473_v19  ;;  %v3507_v31 = vld [vmem:[#allocation4 + $0x128] ss:$16 sps:$4 sm:$0xff]   ;;  %v3512_v19 = vld [vmem:[#allocation4 + $0x104] ss:$16 sps:$4 sm:$0xff]  }
 0x6c1   :  { %v1390_v27 = vpop.f32.mrf.mxu0  ;;  %v1431_v6 = vpop.f32.mrf.mxu1 }
 0x6c2   :  { %v1438_v26 = vadd.f32 %v1390_v27, %v5104_v53  ;;  %v1440_v16 = vadd.f32 %v1431_v6, %v5106_v9  ;;  %v3515_v27 = vld [vmem:[#allocation4 + $0x10c] ss:$16 sps:$4 sm:$0xff]   ;;  %v3510_v6 = vld [vmem:[#allocation4 + $0x100] ss:$16 sps:$4 sm:$0xff]   ;;  %v3513_v53 = vld [vmem:[#allocation4 + $0x108] ss:$16 sps:$4 sm:$0xff]  }
 0x6c3   :  { %v1392_v12 = vpop.f32.mrf.mxu0  ;;  %v1433_v18 = vpop.f32.mrf.mxu1  ;;  %v4515_v9 = vld [vmem:[#allocation6 + $0x1cc] ss:$16 sps:$4 sm:$0xff]  }
 0x6c4   :  { %v1442_v32 = vmul.f32 0.5, %v1438_v26  ;;  %v1439_v44 = vadd.f32 %v1392_v12, %v5105_v35  ;;  %v1441_v42 = vadd.f32 %v1433_v18, %v5107_v41  ;;  %v3516_v26 = vld [vmem:[#allocation2] sm:$0xff]   ;;  %v3517_v12 = vld [vmem:[#allocation2 + $0x8] sm:$0xff]   ;;  %v3518_v18 = vld [vmem:[#allocation2 + $0x10] sm:$0xff]  }
 0x6c5   :  { %v1394_v28 = vpop.f32.mrf.mxu0  ;;  %v1435_v62 = vpop.f32.mrf.mxu1  ;;  %v4503_v35 = vld [vmem:[#allocation6 + $0x1ec] ss:$16 sps:$4 sm:$0xff]   ;;  %v4529_v41 = vld [vmem:[#allocation6 + $0x1a0] ss:$16 sps:$4 sm:$0xff]  }
 0x6c6   :  { %3636 = vtanh.f32 %v1442_v32  ;;  %v1446_v38 = vmul.f32 0.5, %v1439_v44  ;;  %v1451_v11 = vmul.f32 0.5, %v1441_v42  ;;  %v4501_v32 = vld [vmem:[#allocation6 + $0x1e4] ss:$16 sps:$4 sm:$0xff]   ;;  %v4505_v44 = vld [vmem:[#allocation6 + $0x1e0] ss:$16 sps:$4 sm:$0xff]  }
 0x6c7   :  { %v1395_v39 = vpop.f32.mrf.mxu0  ;;  %v1436_v40 = vpop.f32.mrf.mxu1  ;;  %v4507_v28 = vld [vmem:[#allocation6 + $0x1e8] ss:$16 sps:$4 sm:$0xff]   ;;  %v4513_v62 = vld [vmem:[#allocation6 + $0x1c4] ss:$16 sps:$4 sm:$0xff]  }
 0x6c8   :  { %3638 = vtanh.f32 %v1446_v38  ;;  %v4519_v38 = vld [vmem:[#allocation6 + $0x1c8] ss:$16 sps:$4 sm:$0xff]   ;;  %v4525_v39 = vld [vmem:[#allocation6 + $0x1a4] ss:$16 sps:$4 sm:$0xff]   ;;  %v4527_v40 = vld [vmem:[#allocation6 + $0x1ac] ss:$16 sps:$4 sm:$0xff]  }
 0x6c9   :  { %3640 = vtanh.f32 %v1440_v16  ;;  %v4517_v16 = vld [vmem:[#allocation6 + $0x1c0] ss:$16 sps:$4 sm:$0xff]   ;;  %v4531_v42 = vld [vmem:[#allocation6 + $0x1a8] ss:$16 sps:$4 sm:$0xff]  }
 0x6ca   :  { %3642 = vtanh.f32 %v1451_v11  ;;  %v4537_v11 = vld [vmem:[#allocation6 + $0x184] ss:$16 sps:$4 sm:$0xff]  }
 0x6d3   :  { %v3637_v14 = vpop.eup %3636 }
 0x6d4   :  { %v1444_v20 = vadd.f32 1.0, %v3637_v14  ;;  %v4539_v14 = vld [vmem:[#allocation6 + $0x18c] ss:$16 sps:$4 sm:$0xff]  }
 0x6d5   :  { %v3639_v33 = vpop.eup %3638 }
 0x6d6   :  { %v1445_v34 = vmul.f32 0.5, %v1444_v20  ;;  %v1448_v17 = vadd.f32 1.0, %v3639_v33  ;;  %v3641_v58 = vpop.eup %3640  ;;  %v4541_v20 = vld [vmem:[#allocation6 + $0x180] ss:$16 sps:$4 sm:$0xff]   ;;  %v4543_v33 = vld [vmem:[#allocation6 + $0x188] ss:$16 sps:$4 sm:$0xff]  }
 0x6d7   :  { %v3643_v2 = vpop.eup %3642 }
 0x6d8   :  { %v1449_v59 = vmul.f32 0.5, %v1448_v17  ;;  %v1456_v60 = vmul.f32 %v3641_v58, %v1445_v34  ;;  %v1453_v47 = vadd.f32 1.0, %v3643_v2  ;;  %v4549_v34 = vld [vmem:[#allocation6 + $0x164] ss:$16 sps:$4 sm:$0xff]   ;;  %v4551_v17 = vld [vmem:[#allocation6 + $0x16c] ss:$16 sps:$4 sm:$0xff]  }
 0x6d9   :  { %v4553_v58 = vld [vmem:[#allocation6 + $0x160] ss:$16 sps:$4 sm:$0xff]  }
 0x6da   :  { %v1455_v61 = vmul.f32 %v1449_v59, %v4450_v8  ;;  %v1454_v3 = vmul.f32 0.5, %v1453_v47  ;;  %v3500_v8 = vld [vmem:[#allocation4 + $0x144] ss:$16 sps:$4 sm:$0xff]   ;;  %v4555_v59 = vld [vmem:[#allocation6 + $0x168] ss:$16 sps:$4 sm:$0xff]  }
 0x6db   :  { %v4565_v2 = vld [vmem:[#allocation6 + $0x140] ss:$16 sps:$4 sm:$0xff]   ;;  %v4567_v47 = vld [vmem:[#allocation6 + $0x148] ss:$16 sps:$4 sm:$0xff]  }
 0x6dc   :  { %v4490_v43 = vadd.f32 %v1456_v60, %v1455_v61  ;;  %v4561_v60 = vld [vmem:[#allocation6 + $0x144] ss:$16 sps:$4 sm:$0xff]   ;;  %v4563_v61 = vld [vmem:[#allocation6 + $0x14c] ss:$16 sps:$4 sm:$0xff]  }
 0x6de   :  { %3644 = vtanh.f32 %v4490_v43 }
 0x6eb   :  { %v3645_v4 = vpop.eup %3644 }
 0x6ec   :  { %v1459_v48 = vmul.f32 %v3645_v4, %v1454_v3  ;;  %v4573_v3 = vld [vmem:[#allocation6 + $0x124] ss:$16 sps:$4 sm:$0xff]   ;;  %v4575_v4 = vld [vmem:[#allocation6 + $0x12c] ss:$16 sps:$4 sm:$0xff]  }
 0x6ee   :  { %v1460_v50 = vpack.c.bf16 %v1459_v48, %v1459_v48  ;;  %v4577_v48 = vld [vmem:[#allocation6 + $0x120] ss:$16 sps:$4 sm:$0xff]  }
 0x6f0   :  { %1462 = vst [vmem:[#allocation2 + $0x18] sm:$0xf] %v1460_v50  ;;  %1501 = vmatmul.mubr.bf16.vlgmr.msra.gmra.mxu0 %v1460_v50  ;;  %1542 = vmatmul.mubr.bf16.vlgmr.msra.gmra.mxu1 %v1460_v50  ;;  %v4585_v50 = vld [vmem:[#allocation6 + $0x10c] ss:$16 sps:$4 sm:$0xff]  }
 0x6f1   :  { %1824 = vmatpush1.bf16.msra.mxu0 %v3468_v5  ;;  %1897 = vmatpush1.bf16.msra.mxu1 %v3471_v49  ;;  %v4579_v5 = vld [vmem:[#allocation6 + $0x128] ss:$16 sps:$4 sm:$0xff]   ;;  %v4581_v49 = vld [vmem:[#allocation6 + $0x104] ss:$16 sps:$4 sm:$0xff]  }
 0x6f2   :  { %1825 = vmatprep.subr.bf16.mxu0 %v3476_v51  ;;  %1898 = vmatprep.subr.bf16.mxu1 %v3479_v52  ;;  %v4589_v51 = vld [vmem:[#allocation6 + $0x100] ss:$16 sps:$4 sm:$0xff]   ;;  %v4591_v52 = vld [vmem:[#allocation6 + $0x108] ss:$16 sps:$4 sm:$0xff]  }
 0x6f3   :  { %1855 = vmatprep.mubr.bf16.mxu0 %v5091_v30  ;;  %1928 = vmatprep.mubr.bf16.mxu1 %v5091_v30 }
 0x6f5   :  { %1826 = vmatpush1.bf16.msra.mxu0 %v3474_v54  ;;  %1899 = vmatpush1.bf16.msra.mxu1 %v3477_v55 }
 0x6f6   :  { %1827 = vmatprep.subr.bf16.mxu0 %v3482_v36  ;;  %1900 = vmatprep.subr.bf16.mxu1 %v3485_v37  ;;  %v5108_v36 = vld [vmem:[#allocation28_spill] sm:$0xff] }
 0x6f9   :  { %1828 = vmatpush1.bf16.msra.mxu0 %v3480_v56  ;;  %1901 = vmatpush1.bf16.msra.mxu1 %v3483_v57 }
 0x6fa   :  { %1829 = vmatprep.subr.bf16.mxu0 %v3488_v24  ;;  %1902 = vmatprep.subr.bf16.mxu1 %v3491_v29 }
 0x6fd   :  { %1830 = vmatpush1.bf16.msra.mxu0 %v3486_v22  ;;  %1903 = vmatpush1.bf16.msra.mxu1 %v3489_v25 }
 0x6fe   :  { %1831 = vmatprep.subr.bf16.mxu0 %v3494_v21  ;;  %1904 = vmatprep.subr.bf16.mxu1 %v3497_v10  ;;  %v5109_v21 = vld [vmem:[#allocation29_spill] sm:$0xff] }
 0x701   :  { %1832 = vmatpush1.bf16.msra.mxu0 %v3492_v0  ;;  %1905 = vmatpush1.bf16.msra.mxu1 %v3495_v13 }
 0x702   :  { %1833 = vmatprep.subr.bf16.mxu0 %v3500_v8  ;;  %1906 = vmatprep.subr.bf16.mxu1 %v3503_v7  ;;  %v5110_v7 = vld [vmem:[#allocation30_spill] sm:$0xff] }
 0x705   :  { %1834 = vmatpush1.bf16.msra.mxu0 %v3498_v23  ;;  %1907 = vmatpush1.bf16.msra.mxu1 %v3501_v63 }
 0x706   :  { %1835 = vmatprep.subr.bf16.mxu0 %v3506_v45  ;;  %1908 = vmatprep.subr.bf16.mxu1 %v3509_v1 }
 0x709   :  { %1836 = vmatpush1.bf16.msra.mxu0 %v3504_v46  ;;  %1909 = vmatpush1.bf16.msra.mxu1 %v3507_v31 }
 0x70a   :  { %1837 = vmatprep.subr.bf16.mxu0 %v3512_v19  ;;  %1910 = vmatprep.subr.bf16.mxu1 %v3515_v27 }
 0x70d   :  { %1838 = vmatpush1.bf16.msra.mxu0 %v3510_v6  ;;  %1911 = vmatpush1.bf16.msra.mxu1 %v3513_v53 }
 0x70e   :  { %2198 = vmatprep.subr.bf16.mxu0 %v4501_v32  ;;  %2239 = vmatprep.subr.bf16.mxu1 %v4503_v35 }
 0x710   :  { %1856 = vmatmul.mubr.bf16.vlgmr.msra.gmra.mxu0 %v3516_v26  ;;  %1929 = vmatmul.mubr.bf16.vlgmr.msra.gmra.mxu1 %v3516_v26 }
 0x711   :  { %1865 = vmatprep.mubr.bf16.mxu0 %v5091_v30  ;;  %1938 = vmatprep.mubr.bf16.mxu1 %v5091_v30 }
 0x712   :  { %2199 = vmatpush1.bf16.msra.mxu0 %v4505_v44  ;;  %2240 = vmatpush1.bf16.msra.mxu1 %v4507_v28 }
 0x713   :  { %2200 = vmatprep.subr.bf16.mxu0 %v4513_v62  ;;  %2241 = vmatprep.subr.bf16.mxu1 %v4515_v9 }
 0x716   :  { %2201 = vmatpush1.bf16.msra.mxu0 %v4517_v16  ;;  %2242 = vmatpush1.bf16.msra.mxu1 %v4519_v38 }
 0x717   :  { %2202 = vmatprep.subr.bf16.mxu0 %v4525_v39  ;;  %2243 = vmatprep.subr.bf16.mxu1 %v4527_v40 }
 0x718   :  { %1866 = vmatmul.mubr.bf16.gmra.mxu0 %v3517_v12  ;;  %1939 = vmatmul.mubr.bf16.gmra.mxu1 %v3517_v12 }
 0x719   :  { %1875 = vmatprep.mubr.bf16.mxu0 %v5091_v30  ;;  %1948 = vmatprep.mubr.bf16.mxu1 %v5091_v30 }
 0x71a   :  { %2203 = vmatpush1.bf16.msra.mxu0 %v4529_v41  ;;  %2244 = vmatpush1.bf16.msra.mxu1 %v4531_v42 }
 0x71b   :  { %2204 = vmatprep.subr.bf16.mxu0 %v4537_v11  ;;  %2245 = vmatprep.subr.bf16.mxu1 %v4539_v14 }
 0x71e   :  { %2205 = vmatpush1.bf16.msra.mxu0 %v4541_v20  ;;  %2246 = vmatpush1.bf16.msra.mxu1 %v4543_v33 }
 0x71f   :  { %2206 = vmatprep.subr.bf16.mxu0 %v4549_v34  ;;  %2247 = vmatprep.subr.bf16.mxu1 %v4551_v17 }
 0x720   :  { %1876 = vmatmul.mubr.bf16.gmra.mxu0 %v3518_v18  ;;  %1949 = vmatmul.mubr.bf16.gmra.mxu1 %v3518_v18 }
 0x721   :  { %1885 = vmatprep.mubr.bf16.mxu0 %v5091_v30  ;;  %1958 = vmatprep.mubr.bf16.mxu1 %v5091_v30 }
 0x722   :  { %2207 = vmatpush1.bf16.msra.mxu0 %v4553_v58  ;;  %2248 = vmatpush1.bf16.msra.mxu1 %v4555_v59 }
 0x723   :  { %2208 = vmatprep.subr.bf16.mxu0 %v4561_v60  ;;  %2249 = vmatprep.subr.bf16.mxu1 %v4563_v61 }
 0x726   :  { %2209 = vmatpush1.bf16.msra.mxu0 %v4565_v2  ;;  %2250 = vmatpush1.bf16.msra.mxu1 %v4567_v47 }
 0x727   :  { %2210 = vmatprep.subr.bf16.mxu0 %v4573_v3  ;;  %2251 = vmatprep.subr.bf16.mxu1 %v4575_v4 }
 0x72a   :  { %2211 = vmatpush1.bf16.msra.mxu0 %v4577_v48  ;;  %2252 = vmatpush1.bf16.msra.mxu1 %v4579_v5 }
 0x72b   :  { %2212 = vmatprep.subr.bf16.mxu0 %v4581_v49  ;;  %2253 = vmatprep.subr.bf16.mxu1 %v4585_v50 }
 0x72e   :  { %2213 = vmatpush1.bf16.msra.mxu0 %v4589_v51  ;;  %2254 = vmatpush1.bf16.msra.mxu1 %v4591_v52 }
 0x72f   :  { %2307 = vmatprep.subr.bf16.mxu0 %v4501_v32  ;;  %2348 = vmatprep.subr.bf16.mxu1 %v4503_v35 }
 0x7b0   :  { %v1502_v54 = vpop.f32.mrf.mxu0  ;;  %v1543_v55 = vpop.f32.mrf.mxu1 }
 0x7b1   :  { %v1550_v37 = vadd.f32 %v1502_v54, %v5108_v36  ;;  %v1552_v10 = vadd.f32 %v1543_v55, %v5109_v21 }
 0x7b2   :  { %v1504_v56 = vpop.f32.mrf.mxu0  ;;  %v1545_v57 = vpop.f32.mrf.mxu1 }
 0x7b3   :  { %v1554_v24 = vmul.f32 0.5, %v1550_v37  ;;  %v1551_v29 = vadd.f32 %v1504_v56, %v4166_v15  ;;  %v1553_v23 = vadd.f32 %v1545_v57, %v5110_v7 }
 0x7b4   :  { %v1506_v22 = vpop.f32.mrf.mxu0  ;;  %v1547_v25 = vpop.f32.mrf.mxu1 }
 0x7b5   :  { %3646 = vtanh.f32 %v1554_v24  ;;  %v1558_v0 = vmul.f32 0.5, %v1551_v29  ;;  %v1563_v63 = vmul.f32 0.5, %v1553_v23 }
 0x7b6   :  { %v1507_v13 = vpop.f32.mrf.mxu0  ;;  %v1548_v8 = vpop.f32.mrf.mxu1 }
 0x7b7   :  { %3648 = vtanh.f32 %v1558_v0 }
 0x7b8   :  { %3650 = vtanh.f32 %v1552_v10 }
 0x7b9   :  { %3652 = vtanh.f32 %v1563_v63 }
 0x7c2   :  { %v3647_v45 = vpop.eup %3646 }
 0x7c3   :  { %v1556_v1 = vadd.f32 1.0, %v3647_v45 }
 0x7c4   :  { %v3649_v46 = vpop.eup %3648 }
 0x7c5   :  { %v1557_v31 = vmul.f32 0.5, %v1556_v1  ;;  %v1560_v19 = vadd.f32 1.0, %v3649_v46  ;;  %v3651_v15 = vpop.eup %3650 }
 0x7c6   :  { %v3653_v12 = vpop.eup %3652 }
 0x7c7   :  { %v1561_v27 = vmul.f32 0.5, %v1560_v19  ;;  %v1568_v6 = vmul.f32 %v3651_v15, %v1557_v31  ;;  %v1565_v18 = vadd.f32 1.0, %v3653_v12  ;;  %v1617_v12 = vld [vmem:[#allocation8 + $0x4] sm:$0xf] }
 0x7c9   :  { %v1567_v53 = vmul.f32 %v1561_v27, %v4490_v43  ;;  %v1566_v54 = vmul.f32 0.5, %v1565_v18 }
 0x7cb   :  { %v1569_v26 = vadd.f32 %v1568_v6, %v1567_v53 }
 0x7cd   :  { %3654 = vtanh.f32 %v1569_v26 }
 0x7d0   :  { %v1857_v43 = vpop.f32.mrf.mxu0  ;;  %v1930_v57 = vpop.f32.mrf.mxu1 }
 0x7d2   :  { %v1859_v24 = vpop.f32.mrf.mxu0  ;;  %v1932_v29 = vpop.f32.mrf.mxu1 }
 0x7d4   :  { %v4642_v22 = vpop.f32.mrf.mxu0  ;;  %v4644_v25 = vpop.f32.mrf.mxu1 }
 0x7d6   :  { %v4646_v21 = vpop.f32.mrf.mxu0  ;;  %v4648_v10 = vpop.f32.mrf.mxu1 }
 0x7d8   :  { %v4650_v0 = vpop.f32.mrf.mxu0  ;;  %v4652_v13 = vpop.f32.mrf.mxu1 }
 0x7d9   :  { %5111 = vst [vmem:[#allocation12_spill] sm:$0xff] %v4652_v13 }
 0x7da   :  { %v3655_v55 = vpop.eup %3654  ;;  %v4654_v8 = vpop.f32.mrf.mxu0 }
 0x7db   :  { %v1571_v36 = vmul.f32 %v3655_v55, %v1566_v54  ;;  %5112 = vst [vmem:[#allocation14_spill] sm:$0xff] %v4654_v8  ;;  %v4656_v7 = vpop.f32.mrf.mxu1 }
 0x7dc   :  { %5113 = vst [vmem:[#allocation13_spill] sm:$0xff] %v4656_v7  ;;  %v4658_v23 = vpop.f32.mrf.mxu0 }
 0x7dd   :  { %v1572_v37 = vpack.c.bf16 %v1571_v36, %v1571_v36  ;;  %5114 = vst [vmem:[#allocation15_spill] sm:$0xff] %v4658_v23  ;;  %v4660_v63 = vpop.f32.mrf.mxu1 }
 0x7de   :  { %5115 = vst [vmem:[#allocation16_spill] sm:$0xff] %v4660_v63  ;;  %v4662_v45 = vpop.f32.mrf.mxu0 }
 0x7df   :  { %1574 = vst [vmem:[#allocation2 + $0x1c] sm:$0xf] %v1572_v37  ;;  %5116 = vst [vmem:[#allocation18_spill] sm:$0xff] %v4662_v45  ;;  %v4664_v1 = vpop.f32.mrf.mxu1  ;;  %v5130_v37 = vld [vmem:[#allocation11_spill] sm:$0xff] }
 0x7e0   :  { %5117 = vst [vmem:[#allocation17_spill] sm:$0xff] %v4664_v1  ;;  %v4666_v46 = vpop.f32.mrf.mxu0  ;;  %v5138_v13 = vsub.s32 3, %v5130_v37 }
 0x7e1   :  { %5118 = vst [vmem:[#allocation19_spill] sm:$0xff] %v4666_v46  ;;  %v4668_v31 = vpop.f32.mrf.mxu1 }
 0x7e2   :  { %5119 = vst [vmem:[#allocation20_spill] sm:$0xff] %v4668_v31  ;;  %v4670_v19 = vpop.f32.mrf.mxu0  ;;  %v4715_v8 = vrot.slane %v1617_v12, %v5138_v13 }
 0x7e3   :  { %5120 = vst [vmem:[#allocation22_spill] sm:$0xff] %v4670_v19  ;;  %v4672_v15 = vpop.f32.mrf.mxu1  ;;  %v5137_v19 = vsub.s32 2, %v5130_v37 }
 0x7e4   :  { %5121 = vst [vmem:[#allocation21_spill] sm:$0xff] %v4672_v15  ;;  %v4674_v27 = vpop.f32.mrf.mxu0 }
 0x7e5   :  { %5122 = vst [vmem:[#allocation23_spill] sm:$0xff] %v4674_v27  ;;  %v4676_v6 = vpop.f32.mrf.mxu1 }
 0x7e6   :  { %v3555_v56 = vld [vmem:[#allocation2 + $0x18] sm:$0xff]   ;;  %5123 = vst [vmem:[#allocation24_spill] sm:$0xff] %v4676_v6  ;;  %v4678_v53 = vpop.f32.mrf.mxu0 }
 0x7e7   :  { %1886 = vmatmul.mubr.bf16.gmra.mxu0 %v3555_v56  ;;  %1959 = vmatmul.mubr.bf16.gmra.mxu1 %v3555_v56  ;;  %5124 = vst [vmem:[#allocation26_spill] sm:$0xff] %v4678_v53  ;;  %v4680_v26 = vpop.f32.mrf.mxu1  ;;  %v5131_v56 = vsub.s32 0, %v5130_v37  ;;  %v5134_v53 = vsub.s32 1, %v5130_v37 }
 0x7e8   :  { %2230 = vmatprep.mubr.bf16.mxu0 %v5091_v30  ;;  %2271 = vmatprep.mubr.bf16.mxu1 %v5091_v30  ;;  %5125 = vst [vmem:[#allocation25_spill] sm:$0xff] %v4680_v26 }
 0x7e9   :  { %v4692_v15 = vrot.slane %v1617_v12, %v5131_v56  ;;  %v4700_v26 = vrot.slane %v1617_v12, %v5134_v53  ;;  %v4709_v56 = vrot.slane %v1617_v12, %v5137_v19 }
 0x7ef   :  { %2231 = vmatmul.mubr.bf16.vlgmr.msra.gmra.mxu0 %v5091_v30  ;;  %2272 = vmatmul.mubr.bf16.vlgmr.msra.gmra.mxu1 %v5091_v30 }
 0x7f0   :  { %2308 = vmatpush1.bf16.msra.mxu0 %v4505_v44  ;;  %2349 = vmatpush1.bf16.msra.mxu1 %v4507_v28 }
 0x7f1   :  { %2309 = vmatprep.subr.bf16.mxu0 %v4513_v62  ;;  %2350 = vmatprep.subr.bf16.mxu1 %v4515_v9 }
 0x7f2   :  { %2339 = vmatprep.mubr.bf16.mxu0 %v5091_v30  ;;  %2380 = vmatprep.mubr.bf16.mxu1 %v5091_v30 }
 0x7f4   :  { %2310 = vmatpush1.bf16.msra.mxu0 %v4517_v16  ;;  %2351 = vmatpush1.bf16.msra.mxu1 %v4519_v38 }
 0x7f5   :  { %2311 = vmatprep.subr.bf16.mxu0 %v4525_v39  ;;  %2352 = vmatprep.subr.bf16.mxu1 %v4527_v40 }
 0x7f8   :  { %2312 = vmatpush1.bf16.msra.mxu0 %v4529_v41  ;;  %2353 = vmatpush1.bf16.msra.mxu1 %v4531_v42 }
 0x7f9   :  { %2313 = vmatprep.subr.bf16.mxu0 %v4537_v11  ;;  %2354 = vmatprep.subr.bf16.mxu1 %v4539_v14 }
 0x7fc   :  { %2314 = vmatpush1.bf16.msra.mxu0 %v4541_v20  ;;  %2355 = vmatpush1.bf16.msra.mxu1 %v4543_v33 }
 0x7fd   :  { %2315 = vmatprep.subr.bf16.mxu0 %v4549_v34  ;;  %2356 = vmatprep.subr.bf16.mxu1 %v4551_v17 }
 0x800   :  { %2316 = vmatpush1.bf16.msra.mxu0 %v4553_v58  ;;  %2357 = vmatpush1.bf16.msra.mxu1 %v4555_v59 }
 0x801   :  { %2317 = vmatprep.subr.bf16.mxu0 %v4561_v60  ;;  %2358 = vmatprep.subr.bf16.mxu1 %v4563_v61 }
 0x804   :  { %2318 = vmatpush1.bf16.msra.mxu0 %v4565_v2  ;;  %2359 = vmatpush1.bf16.msra.mxu1 %v4567_v47 }
 0x805   :  { %2319 = vmatprep.subr.bf16.mxu0 %v4573_v3  ;;  %2360 = vmatprep.subr.bf16.mxu1 %v4575_v4 }
 0x808   :  { %2320 = vmatpush1.bf16.msra.mxu0 %v4577_v48  ;;  %2361 = vmatpush1.bf16.msra.mxu1 %v4579_v5 }
 0x809   :  { %2321 = vmatprep.subr.bf16.mxu0 %v4581_v49  ;;  %2362 = vmatprep.subr.bf16.mxu1 %v4585_v50 }
 0x80c   :  { %2322 = vmatpush1.bf16.msra.mxu0 %v4589_v51  ;;  %2363 = vmatpush1.bf16.msra.mxu1 %v4591_v52 }
 0x80d   :  { %2416 = vmatprep.subr.bf16.mxu0 %v4501_v32  ;;  %2457 = vmatprep.subr.bf16.mxu1 %v4503_v35 }
 0x8a7   :  { %v4682_v18 = vpop.f32.mrf.mxu0  ;;  %v4684_v54 = vpop.f32.mrf.mxu1 }
 0x8a8   :  { %5126 = vst [vmem:[#allocation27_spill] sm:$0xff] %v4682_v18  ;;  %5127 = vst [vmem:[#allocation28_spill] sm:$0xff] %v4684_v54  ;;  %v1858_v54 = vadd.f32 %v1857_v43, %v4692_v15 }
 0x8a9   :  { %v4686_v55 = vpop.f32.mrf.mxu0  ;;  %v4688_v36 = vpop.f32.mrf.mxu1 }
 0x8aa   :  { %5128 = vst [vmem:[#allocation29_spill] sm:$0xff] %v4686_v55  ;;  %5129 = vst [vmem:[#allocation30_spill] sm:$0xff] %v4688_v36 }
 0x8ab   :  { %v4694_v27 = vpop.f32.mrf.mxu0  ;;  %v4696_v6 = vpop.f32.mrf.mxu1 }
 0x8ac   :  { %5132 = vst [vmem:[#allocation11_spill] sm:$0xff] %v4694_v27  ;;  %5133 = vst [vmem:[#allocation31_spill] sm:$0xff] %v4696_v6  ;;  %v1860_v27 = vadd.f32 %v1859_v24, %v4700_v26  ;;  %v1933_v24 = vadd.f32 %v1932_v29, %v4715_v8 }
 0x8ad   :  { %v4702_v31 = vpop.f32.mrf.mxu0  ;;  %v4704_v18 = vpop.f32.mrf.mxu1 }
 0x8ae   :  { %5135 = vst [vmem:[#allocation32_spill] sm:$0xff] %v4702_v31  ;;  %5136 = vst [vmem:[#allocation33_spill] sm:$0xff] %v4704_v18  ;;  %v1931_v31 = vadd.f32 %v1930_v57, %v4709_v56 }
 0x8af   :  { %v2232_v55 = vpop.f32.mrf.mxu0  ;;  %v2273_v36 = vpop.f32.mrf.mxu1 }
 0x8b0   :  { %v2280_v46 = vadd.f32 %v2232_v55, %v1858_v54  ;;  %v2282_v19 = vadd.f32 %v2273_v36, %v1931_v31  ;;  %v1862_v36 = vadd.f32 %v4642_v22, %v4692_v15 }
 0x8b1   :  { %v2234_v6 = vpop.f32.mrf.mxu0  ;;  %v2275_v1 = vpop.f32.mrf.mxu1 }
 0x8b2   :  { %v2284_v63 = vmul.f32 0.5, %v2280_v46  ;;  %v2281_v53 = vadd.f32 %v2234_v6, %v1860_v27  ;;  %v2283_v54 = vadd.f32 %v2275_v1, %v1933_v24  ;;  %v1864_v24 = vadd.f32 %v4646_v21, %v4700_v26 }
 0x8b3   :  { %v2236_v45 = vpop.f32.mrf.mxu0  ;;  %v2277_v23 = vpop.f32.mrf.mxu1  ;;  %v1937_v21 = vadd.f32 %v4648_v10, %v4715_v8 }
 0x8b4   :  { %3656 = vtanh.f32 %v2284_v63  ;;  %v2288_v18 = vmul.f32 0.5, %v2281_v53  ;;  %v2293_v46 = vmul.f32 0.5, %v2283_v54 }
 0x8b5   :  { %v2237_v43 = vpop.f32.mrf.mxu0  ;;  %v2278_v7 = vpop.f32.mrf.mxu1 }
 0x8b6   :  { %3658 = vtanh.f32 %v2288_v18 }
 0x8b7   :  { %3660 = vtanh.f32 %v2282_v19 }
 0x8b8   :  { %3662 = vtanh.f32 %v2293_v46 }
 0x8c1   :  { %v3657_v27 = vpop.eup %3656 }
 0x8c2   :  { %v2286_v45 = vadd.f32 1.0, %v3657_v27 }
 0x8c3   :  { %v3659_v23 = vpop.eup %3658 }
 0x8c4   :  { %v2287_v6 = vmul.f32 0.5, %v2286_v45  ;;  %v2290_v57 = vadd.f32 1.0, %v3659_v23  ;;  %v3661_v55 = vpop.eup %3660  ;;  %v1935_v45 = vadd.f32 %v4644_v25, %v4709_v56 }
 0x8c5   :  { %v3663_v13 = vpop.eup %3662 }
 0x8c6   :  { %v2291_v63 = vmul.f32 0.5, %v2290_v57  ;;  %v2298_v53 = vmul.f32 %v3661_v55, %v2287_v6  ;;  %v2295_v31 = vadd.f32 1.0, %v3663_v13 }
 0x8c8   :  { %v2297_v7 = vmul.f32 0.0, %v2291_v63  ;;  %v2296_v29 = vmul.f32 0.5, %v2295_v31 }
 0x8ca   :  { %v4718_v37 = vadd.f32 %v2298_v53, %v2297_v7 }
 0x8cc   :  { %3664 = vtanh.f32 %v4718_v37 }
 0x8d9   :  { %v3665_v12 = vpop.eup %3664 }
 0x8da   :  { %v2301_v1 = vmul.f32 %v3665_v12, %v2296_v29 }
 0x8dc   :  { %v2306_v18 = vpack.c.bf16 %v2301_v1, %v2301_v1 }
 0x8de   :  { %2340 = vmatmul.mubr.bf16.vlgmr.msra.gmra.mxu0 %v2306_v18  ;;  %2381 = vmatmul.mubr.bf16.vlgmr.msra.gmra.mxu1 %v2306_v18 }
 0x8df   :  { %2417 = vmatpush1.bf16.msra.mxu0 %v4505_v44  ;;  %2458 = vmatpush1.bf16.msra.mxu1 %v4507_v28 }
 0x8e0   :  { %2418 = vmatprep.subr.bf16.mxu0 %v4513_v62  ;;  %2459 = vmatprep.subr.bf16.mxu1 %v4515_v9 }
 0x8e1   :  { %2448 = vmatprep.mubr.bf16.mxu0 %v5091_v30  ;;  %2489 = vmatprep.mubr.bf16.mxu1 %v5091_v30 }
 0x8e3   :  { %2419 = vmatpush1.bf16.msra.mxu0 %v4517_v16  ;;  %2460 = vmatpush1.bf16.msra.mxu1 %v4519_v38 }
 0x8e4   :  { %2420 = vmatprep.subr.bf16.mxu0 %v4525_v39  ;;  %2461 = vmatprep.subr.bf16.mxu1 %v4527_v40 }
 0x8e7   :  { %2421 = vmatpush1.bf16.msra.mxu0 %v4529_v41  ;;  %2462 = vmatpush1.bf16.msra.mxu1 %v4531_v42 }
 0x8e8   :  { %2422 = vmatprep.subr.bf16.mxu0 %v4537_v11  ;;  %2463 = vmatprep.subr.bf16.mxu1 %v4539_v14 }
 0x8eb   :  { %2423 = vmatpush1.bf16.msra.mxu0 %v4541_v20  ;;  %2464 = vmatpush1.bf16.msra.mxu1 %v4543_v33 }
 0x8ec   :  { %2424 = vmatprep.subr.bf16.mxu0 %v4549_v34  ;;  %2465 = vmatprep.subr.bf16.mxu1 %v4551_v17 }
 0x8ef   :  { %2425 = vmatpush1.bf16.msra.mxu0 %v4553_v58  ;;  %2466 = vmatpush1.bf16.msra.mxu1 %v4555_v59 }
 0x8f0   :  { %2426 = vmatprep.subr.bf16.mxu0 %v4561_v60  ;;  %2467 = vmatprep.subr.bf16.mxu1 %v4563_v61 }
 0x8f3   :  { %2427 = vmatpush1.bf16.msra.mxu0 %v4565_v2  ;;  %2468 = vmatpush1.bf16.msra.mxu1 %v4567_v47 }
 0x8f4   :  { %2428 = vmatprep.subr.bf16.mxu0 %v4573_v3  ;;  %2469 = vmatprep.subr.bf16.mxu1 %v4575_v4 }
 0x8f7   :  { %2429 = vmatpush1.bf16.msra.mxu0 %v4577_v48  ;;  %2470 = vmatpush1.bf16.msra.mxu1 %v4579_v5 }
 0x8f8   :  { %2430 = vmatprep.subr.bf16.mxu0 %v4581_v49  ;;  %2471 = vmatprep.subr.bf16.mxu1 %v4585_v50 }
 0x8fb   :  { %2431 = vmatpush1.bf16.msra.mxu0 %v4589_v51  ;;  %2472 = vmatpush1.bf16.msra.mxu1 %v4591_v52 }
 0x8fc   :  { %2525 = vmatprep.subr.bf16.mxu0 %v4501_v32  ;;  %2566 = vmatprep.subr.bf16.mxu1 %v4503_v35 }
 0x99e   :  { %v2341_v43 = vpop.f32.mrf.mxu0  ;;  %v2382_v19 = vpop.f32.mrf.mxu1 }
 0x99f   :  { %v2389_v54 = vadd.f32 %v2341_v43, %v1862_v36  ;;  %v2391_v55 = vadd.f32 %v2382_v19, %v1935_v45 }
 0x9a0   :  { %v2343_v46 = vpop.f32.mrf.mxu0  ;;  %v2384_v27 = vpop.f32.mrf.mxu1 }
 0x9a1   :  { %v2393_v23 = vmul.f32 0.5, %v2389_v54  ;;  %v2390_v6 = vadd.f32 %v2343_v46, %v1864_v24  ;;  %v2392_v13 = vadd.f32 %v2384_v27, %v1937_v21 }
 0x9a2   :  { %v2345_v57 = vpop.f32.mrf.mxu0  ;;  %v2386_v63 = vpop.f32.mrf.mxu1 }
 0x9a3   :  { %3666 = vtanh.f32 %v2393_v23  ;;  %v2397_v7 = vmul.f32 0.5, %v2390_v6  ;;  %v2402_v31 = vmul.f32 0.5, %v2392_v13  ;;  %v5140_v13 = vld [vmem:[#allocation12_spill] sm:$0xff] }
 0x9a4   :  { %v2346_v53 = vpop.f32.mrf.mxu0  ;;  %v2387_v22 = vpop.f32.mrf.mxu1 }
 0x9a5   :  { %3668 = vtanh.f32 %v2397_v7 }
 0x9a6   :  { %3670 = vtanh.f32 %v2391_v55  ;;  %v5139_v55 = vld [vmem:[#allocation14_spill] sm:$0xff] }
 0x9a7   :  { %3672 = vtanh.f32 %v2402_v31  ;;  %v1870_v7 = vadd.f32 %v5139_v55, %v4700_v26  ;;  %v1941_v31 = vadd.f32 %v5140_v13, %v4709_v56 }
 0x9b0   :  { %v3667_v29 = vpop.eup %3666 }
 0x9b1   :  { %v2395_v12 = vadd.f32 1.0, %v3667_v29 }
 0x9b2   :  { %v3669_v1 = vpop.eup %3668 }
 0x9b3   :  { %v2396_v25 = vmul.f32 0.5, %v2395_v12  ;;  %v2399_v18 = vadd.f32 1.0, %v3669_v1  ;;  %v3671_v36 = vpop.eup %3670 }
 0x9b4   :  { %v3673_v46 = vpop.eup %3672 }
 0x9b5   :  { %v2400_v43 = vmul.f32 0.5, %v2399_v18  ;;  %v2407_v24 = vmul.f32 %v3671_v36, %v2396_v25  ;;  %v2404_v45 = vadd.f32 1.0, %v3673_v46 }
 0x9b7   :  { %v2406_v19 = vmul.f32 %v2400_v43, %v4718_v37  ;;  %v2405_v10 = vmul.f32 0.5, %v2404_v45  ;;  %v1868_v37 = vadd.f32 %v4650_v0, %v4692_v15 }
 0x9b9   :  { %v4764_v54 = vadd.f32 %v2407_v24, %v2406_v19  ;;  %v5141_v24 = vld [vmem:[#allocation13_spill] sm:$0xff] }
 0x9ba   :  { %v1943_v19 = vadd.f32 %v5141_v24, %v4715_v8 }
 0x9bb   :  { %3674 = vtanh.f32 %v4764_v54 }
 0x9c8   :  { %v3675_v27 = vpop.eup %3674 }
 0x9c9   :  { %v2410_v23 = vmul.f32 %v3675_v27, %v2405_v10 }
 0x9cb   :  { %v2415_v6 = vpack.c.bf16 %v2410_v23, %v2410_v23 }
 0x9cd   :  { %2449 = vmatmul.mubr.bf16.vlgmr.msra.gmra.mxu0 %v2415_v6  ;;  %2490 = vmatmul.mubr.bf16.vlgmr.msra.gmra.mxu1 %v2415_v6 }
 0x9ce   :  { %2526 = vmatpush1.bf16.msra.mxu0 %v4505_v44  ;;  %2567 = vmatpush1.bf16.msra.mxu1 %v4507_v28 }
 0x9cf   :  { %2527 = vmatprep.subr.bf16.mxu0 %v4513_v62  ;;  %2568 = vmatprep.subr.bf16.mxu1 %v4515_v9 }
 0x9d0   :  { %2557 = vmatprep.mubr.bf16.mxu0 %v5091_v30  ;;  %2598 = vmatprep.mubr.bf16.mxu1 %v5091_v30 }
 0x9d2   :  { %2528 = vmatpush1.bf16.msra.mxu0 %v4517_v16  ;;  %2569 = vmatpush1.bf16.msra.mxu1 %v4519_v38 }
 0x9d3   :  { %2529 = vmatprep.subr.bf16.mxu0 %v4525_v39  ;;  %2570 = vmatprep.subr.bf16.mxu1 %v4527_v40 }
 0x9d6   :  { %2530 = vmatpush1.bf16.msra.mxu0 %v4529_v41  ;;  %2571 = vmatpush1.bf16.msra.mxu1 %v4531_v42 }
 0x9d7   :  { %2531 = vmatprep.subr.bf16.mxu0 %v4537_v11  ;;  %2572 = vmatprep.subr.bf16.mxu1 %v4539_v14 }
 0x9da   :  { %2532 = vmatpush1.bf16.msra.mxu0 %v4541_v20  ;;  %2573 = vmatpush1.bf16.msra.mxu1 %v4543_v33 }
 0x9db   :  { %2533 = vmatprep.subr.bf16.mxu0 %v4549_v34  ;;  %2574 = vmatprep.subr.bf16.mxu1 %v4551_v17 }
 0x9de   :  { %2534 = vmatpush1.bf16.msra.mxu0 %v4553_v58  ;;  %2575 = vmatpush1.bf16.msra.mxu1 %v4555_v59 }
 0x9df   :  { %2535 = vmatprep.subr.bf16.mxu0 %v4561_v60  ;;  %2576 = vmatprep.subr.bf16.mxu1 %v4563_v61 }
 0x9e2   :  { %2536 = vmatpush1.bf16.msra.mxu0 %v4565_v2  ;;  %2577 = vmatpush1.bf16.msra.mxu1 %v4567_v47 }
 0x9e3   :  { %2537 = vmatprep.subr.bf16.mxu0 %v4573_v3  ;;  %2578 = vmatprep.subr.bf16.mxu1 %v4575_v4 }
 0x9e6   :  { %2538 = vmatpush1.bf16.msra.mxu0 %v4577_v48  ;;  %2579 = vmatpush1.bf16.msra.mxu1 %v4579_v5 }
 0x9e7   :  { %2539 = vmatprep.subr.bf16.mxu0 %v4581_v49  ;;  %2580 = vmatprep.subr.bf16.mxu1 %v4585_v50 }
 0x9ea   :  { %2540 = vmatpush1.bf16.msra.mxu0 %v4589_v51  ;;  %2581 = vmatpush1.bf16.msra.mxu1 %v4591_v52 }
 0x9eb   :  { %2634 = vmatprep.subr.bf16.mxu0 %v4501_v32  ;;  %2675 = vmatprep.subr.bf16.mxu1 %v4503_v35 }
 0xa8d   :  { %v2450_v57 = vpop.f32.mrf.mxu0  ;;  %v2491_v63 = vpop.f32.mrf.mxu1 }
 0xa8e   :  { %v2498_v53 = vadd.f32 %v2450_v57, %v1868_v37  ;;  %v2500_v18 = vadd.f32 %v2491_v63, %v1941_v31 }
 0xa8f   :  { %v2452_v22 = vpop.f32.mrf.mxu0  ;;  %v2493_v21 = vpop.f32.mrf.mxu1 }
 0xa90   :  { %v2502_v29 = vmul.f32 0.5, %v2498_v53  ;;  %v2499_v12 = vadd.f32 %v2452_v22, %v1870_v7  ;;  %v2501_v46 = vadd.f32 %v2493_v21, %v1943_v19 }
 0xa91   :  { %v2454_v1 = vpop.f32.mrf.mxu0  ;;  %v2495_v25 = vpop.f32.mrf.mxu1 }
 0xa92   :  { %3676 = vtanh.f32 %v2502_v29  ;;  %v2506_v36 = vmul.f32 0.5, %v2499_v12  ;;  %v2511_v45 = vmul.f32 0.5, %v2501_v46  ;;  %v5144_v46 = vld [vmem:[#allocation16_spill] sm:$0xff] }
 0xa93   :  { %v2455_v43 = vpop.f32.mrf.mxu0  ;;  %v2496_v0 = vpop.f32.mrf.mxu1 }
 0xa94   :  { %3678 = vtanh.f32 %v2506_v36  ;;  %v5143_v36 = vld [vmem:[#allocation18_spill] sm:$0xff] }
 0xa95   :  { %3680 = vtanh.f32 %v2500_v18  ;;  %v1874_v43 = vadd.f32 %v5143_v36, %v4700_v26 }
 0xa96   :  { %3682 = vtanh.f32 %v2511_v45  ;;  %v1945_v45 = vadd.f32 %v5144_v46, %v4709_v56 }
 0xa9f   :  { %v3677_v10 = vpop.eup %3676 }
 0xaa0   :  { %v2504_v27 = vadd.f32 1.0, %v3677_v10 }
 0xaa1   :  { %v3679_v23 = vpop.eup %3678 }
 0xaa2   :  { %v2505_v6 = vmul.f32 0.5, %v2504_v27  ;;  %v2508_v37 = vadd.f32 1.0, %v3679_v23  ;;  %v3681_v57 = vpop.eup %3680 }
 0xaa3   :  { %v3683_v22 = vpop.eup %3682 }
 0xaa4   :  { %v2509_v55 = vmul.f32 0.5, %v2508_v37  ;;  %v2516_v7 = vmul.f32 %v3681_v57, %v2505_v6  ;;  %v2513_v13 = vadd.f32 1.0, %v3683_v22 }
 0xaa6   :  { %v2515_v63 = vmul.f32 %v2509_v55, %v4764_v54  ;;  %v2514_v31 = vmul.f32 0.5, %v2513_v13  ;;  %v5142_v54 = vld [vmem:[#allocation15_spill] sm:$0xff] }
 0xaa7   :  { %v1872_v1 = vadd.f32 %v5142_v54, %v4692_v15 }
 0xaa8   :  { %v4810_v53 = vadd.f32 %v2516_v7, %v2515_v63  ;;  %v5145_v63 = vld [vmem:[#allocation17_spill] sm:$0xff] }
 0xaa9   :  { %v1947_v22 = vadd.f32 %v5145_v63, %v4715_v8 }
 0xaaa   :  { %3684 = vtanh.f32 %v4810_v53 }
 0xab7   :  { %v3685_v21 = vpop.eup %3684 }
 0xab8   :  { %v2519_v29 = vmul.f32 %v3685_v21, %v2514_v31 }
 0xaba   :  { %v2524_v12 = vpack.c.bf16 %v2519_v29, %v2519_v29 }
 0xabc   :  { %2558 = vmatmul.mubr.bf16.vlgmr.msra.gmra.mxu0 %v2524_v12  ;;  %2599 = vmatmul.mubr.bf16.vlgmr.msra.gmra.mxu1 %v2524_v12 }
 0xabd   :  { %2635 = vmatpush1.bf16.msra.mxu0 %v4505_v44  ;;  %2676 = vmatpush1.bf16.msra.mxu1 %v4507_v28 }
 0xabe   :  { %2636 = vmatprep.subr.bf16.mxu0 %v4513_v62  ;;  %2677 = vmatprep.subr.bf16.mxu1 %v4515_v9 }
 0xabf   :  { %2666 = vmatprep.mubr.bf16.mxu0 %v5091_v30  ;;  %2707 = vmatprep.mubr.bf16.mxu1 %v5091_v30 }
 0xac1   :  { %2637 = vmatpush1.bf16.msra.mxu0 %v4517_v16  ;;  %2678 = vmatpush1.bf16.msra.mxu1 %v4519_v38 }
 0xac2   :  { %2638 = vmatprep.subr.bf16.mxu0 %v4525_v39  ;;  %2679 = vmatprep.subr.bf16.mxu1 %v4527_v40 }
 0xac5   :  { %2639 = vmatpush1.bf16.msra.mxu0 %v4529_v41  ;;  %2680 = vmatpush1.bf16.msra.mxu1 %v4531_v42 }
 0xac6   :  { %2640 = vmatprep.subr.bf16.mxu0 %v4537_v11  ;;  %2681 = vmatprep.subr.bf16.mxu1 %v4539_v14 }
 0xac9   :  { %2641 = vmatpush1.bf16.msra.mxu0 %v4541_v20  ;;  %2682 = vmatpush1.bf16.msra.mxu1 %v4543_v33 }
 0xaca   :  { %2642 = vmatprep.subr.bf16.mxu0 %v4549_v34  ;;  %2683 = vmatprep.subr.bf16.mxu1 %v4551_v17 }
 0xacd   :  { %2643 = vmatpush1.bf16.msra.mxu0 %v4553_v58  ;;  %2684 = vmatpush1.bf16.msra.mxu1 %v4555_v59 }
 0xace   :  { %2644 = vmatprep.subr.bf16.mxu0 %v4561_v60  ;;  %2685 = vmatprep.subr.bf16.mxu1 %v4563_v61 }
 0xad1   :  { %2645 = vmatpush1.bf16.msra.mxu0 %v4565_v2  ;;  %2686 = vmatpush1.bf16.msra.mxu1 %v4567_v47 }
 0xad2   :  { %2646 = vmatprep.subr.bf16.mxu0 %v4573_v3  ;;  %2687 = vmatprep.subr.bf16.mxu1 %v4575_v4 }
 0xad5   :  { %2647 = vmatpush1.bf16.msra.mxu0 %v4577_v48  ;;  %2688 = vmatpush1.bf16.msra.mxu1 %v4579_v5 }
 0xad6   :  { %2648 = vmatprep.subr.bf16.mxu0 %v4581_v49  ;;  %2689 = vmatprep.subr.bf16.mxu1 %v4585_v50 }
 0xad9   :  { %2649 = vmatpush1.bf16.msra.mxu0 %v4589_v51  ;;  %2690 = vmatpush1.bf16.msra.mxu1 %v4591_v52 }
 0xada   :  { %2743 = vmatprep.subr.bf16.mxu0 %v4501_v32  ;;  %2784 = vmatprep.subr.bf16.mxu1 %v4503_v35 }
 0xb7c   :  { %v2559_v25 = vpop.f32.mrf.mxu0  ;;  %v2600_v18 = vpop.f32.mrf.mxu1 }
 0xb7d   :  { %v2607_v0 = vadd.f32 %v2559_v25, %v1872_v1  ;;  %v2609_v37 = vadd.f32 %v2600_v18, %v1945_v45 }
 0xb7e   :  { %v2561_v24 = vpop.f32.mrf.mxu0  ;;  %v2602_v19 = vpop.f32.mrf.mxu1 }
 0xb7f   :  { %v2611_v10 = vmul.f32 0.5, %v2607_v0  ;;  %v2608_v27 = vadd.f32 %v2561_v24, %v1874_v43  ;;  %v2610_v13 = vadd.f32 %v2602_v19, %v1947_v22 }
 0xb80   :  { %v2563_v23 = vpop.f32.mrf.mxu0  ;;  %v2604_v6 = vpop.f32.mrf.mxu1 }
 0xb81   :  { %3686 = vtanh.f32 %v2611_v10  ;;  %v2615_v57 = vmul.f32 0.5, %v2608_v27  ;;  %v2620_v31 = vmul.f32 0.5, %v2610_v13 }
 0xb82   :  { %v2564_v55 = vpop.f32.mrf.mxu0  ;;  %v2605_v7 = vpop.f32.mrf.mxu1 }
 0xb83   :  { %3688 = vtanh.f32 %v2615_v57 }
 0xb84   :  { %3690 = vtanh.f32 %v2609_v37 }
 0xb85   :  { %3692 = vtanh.f32 %v2620_v31 }
 0xb8e   :  { %v3687_v21 = vpop.eup %3686 }
 0xb8f   :  { %v2613_v29 = vadd.f32 1.0, %v3687_v21 }
 0xb90   :  { %v3689_v12 = vpop.eup %3688 }
 0xb91   :  { %v2614_v54 = vmul.f32 0.5, %v2613_v29  ;;  %v2617_v1 = vadd.f32 1.0, %v3689_v12  ;;  %v3691_v25 = vpop.eup %3690 }
 0xb92   :  { %v3693_v24 = vpop.eup %3692 }
 0xb93   :  { %v2618_v36 = vmul.f32 0.5, %v2617_v1  ;;  %v2625_v43 = vmul.f32 %v3691_v25, %v2614_v54  ;;  %v2622_v46 = vadd.f32 1.0, %v3693_v24  ;;  %v4908_v24 = vld [vmem:[#allocation6 + $0x1e8] ss:$16 sps:$4 sm:$0xff]  }
 0xb95   :  { %v2624_v18 = vmul.f32 %v2618_v36, %v4810_v53  ;;  %v2623_v45 = vmul.f32 0.5, %v2622_v46  ;;  %v4914_v46 = vld [vmem:[#allocation6 + $0x1cc] ss:$16 sps:$4 sm:$0xff]  }
 0xb97   :  { %v4856_v0 = vadd.f32 %v2625_v43, %v2624_v18  ;;  %v4905_v18 = vld [vmem:[#allocation6 + $0x1e0] ss:$16 sps:$4 sm:$0xff]  }
 0xb99   :  { %3694 = vtanh.f32 %v4856_v0 }
 0xba6   :  { %v3695_v19 = vpop.eup %3694 }
 0xba7   :  { %v2628_v10 = vmul.f32 %v3695_v19, %v2623_v45  ;;  %v4919_v45 = vld [vmem:[#allocation6 + $0x1c0] ss:$16 sps:$4 sm:$0xff]   ;;  %v4922_v19 = vld [vmem:[#allocation6 + $0x1c8] ss:$16 sps:$4 sm:$0xff]  }
 0xba9   :  { %v2633_v27 = vpack.c.bf16 %v2628_v10, %v2628_v10  ;;  %v4925_v10 = vld [vmem:[#allocation6 + $0x1a4] ss:$16 sps:$4 sm:$0xff]  }
 0xbab   :  { %2667 = vmatmul.mubr.bf16.vlgmr.msra.gmra.mxu0 %v2633_v27  ;;  %2708 = vmatmul.mubr.bf16.vlgmr.msra.gmra.mxu1 %v2633_v27  ;;  %v4928_v27 = vld [vmem:[#allocation6 + $0x1ac] ss:$16 sps:$4 sm:$0xff]  }
 0xbac   :  { %2744 = vmatpush1.bf16.msra.mxu0 %v4505_v44  ;;  %2785 = vmatpush1.bf16.msra.mxu1 %v4507_v28  ;;  %v5146_v44 = vld [vmem:[#allocation19_spill] sm:$0xff] }
 0xbad   :  { %2745 = vmatprep.subr.bf16.mxu0 %v4513_v62  ;;  %2786 = vmatprep.subr.bf16.mxu1 %v4515_v9  ;;  %v1878_v28 = vadd.f32 %v5146_v44, %v4692_v15  ;;  %v4931_v44 = vld [vmem:[#allocation6 + $0x1a0] ss:$16 sps:$4 sm:$0xff]  }
 0xbae   :  { %2775 = vmatprep.mubr.bf16.mxu0 %v5091_v30  ;;  %2816 = vmatprep.mubr.bf16.mxu1 %v5091_v30 }
 0xbb0   :  { %2746 = vmatpush1.bf16.msra.mxu0 %v4517_v16  ;;  %2787 = vmatpush1.bf16.msra.mxu1 %v4519_v38  ;;  %v5147_v16 = vld [vmem:[#allocation22_spill] sm:$0xff] }
 0xbb1   :  { %2747 = vmatprep.subr.bf16.mxu0 %v4525_v39  ;;  %2788 = vmatprep.subr.bf16.mxu1 %v4527_v40  ;;  %v1880_v38 = vadd.f32 %v5147_v16, %v4700_v26  ;;  %v4943_v16 = vld [vmem:[#allocation6 + $0x180] ss:$16 sps:$4 sm:$0xff]  }
 0xbb4   :  { %2748 = vmatpush1.bf16.msra.mxu0 %v4529_v41  ;;  %2789 = vmatpush1.bf16.msra.mxu1 %v4531_v42  ;;  %v5148_v42 = vld [vmem:[#allocation20_spill] sm:$0xff] }
 0xbb5   :  { %2749 = vmatprep.subr.bf16.mxu0 %v4537_v11  ;;  %2790 = vmatprep.subr.bf16.mxu1 %v4539_v14  ;;  %v1951_v11 = vadd.f32 %v5148_v42, %v4709_v56  ;;  %v4958_v42 = vld [vmem:[#allocation6 + $0x168] ss:$16 sps:$4 sm:$0xff]  }
 0xbb8   :  { %2750 = vmatpush1.bf16.msra.mxu0 %v4541_v20  ;;  %2791 = vmatpush1.bf16.msra.mxu1 %v4543_v33 }
 0xbb9   :  { %2751 = vmatprep.subr.bf16.mxu0 %v4549_v34  ;;  %2792 = vmatprep.subr.bf16.mxu1 %v4551_v17 }
 0xbbc   :  { %2752 = vmatpush1.bf16.msra.mxu0 %v4553_v58  ;;  %2793 = vmatpush1.bf16.msra.mxu1 %v4555_v59  ;;  %v5149_v59 = vld [vmem:[#allocation21_spill] sm:$0xff] }
 0xbbd   :  { %2753 = vmatprep.subr.bf16.mxu0 %v4561_v60  ;;  %2794 = vmatprep.subr.bf16.mxu1 %v4563_v61  ;;  %v1953_v53 = vadd.f32 %v5149_v59, %v4715_v8  ;;  %v5153_v59 = vld [vmem:[#allocation25_spill] sm:$0xff] }
 0xbc0   :  { %2754 = vmatpush1.bf16.msra.mxu0 %v4565_v2  ;;  %2795 = vmatpush1.bf16.msra.mxu1 %v4567_v47 }
 0xbc1   :  { %2755 = vmatprep.subr.bf16.mxu0 %v4573_v3  ;;  %2796 = vmatprep.subr.bf16.mxu1 %v4575_v4 }
 0xbc4   :  { %2756 = vmatpush1.bf16.msra.mxu0 %v4577_v48  ;;  %2797 = vmatpush1.bf16.msra.mxu1 %v4579_v5 }
 0xbc5   :  { %2757 = vmatprep.subr.bf16.mxu0 %v4581_v49  ;;  %2798 = vmatprep.subr.bf16.mxu1 %v4585_v50 }
 0xbc8   :  { %2758 = vmatpush1.bf16.msra.mxu0 %v4589_v51  ;;  %2799 = vmatpush1.bf16.msra.mxu1 %v4591_v52 }
 0xbc9   :  { %2852 = vmatprep.subr.bf16.mxu0 %v4501_v32  ;;  %2893 = vmatprep.subr.bf16.mxu1 %v4503_v35 }
 0xc6b   :  { %v2668_v62 = vpop.f32.mrf.mxu0  ;;  %v2709_v9 = vpop.f32.mrf.mxu1 }
 0xc6c   :  { %v2716_v39 = vadd.f32 %v2668_v62, %v1878_v28  ;;  %v2718_v35 = vadd.f32 %v2709_v9, %v1951_v11  ;;  %v4934_v28 = vld [vmem:[#allocation6 + $0x1a8] ss:$16 sps:$4 sm:$0xff]   ;;  %v4937_v62 = vld [vmem:[#allocation6 + $0x184] ss:$16 sps:$4 sm:$0xff]   ;;  %v4940_v9 = vld [vmem:[#allocation6 + $0x18c] ss:$16 sps:$4 sm:$0xff]  }
 0xc6d   :  { %v2670_v40 = vpop.f32.mrf.mxu0  ;;  %v2711_v41 = vpop.f32.mrf.mxu1 }
 0xc6e   :  { %v2720_v14 = vmul.f32 0.5, %v2716_v39  ;;  %v2717_v20 = vadd.f32 %v2670_v40, %v1880_v38  ;;  %v2719_v23 = vadd.f32 %v2711_v41, %v1953_v53  ;;  %v4946_v38 = vld [vmem:[#allocation6 + $0x188] ss:$16 sps:$4 sm:$0xff]   ;;  %v4949_v39 = vld [vmem:[#allocation6 + $0x164] ss:$16 sps:$4 sm:$0xff]   ;;  %v1957_v53 = vadd.f32 %v5153_v59, %v4715_v8 }
 0xc6f   :  { %v2672_v33 = vpop.f32.mrf.mxu0  ;;  %v2713_v32 = vpop.f32.mrf.mxu1  ;;  %v4952_v40 = vld [vmem:[#allocation6 + $0x16c] ss:$16 sps:$4 sm:$0xff]   ;;  %v4955_v41 = vld [vmem:[#allocation6 + $0x160] ss:$16 sps:$4 sm:$0xff]  }
 0xc70   :  { %3696 = vtanh.f32 %v2720_v14  ;;  %v2724_v34 = vmul.f32 0.5, %v2717_v20  ;;  %v2729_v6 = vmul.f32 0.5, %v2719_v23 }
 0xc71   :  { %v2673_v17 = vpop.f32.mrf.mxu0  ;;  %v2714_v58 = vpop.f32.mrf.mxu1 }
 0xc72   :  { %3698 = vtanh.f32 %v2724_v34 }
 0xc73   :  { %3700 = vtanh.f32 %v2718_v35 }
 0xc74   :  { %3702 = vtanh.f32 %v2729_v6 }
 0xc7d   :  { %v3697_v37 = vpop.eup %3696 }
 0xc7e   :  { %v2722_v57 = vadd.f32 1.0, %v3697_v37 }
 0xc7f   :  { %v3699_v55 = vpop.eup %3698 }
 0xc80   :  { %v2723_v7 = vmul.f32 0.5, %v2722_v57  ;;  %v2726_v63 = vadd.f32 1.0, %v3699_v55  ;;  %v3701_v22 = vpop.eup %3700 }
 0xc81   :  { %v3703_v12 = vpop.eup %3702 }
 0xc82   :  { %v2727_v13 = vmul.f32 0.5, %v2726_v63  ;;  %v2734_v31 = vmul.f32 %v3701_v22, %v2723_v7  ;;  %v2731_v54 = vadd.f32 1.0, %v3703_v12 }
 0xc84   :  { %v2733_v21 = vmul.f32 %v2727_v13, %v4856_v0  ;;  %v2732_v1 = vmul.f32 0.5, %v2731_v54  ;;  %v4911_v0 = vld [vmem:[#allocation6 + $0x1c4] ss:$16 sps:$4 sm:$0xff]  }
 0xc86   :  { %v4902_v29 = vadd.f32 %v2734_v31, %v2733_v21 }
 0xc88   :  { %3704 = vtanh.f32 %v4902_v29 }
 0xc95   :  { %v3705_v25 = vpop.eup %3704 }
 0xc96   :  { %v2737_v36 = vmul.f32 %v3705_v25, %v2732_v1 }
 0xc98   :  { %v2742_v43 = vpack.c.bf16 %v2737_v36, %v2737_v36 }
 0xc9a   :  { %2776 = vmatmul.mubr.bf16.vlgmr.msra.gmra.mxu0 %v2742_v43  ;;  %2817 = vmatmul.mubr.bf16.vlgmr.msra.gmra.mxu1 %v2742_v43 }
 0xc9b   :  { %2853 = vmatpush1.bf16.msra.mxu0 %v4905_v18  ;;  %2894 = vmatpush1.bf16.msra.mxu1 %v4908_v24 }
 0xc9c   :  { %2854 = vmatprep.subr.bf16.mxu0 %v4911_v0  ;;  %2895 = vmatprep.subr.bf16.mxu1 %v4914_v46 }
 0xc9d   :  { %2884 = vmatprep.mubr.bf16.mxu0 %v5091_v30  ;;  %2925 = vmatprep.mubr.bf16.mxu1 %v5091_v30 }
 0xc9f   :  { %2855 = vmatpush1.bf16.msra.mxu0 %v4919_v45  ;;  %2896 = vmatpush1.bf16.msra.mxu1 %v4922_v19 }
 0xca0   :  { %2856 = vmatprep.subr.bf16.mxu0 %v4925_v10  ;;  %2897 = vmatprep.subr.bf16.mxu1 %v4928_v27 }
 0xca3   :  { %2857 = vmatpush1.bf16.msra.mxu0 %v4931_v44  ;;  %2898 = vmatpush1.bf16.msra.mxu1 %v4934_v28 }
 0xca4   :  { %2858 = vmatprep.subr.bf16.mxu0 %v4937_v62  ;;  %2899 = vmatprep.subr.bf16.mxu1 %v4940_v9 }
 0xca7   :  { %2859 = vmatpush1.bf16.msra.mxu0 %v4943_v16  ;;  %2900 = vmatpush1.bf16.msra.mxu1 %v4946_v38 }
 0xca8   :  { %2860 = vmatprep.subr.bf16.mxu0 %v4949_v39  ;;  %2901 = vmatprep.subr.bf16.mxu1 %v4952_v40 }
 0xcab   :  { %2861 = vmatpush1.bf16.msra.mxu0 %v4955_v41  ;;  %2902 = vmatpush1.bf16.msra.mxu1 %v4958_v42 }
 0xcac   :  { %2862 = vmatprep.subr.bf16.mxu0 %v4561_v60  ;;  %2903 = vmatprep.subr.bf16.mxu1 %v4563_v61  ;;  %v3786_v60 = vld [vmem:[#allocation6 + $0x1e4] ss:$16 sps:$4 sm:$0xff]   ;;  %v3787_v61 = vld [vmem:[#allocation6 + $0x1ec] ss:$16 sps:$4 sm:$0xff]  }
 0xcaf   :  { %2863 = vmatpush1.bf16.msra.mxu0 %v4565_v2  ;;  %2904 = vmatpush1.bf16.msra.mxu1 %v4567_v47  ;;  %v5150_v2 = vld [vmem:[#allocation23_spill] sm:$0xff] }
 0xcb0   :  { %2864 = vmatprep.subr.bf16.mxu0 %v4573_v3  ;;  %2905 = vmatprep.subr.bf16.mxu1 %v4575_v4  ;;  %v1882_v47 = vadd.f32 %v5150_v2, %v4692_v15  ;;  %v5156_v2 = vld [vmem:[#allocation28_spill] sm:$0xff] }
 0xcb3   :  { %2865 = vmatpush1.bf16.msra.mxu0 %v4577_v48  ;;  %2906 = vmatpush1.bf16.msra.mxu1 %v4579_v5  ;;  %v5151_v48 = vld [vmem:[#allocation26_spill] sm:$0xff] }
 0xcb4   :  { %2866 = vmatprep.subr.bf16.mxu0 %v4581_v49  ;;  %2907 = vmatprep.subr.bf16.mxu1 %v4585_v50  ;;  %v1884_v5 = vadd.f32 %v5151_v48, %v4700_v26  ;;  %v5152_v50 = vld [vmem:[#allocation24_spill] sm:$0xff] }
 0xcb7   :  { %2867 = vmatpush1.bf16.msra.mxu0 %v4589_v51  ;;  %2908 = vmatpush1.bf16.msra.mxu1 %v4591_v52  ;;  %v1955_v51 = vadd.f32 %v5152_v50, %v4709_v56 }
 0xcb8   :  { %2961 = vmatprep.subr.bf16.mxu0 %v3786_v60  ;;  %3002 = vmatprep.subr.bf16.mxu1 %v3787_v61 }
 0xd5a   :  { %v2777_v3 = vpop.f32.mrf.mxu0  ;;  %v2818_v4 = vpop.f32.mrf.mxu1 }
 0xd5b   :  { %v2825_v11 = vadd.f32 %v2777_v3, %v1882_v47  ;;  %v2827_v35 = vadd.f32 %v2818_v4, %v1955_v51  ;;  %v1961_v47 = vadd.f32 %v5156_v2, %v4709_v56  ;;  %v5157_v51 = vld [vmem:[#allocation30_spill] sm:$0xff] }
 0xd5c   :  { %v2779_v49 = vpop.f32.mrf.mxu0  ;;  %v2820_v14 = vpop.f32.mrf.mxu1 }
 0xd5d   :  { %v2829_v20 = vmul.f32 0.5, %v2825_v11  ;;  %v2826_v52 = vadd.f32 %v2779_v49, %v1884_v5  ;;  %v2828_v23 = vadd.f32 %v2820_v14, %v1957_v53 }
 0xd5e   :  { %v2781_v33 = vpop.f32.mrf.mxu0  ;;  %v2822_v32 = vpop.f32.mrf.mxu1 }
 0xd5f   :  { %3706 = vtanh.f32 %v2829_v20  ;;  %v2833_v34 = vmul.f32 0.5, %v2826_v52  ;;  %v2838_v6 = vmul.f32 0.5, %v2828_v23  ;;  %v1963_v20 = vadd.f32 %v5157_v51, %v4715_v8 }
 0xd60   :  { %v2782_v17 = vpop.f32.mrf.mxu0  ;;  %v2823_v58 = vpop.f32.mrf.mxu1 }
 0xd61   :  { %3708 = vtanh.f32 %v2833_v34 }
 0xd62   :  { %3710 = vtanh.f32 %v2827_v35 }
 0xd63   :  { %3712 = vtanh.f32 %v2838_v6 }
 0xd6c   :  { %v3707_v37 = vpop.eup %3706 }
 0xd6d   :  { %v2831_v57 = vadd.f32 1.0, %v3707_v37 }
 0xd6e   :  { %v3709_v55 = vpop.eup %3708 }
 0xd6f   :  { %v2832_v7 = vmul.f32 0.5, %v2831_v57  ;;  %v2835_v63 = vadd.f32 1.0, %v3709_v55  ;;  %v3711_v22 = vpop.eup %3710 }
 0xd70   :  { %v3713_v54 = vpop.eup %3712 }
 0xd71   :  { %v2836_v13 = vmul.f32 0.5, %v2835_v63  ;;  %v2843_v31 = vmul.f32 %v3711_v22, %v2832_v7  ;;  %v2840_v1 = vadd.f32 1.0, %v3713_v54  ;;  %v3570_v54 = vld [vmem:[%s5060_s4 + $0x28] sm:$0xff]  }
 0xd73   :  { %v2842_v21 = vmul.f32 %v2836_v13, %v4902_v29  ;;  %v2841_v25 = vmul.f32 0.5, %v2840_v1  ;;  %v3789_v29 = vld [vmem:[#allocation6 + $0x14c] ss:$16 sps:$4 sm:$0xff]   ;;  %v3571_v1 = vld [vmem:[%s5060_s4 + $0x20] sm:$0xff]  }
 0xd75   :  { %v4982_v12 = vadd.f32 %v2843_v31, %v2842_v21  ;;  %v3568_v31 = vld [vmem:[%s5060_s4 + $0x38] sm:$0xff]   ;;  %v3872_v21 = vmov 0.0  }
 0xd77   :  { %3714 = vtanh.f32 %v4982_v12 }
 0xd84   :  { %v3715_v36 = vpop.eup %3714 }
 0xd85   :  { %v2846_v43 = vmul.f32 %v3715_v36, %v2841_v25  ;;  %v3572_v25 = vld [vmem:[%s5060_s4 + $0x18] sm:$0xff]   ;;  %v3573_v36 = vld [vmem:[%s5060_s4 + $0x10] sm:$0xff]  }
 0xd87   :  { %v2851_v60 = vpack.c.bf16 %v2846_v43, %v2846_v43  ;;  %v3574_v43 = vld [vmem:[%s5060_s4 + $0x8] sm:$0xff]  }
 0xd89   :  { %2885 = vmatmul.mubr.bf16.vlgmr.msra.gmra.mxu0 %v2851_v60  ;;  %2926 = vmatmul.mubr.bf16.vlgmr.msra.gmra.mxu1 %v2851_v60  ;;  %v3575_v60 = vld [vmem:[%s5060_s4] sm:$0xff]  }
 0xd8a   :  { %2962 = vmatpush1.bf16.msra.mxu0 %v4905_v18  ;;  %3003 = vmatpush1.bf16.msra.mxu1 %v4908_v24  ;;  %v3790_v18 = vld [vmem:[#allocation6 + $0x140] ss:$16 sps:$4 sm:$0xff]   ;;  %v3791_v24 = vld [vmem:[#allocation6 + $0x148] ss:$16 sps:$4 sm:$0xff]  }
 0xd8b   :  { %2963 = vmatprep.subr.bf16.mxu0 %v4911_v0  ;;  %3004 = vmatprep.subr.bf16.mxu1 %v4914_v46  ;;  %v3792_v0 = vld [vmem:[#allocation6 + $0x124] ss:$16 sps:$4 sm:$0xff]   ;;  %v3793_v46 = vld [vmem:[#allocation6 + $0x12c] ss:$16 sps:$4 sm:$0xff]  }
 0xd8c   :  { %2993 = vmatprep.mubr.bf16.mxu0 %v5091_v30  ;;  %3034 = vmatprep.mubr.bf16.mxu1 %v5091_v30  ;;  %v3788_v30 = vld [vmem:[#allocation6 + $0x144] ss:$16 sps:$4 sm:$0xff]  }
 0xd8e   :  { %2964 = vmatpush1.bf16.msra.mxu0 %v4919_v45  ;;  %3005 = vmatpush1.bf16.msra.mxu1 %v4922_v19  ;;  %v3794_v45 = vld [vmem:[#allocation6 + $0x120] ss:$16 sps:$4 sm:$0xff]   ;;  %v3795_v19 = vld [vmem:[#allocation6 + $0x128] ss:$16 sps:$4 sm:$0xff]  }
 0xd8f   :  { %2965 = vmatprep.subr.bf16.mxu0 %v4925_v10  ;;  %3006 = vmatprep.subr.bf16.mxu1 %v4928_v27  ;;  %v3796_v10 = vld [vmem:[#allocation6 + $0x104] ss:$16 sps:$4 sm:$0xff]   ;;  %v3797_v27 = vld [vmem:[#allocation6 + $0x10c] ss:$16 sps:$4 sm:$0xff]  }
 0xd92   :  { %2966 = vmatpush1.bf16.msra.mxu0 %v4931_v44  ;;  %3007 = vmatpush1.bf16.msra.mxu1 %v4934_v28  ;;  %v3798_v44 = vld [vmem:[#allocation6 + $0x100] ss:$16 sps:$4 sm:$0xff]   ;;  %v3799_v28 = vld [vmem:[#allocation6 + $0x108] ss:$16 sps:$4 sm:$0xff]  }
 0xd93   :  { %2967 = vmatprep.subr.bf16.mxu0 %v4937_v62  ;;  %3008 = vmatprep.subr.bf16.mxu1 %v4940_v9  ;;  %v5154_v62 = vld [vmem:[#allocation27_spill] sm:$0xff] }
 0xd94   :  { %v1888_v9 = vadd.f32 %v5154_v62, %v4692_v15 }
 0xd96   :  { %2968 = vmatpush1.bf16.msra.mxu0 %v4943_v16  ;;  %3009 = vmatpush1.bf16.msra.mxu1 %v4946_v38 }
 0xd97   :  { %2969 = vmatprep.subr.bf16.mxu0 %v4949_v39  ;;  %3010 = vmatprep.subr.bf16.mxu1 %v4952_v40  ;;  %v5155_v39 = vld [vmem:[#allocation29_spill] sm:$0xff] }
 0xd98   :  { %v1890_v40 = vadd.f32 %v5155_v39, %v4700_v26 }
 0xd9a   :  { %2970 = vmatpush1.bf16.msra.mxu0 %v4955_v41  ;;  %3011 = vmatpush1.bf16.msra.mxu1 %v4958_v42 }
 0xd9b   :  { %2971 = vmatprep.subr.bf16.mxu0 %v3788_v30  ;;  %3012 = vmatprep.subr.bf16.mxu1 %v3789_v29  ;;  %v5158_v30 = vld [vmem:[#allocation11_spill] sm:$0xff] }
 0xd9c   :  { %v1892_v29 = vadd.f32 %v5158_v30, %v4692_v15 }
 0xd9e   :  { %2972 = vmatpush1.bf16.msra.mxu0 %v3790_v18  ;;  %3013 = vmatpush1.bf16.msra.mxu1 %v3791_v24 }
 0xd9f   :  { %2973 = vmatprep.subr.bf16.mxu0 %v3792_v0  ;;  %3014 = vmatprep.subr.bf16.mxu1 %v3793_v46  ;;  %v5159_v0 = vld [vmem:[#allocation32_spill] sm:$0xff] }
 0xda0   :  { %v1894_v46 = vadd.f32 %v5159_v0, %v4700_v26 }
 0xda2   :  { %2974 = vmatpush1.bf16.msra.mxu0 %v3794_v45  ;;  %3015 = vmatpush1.bf16.msra.mxu1 %v3795_v19 }
 0xda3   :  { %2975 = vmatprep.subr.bf16.mxu0 %v3796_v10  ;;  %3016 = vmatprep.subr.bf16.mxu1 %v3797_v27  ;;  %v5160_v27 = vld [vmem:[#allocation31_spill] sm:$0xff] }
 0xda6   :  { %2976 = vmatpush1.bf16.msra.mxu0 %v3798_v44  ;;  %3017 = vmatpush1.bf16.msra.mxu1 %v3799_v28  ;;  %v1965_v44 = vadd.f32 %v5160_v27, %v4709_v56 }
 0xda7   :  { %3338 = vmatprep.subr.bf16.mxu0 %v3872_v21 }
 0xe49   :  { %v2886_v16 = vpop.f32.mrf.mxu0  ;;  %v2927_v38 = vpop.f32.mrf.mxu1 }
 0xe4a   :  { %v2934_v41 = vadd.f32 %v2886_v16, %v1888_v9  ;;  %v2936_v11 = vadd.f32 %v2927_v38, %v1961_v47 }
 0xe4b   :  { %v2888_v42 = vpop.f32.mrf.mxu0  ;;  %v2929_v61 = vpop.f32.mrf.mxu1 }
 0xe4c   :  { %v2938_v3 = vmul.f32 0.5, %v2934_v41  ;;  %v2935_v4 = vadd.f32 %v2888_v42, %v1890_v40  ;;  %v2937_v52 = vadd.f32 %v2929_v61, %v1963_v20  ;;  %v5161_v41 = vld [vmem:[#allocation33_spill] sm:$0xff] }
 0xe4d   :  { %v2890_v48 = vpop.f32.mrf.mxu0  ;;  %v2931_v5 = vpop.f32.mrf.mxu1  ;;  %v1967_v26 = vadd.f32 %v5161_v41, %v4715_v8 }
 0xe4e   :  { %3716 = vtanh.f32 %v2938_v3  ;;  %v2942_v49 = vmul.f32 0.5, %v2935_v4  ;;  %v2947_v33 = vmul.f32 0.5, %v2937_v52 }
 0xe4f   :  { %v2891_v14 = vpop.f32.mrf.mxu0  ;;  %v2932_v50 = vpop.f32.mrf.mxu1 }
 0xe50   :  { %3718 = vtanh.f32 %v2942_v49 }
 0xe51   :  { %3720 = vtanh.f32 %v2936_v11 }
 0xe52   :  { %3722 = vtanh.f32 %v2947_v33 }
 0xe5b   :  { %v3717_v32 = vpop.eup %3716 }
 0xe5c   :  { %v2940_v35 = vadd.f32 1.0, %v3717_v32  ;;  %v3320_v32 = vld [vmem:[%s5061_s5] ss:$0 sm:$0xff] }
 0xe5d   :  { %v3719_v34 = vpop.eup %3718 }
 0xe5e   :  { %v2941_v17 = vmul.f32 0.5, %v2940_v35  ;;  %v2944_v58 = vadd.f32 1.0, %v3719_v34  ;;  %v3721_v59 = vpop.eup %3720 }
 0xe5f   :  { %v3723_v57 = vpop.eup %3722 }
 0xe60   :  { %v2945_v53 = vmul.f32 0.5, %v2944_v58  ;;  %v2952_v23 = vmul.f32 %v3721_v59, %v2941_v17  ;;  %v2949_v55 = vadd.f32 1.0, %v3723_v57 }
 0xe62   :  { %v2951_v6 = vmul.f32 %v2945_v53, %v4982_v12  ;;  %v2950_v7 = vmul.f32 0.5, %v2949_v55  ;;  %v3569_v12 = vld [vmem:[%s5060_s4 + $0x30] sm:$0xff]  }
 0xe64   :  { %v5014_v37 = vadd.f32 %v2952_v23, %v2951_v6 }
 0xe66   :  { %3724 = vtanh.f32 %v5014_v37 }
 0xe73   :  { %v3725_v63 = vpop.eup %3724 }
 0xe74   :  { %v2955_v22 = vmul.f32 %v3725_v63, %v2950_v7 }
 0xe76   :  { %v2960_v13 = vpack.c.bf16 %v2955_v22, %v2955_v22 }
 0xe78   :  { %2994 = vmatmul.mubr.bf16.vlgmr.msra.gmra.mxu0 %v2960_v13  ;;  %3035 = vmatmul.mubr.bf16.vlgmr.msra.gmra.mxu1 %v2960_v13 }
 0xe79   :  { %3339 = vmatpush3.bf16.msra.mxu0 %v3568_v31  ;;  %3354 = vmatprep.mubr.msk.bf16.mxu0 %vm3873_vm0, %v3872_v21 }
 0xe7a   :  { %3340 = vmatprep.subr.bf16.mxu0 %v3872_v21 }
 0xe7d   :  { %3341 = vmatpush3.bf16.msra.mxu0 %v3569_v12 }
 0xe7e   :  { %3342 = vmatprep.subr.bf16.mxu0 %v3872_v21 }
 0xe81   :  { %3343 = vmatpush3.bf16.msra.mxu0 %v3570_v54 }
 0xe82   :  { %3344 = vmatprep.subr.bf16.mxu0 %v3872_v21 }
 0xe85   :  { %3345 = vmatpush3.bf16.msra.mxu0 %v3571_v1 }
 0xe86   :  { %3346 = vmatprep.subr.bf16.mxu0 %v3872_v21 }
 0xe89   :  { %3347 = vmatpush3.bf16.msra.mxu0 %v3572_v25 }
 0xe8a   :  { %3348 = vmatprep.subr.bf16.mxu0 %v3872_v21 }
 0xe8d   :  { %3349 = vmatpush3.bf16.msra.mxu0 %v3573_v36 }
 0xe8e   :  { %3350 = vmatprep.subr.bf16.mxu0 %v3872_v21 }
 0xe91   :  { %3351 = vmatpush3.bf16.msra.mxu0 %v3574_v43 }
 0xe92   :  { %3352 = vmatprep.subr.bf16.mxu0 %v3872_v21 }
 0xe95   :  { %3353 = vmatpush3.bf16.msra.mxu0 %v3575_v60 }
 0xf38   :  { %v2995_v18 = vpop.f32.mrf.mxu0  ;;  %v3036_v24 = vpop.f32.mrf.mxu1 }
 0xf39   :  { %v3043_v45 = vadd.f32 %v2995_v18, %v1892_v29  ;;  %v3045_v38 = vadd.f32 %v3036_v24, %v1965_v44 }
 0xf3a   :  { %v2997_v19 = vpop.f32.mrf.mxu0  ;;  %v3038_v10 = vpop.f32.mrf.mxu1 }
 0xf3b   :  { %v3047_v28 = vmul.f32 0.5, %v3043_v45  ;;  %v3044_v62 = vadd.f32 %v2997_v19, %v1894_v46  ;;  %v3046_v42 = vadd.f32 %v3038_v10, %v1967_v26 }
 0xf3c   :  { %v2999_v9 = vpop.f32.mrf.mxu0  ;;  %v3040_v16 = vpop.f32.mrf.mxu1 }
 0xf3d   :  { %3726 = vtanh.f32 %v3047_v28  ;;  %v3051_v39 = vmul.f32 0.5, %v3044_v62  ;;  %v3056_v61 = vmul.f32 0.5, %v3046_v42 }
 0xf3e   :  { %v3000_v40 = vpop.f32.mrf.mxu0  ;;  %v3041_v15 = vpop.f32.mrf.mxu1 }
 0xf3f   :  { %3728 = vtanh.f32 %v3051_v39 }
 0xf40   :  { %3730 = vtanh.f32 %v3045_v38 }
 0xf41   :  { %3732 = vtanh.f32 %v3056_v61 }
 0xf4a   :  { %v3727_v2 = vpop.eup %3726 }
 0xf4b   :  { %v3049_v47 = vadd.f32 1.0, %v3727_v2 }
 0xf4c   :  { %v3729_v3 = vpop.eup %3728 }
 0xf4d   :  { %v3050_v56 = vmul.f32 0.5, %v3049_v47  ;;  %v3053_v4 = vadd.f32 1.0, %v3729_v3  ;;  %v3731_v48 = vpop.eup %3730 }
 0xf4e   :  { %v3733_v50 = vpop.eup %3732 }
 0xf4f   :  { %v3054_v5 = vmul.f32 0.5, %v3053_v4  ;;  %v3061_v11 = vmul.f32 %v3731_v48, %v3050_v56  ;;  %v3058_v51 = vadd.f32 1.0, %v3733_v50 }
 0xf51   :  { %v3060_v49 = vmul.f32 %v3054_v5, %v5014_v37  ;;  %v3059_v20 = vmul.f32 0.5, %v3058_v51 }
 0xf53   :  { %v3062_v14 = vadd.f32 %v3061_v11, %v3060_v49 }
 0xf55   :  { %3734 = vtanh.f32 %v3062_v14 }
 0xf62   :  { %v3735_v52 = vpop.eup %3734 }
 0xf63   :  { %v3064_v8 = vmul.f32 %v3735_v52, %v3059_v20 }
 0xf65   :  { %v3065_v33 = vpack.c.bf16 %v3064_v8, %v3064_v8 }
 0xf67   :  { %3355 = vmatmul.mubr.bf16.vlgmr.msra.gmra.mxu0 %v3065_v33 }
0x1027   :  { %v3171_v35 = vpop.f32.mrf.mxu0 }
0x1028   :  { %v3172_v34 = vadd.f32 %v3320_v32, %v3171_v35 }
0x1029   :  { %v3356_v17 = vpop.f32.mrf.mxu0 }
0x102a   :  { %3177 = vst [vmem:[%s5062_s6] sm:$0xff] %v3172_v34 }
0x102b   :  { %v3174_v58 = vpop.f32.mrf.mxu0 }
0x102d   :  { %v3357_v59 = vpop.f32.mrf.mxu0 }
0x102e   :  { %3182 = vsyncpa [#allocation5], 1 }
0x102f   :  { %3183 = vsyncpa [#allocation7], 1 }

</bundles_post_ra>
